<compile_context>
chip_gen: v6e
topology: v6e:2x2x1
jax: 0.10.0
libtpu: 0.0.40
codegen_flags: <defaults>
</compile_context>

<pallas_src>
import math

import numpy as np
import jax
import jax.numpy as jnp
from jax.experimental import pallas as pl
from jax.experimental.pallas import tpu as pltpu

# ----------------------------- model config ---------------------------------
IMG_SIZE = 16
PATCH = 4
IN_CH = 4
EMBED = 32
DEPTH = 2
HEADS = 4
HEAD_DIM = EMBED // HEADS                    # 8
MLP_RATIO = 4.0
MLP_HIDDEN = int(EMBED * MLP_RATIO)          # 128
NUM_CLASSES = 10
BATCH = 2
NUM_PATCHES = (IMG_SIZE // PATCH) ** 2       # 16
SEQ = NUM_PATCHES + 1                        # 17 (+1 cls token)
SEQ_PAD = 24                                 # tokens padded to a multiple of 8
TOK = BATCH * SEQ_PAD                        # 48: batch folded into sublanes
PATCH_DIM = IN_CH * PATCH * PATCH            # 64
CLS_PAD = 128                                # lane-dense classifier output
LANES = 128
LN_EPS = 1e-5
ATTN_SCALE = 1.0 / math.sqrt(HEAD_DIM)
NEG_INF = -1e9

# ------------------------ packed weight-slab layout --------------------------
# One (TOTAL_ROWS, 128) f32 slab holds every parameter (plus the precomputed
# attention bias).  All sub-block row offsets are multiples of 8 (sublane
# aligned); payloads live in the low lanes, the rest is zero padding.
OFF_PATCH_W = 0                              # (PATCH_DIM, EMBED)   lanes 0:32
OFF_POS = OFF_PATCH_W + PATCH_DIM            # (TOK, EMBED): cls+pos / pos+patch_b / 0
OFF_BIAS = OFF_POS + TOK                     # (TOK, TOK): 0 same-image valid key, -1e9 else
LAYER_BASE = OFF_BIAS + TOK
R_WQKV = 0                                   # (EMBED, 3*EMBED)  Q-part pre-scaled
R_WO = R_WQKV + EMBED                        # (EMBED, EMBED)
R_FC1 = R_WO + EMBED                         # (EMBED, MLP_HIDDEN)
R_FC2 = R_FC1 + EMBED                        # (MLP_HIDDEN, EMBED)
R_VEC = R_FC2 + MLP_HIDDEN                   # (8, 128): ln1_g/b, ln2_g/b, bqkv, bo, b1, b2
LAYER_ROWS = R_VEC + 8                       # 232 rows per layer
OFF_LNF = LAYER_BASE + DEPTH * LAYER_ROWS    # (8,128): lnf_g, lnf_b, head_b, zeros
OFF_HEADW = OFF_LNF + 8                      # (EMBED, CLS_PAD)
TOTAL_ROWS = OFF_HEADW + EMBED               # 664 rows (~340 KiB) -> tiny in VMEM


# ----------------------------- fused Pallas kernel ---------------------------
def _vit_fused_kernel(patches_ref, w_ref, out_ref):
    # patches_ref: (TOK, PATCH_DIM)   batch folded into rows; cls/pad rows are 0
    # w_ref:       (TOTAL_ROWS, 128)  packed weights + attention bias
    # out_ref:     (TOK, CLS_PAD)     lane-dense logits for every token row
    def layernorm(v, g, b):
        mu = jnp.mean(v, axis=-1, keepdims=True)
        var = jnp.mean((v - mu) ** 2, axis=-1, keepdims=True)
        return (v - mu) * jax.lax.rsqrt(var + LN_EPS) * g + b

    patch_w = w_ref[OFF_PATCH_W:OFF_PATCH_W + PATCH_DIM, 0:EMBED]    # (64, 32)
    pos = w_ref[OFF_POS:OFF_POS + TOK, 0:EMBED]                      # (48, 32)
    attn_bias = w_ref[OFF_BIAS:OFF_BIAS + TOK, 0:TOK]                # (48, 48)

    # Patch projection + cls token + positional embedding in one matmul+add.
    # cls rows / pad rows of `patches` are zero, so they only pick up the
    # (cls+pos) / zero rows baked into `pos`; patch_b is folded into `pos`.
    x = jnp.dot(patches_ref[...], patch_w,
                preferred_element_type=jnp.float32) + pos            # (48, 32)

    for d in range(DEPTH):                         # static unroll (DEPTH=2)
        base = LAYER_BASE + d * LAYER_ROWS
        wqkv = w_ref[base + R_WQKV: base + R_WQKV + EMBED, 0:3 * EMBED]
        wo = w_ref[base + R_WO: base + R_WO + EMBED, 0:EMBED]
        fc1w = w_ref[base + R_FC1: base + R_FC1 + EMBED, 0:MLP_HIDDEN]
        fc2w = w_ref[base + R_FC2: base + R_FC2 + MLP_HIDDEN, 0:EMBED]
        vec = w_ref[base + R_VEC: base + R_VEC + 8, :]               # (8, 128)
        ln1_g = vec[0:1, 0:EMBED]
        ln1_b = vec[1:2, 0:EMBED]
        ln2_g = vec[2:3, 0:EMBED]
        ln2_b = vec[3:4, 0:EMBED]
        bqkv = vec[4:5, 0:3 * EMBED]               # Q part pre-scaled by 1/sqrt(dh)
        bo = vec[5:6, 0:EMBED]
        b1 = vec[6:7, 0:MLP_HIDDEN]
        b2 = vec[7:8, 0:EMBED]

        # ---------------- attention sub-block ----------------
        h = layernorm(x, ln1_g, ln1_b)                               # (48, 32)
        # Fused QKV projection: one K=32, 96-lane matmul (no per-head einsums,
        # no broadcast_to of h).
        qkv = jnp.dot(h, wqkv, preferred_element_type=jnp.float32) + bqkv   # (48, 96)

        heads_out = []
        for hh in range(HEADS):                    # static unroll (HEADS=4)
            q = qkv[:, hh * HEAD_DIM:(hh + 1) * HEAD_DIM]                    # (48, 8)
            k = qkv[:, EMBED + hh * HEAD_DIM:EMBED + (hh + 1) * HEAD_DIM]
            v = qkv[:, 2 * EMBED + hh * HEAD_DIM:2 * EMBED + (hh + 1) * HEAD_DIM]
            # scores = q @ k.T  (scale already folded into Wq/bq)
            s = jax.lax.dot_general(q, k, (((1,), (1,)), ((), ())),
                                    preferred_element_type=jnp.float32)
            s = s + attn_bias                      # mask pad keys / other image
            s = s - jnp.max(s, axis=-1, keepdims=True)
            e = jnp.exp(s)
            p = e / jnp.sum(e, axis=-1, keepdims=True)               # exact softmax
            heads_out.append(jnp.dot(p, v, preferred_element_type=jnp.float32))
        o = jnp.concatenate(heads_out, axis=-1)                      # (48, 32) lane concat
        # Single K=32 output projection replaces 4 per-head K=8 matmuls.
        x = x + jnp.dot(o, wo, preferred_element_type=jnp.float32) + bo

        # ---------------- MLP sub-block ----------------
        h = layernorm(x, ln2_g, ln2_b)
        h = jnp.dot(h, fc1w, preferred_element_type=jnp.float32) + b1
        h = jax.nn.gelu(h, approximate=True)       # tanh GELU -> EUP, VALU relief
        x = x + jnp.dot(h, fc2w, preferred_element_type=jnp.float32) + b2

    lnf_g = w_ref[OFF_LNF + 0:OFF_LNF + 1, 0:EMBED]
    lnf_b = w_ref[OFF_LNF + 1:OFF_LNF + 2, 0:EMBED]
    head_b = w_ref[OFF_LNF + 2:OFF_LNF + 3, 0:CLS_PAD]
    head_w = w_ref[OFF_HEADW:OFF_HEADW + EMBED, 0:CLS_PAD]           # (32, 128)

    xf = layernorm(x, lnf_g, lnf_b)
    # Lane-dense (48, 128) store; the host picks the cls rows (0, SEQ_PAD, ...).
    out_ref[...] = jnp.dot(xf, head_w,
                           preferred_element_type=jnp.float32) + head_b


# ----------------------------- parameter init --------------------------------
def trunc_normal(key, shape, std=0.02):
    # matches nn.init.trunc_normal_(std=0.02) semantics closely enough (synthetic)
    return std * jax.random.truncated_normal(key, -2.0, 2.0, shape, jnp.float32)


def init_params(key):
    keys = iter(jax.random.split(key, 64))
    params = {}
    params["patch_w"] = trunc_normal(next(keys), (PATCH_DIM, EMBED))
    params["patch_b"] = jnp.zeros((EMBED,), jnp.float32)
    params["cls_token"] = trunc_normal(next(keys), (1, 1, EMBED))
    params["pos_embed"] = trunc_normal(next(keys), (1, SEQ, EMBED))
    blocks = []
    for _ in range(DEPTH):
        blocks.append({
            "ln1_g": jnp.ones((EMBED,), jnp.float32),
            "ln1_b": jnp.zeros((EMBED,), jnp.float32),
            "qkv_w": trunc_normal(next(keys), (EMBED, 3 * EMBED)),
            "qkv_b": jnp.zeros((3 * EMBED,), jnp.float32),
            "proj_w": trunc_normal(next(keys), (EMBED, EMBED)),
            "proj_b": jnp.zeros((EMBED,), jnp.float32),
            "ln2_g": jnp.ones((EMBED,), jnp.float32),
            "ln2_b": jnp.zeros((EMBED,), jnp.float32),
            "fc1_w": trunc_normal(next(keys), (EMBED, MLP_HIDDEN)),
            "fc1_b": jnp.zeros((MLP_HIDDEN,), jnp.float32),
            "fc2_w": trunc_normal(next(keys), (MLP_HIDDEN, EMBED)),
            "fc2_b": jnp.zeros((EMBED,), jnp.float32),
        })
    params["blocks"] = blocks
    params["lnf_g"] = jnp.ones((EMBED,), jnp.float32)
    params["lnf_b"] = jnp.zeros((EMBED,), jnp.float32)
    params["head_w"] = trunc_normal(next(keys), (EMBED, NUM_CLASSES))
    params["head_b"] = jnp.zeros((NUM_CLASSES,), jnp.float32)
    return params


# ------------------------- one-time host-side packing -------------------------
def pack_params(params):
    """Pack every parameter into one lane-dense (TOTAL_ROWS, 128) slab.

    Runs ONCE at model-load time, outside jit (review: hoist packing glue out
    of the per-call path).  Also bakes in: patch bias + cls token + positional
    embedding per token row, the attention mask bias, and the 1/sqrt(head_dim)
    scale folded into the Q projection.
    """
    g = lambda a: np.asarray(jax.device_get(a), np.float32)
    slab = np.zeros((TOTAL_ROWS, LANES), np.float32)

    slab[OFF_PATCH_W:OFF_PATCH_W + PATCH_DIM, 0:EMBED] = g(params["patch_w"])

    pos = g(params["pos_embed"])[0]                 # (SEQ, EMBED)
    cls = g(params["cls_token"])[0, 0]              # (EMBED,)
    patch_b = g(params["patch_b"])                  # (EMBED,)
    pos_img = np.zeros((SEQ_PAD, EMBED), np.float32)
    pos_img[0] = cls + pos[0]
    pos_img[1:SEQ] = pos[1:] + patch_b[None, :]
    slab[OFF_POS:OFF_POS + TOK, 0:EMBED] = np.tile(pos_img, (BATCH, 1))

    # Additive attention bias: 0 for same-image, non-padded keys; -1e9 otherwise.
    idx = np.arange(TOK)
    same_img = (idx[:, None] // SEQ_PAD) == (idx[None, :] // SEQ_PAD)
    key_valid = (idx[None, :] % SEQ_PAD) < SEQ
    slab[OFF_BIAS:OFF_BIAS + TOK, 0:TOK] = np.where(
        same_img & key_valid, 0.0, NEG_INF).astype(np.float32)

    for d, blk in enumerate(params["blocks"]):
        base = LAYER_BASE + d * LAYER_ROWS
        wqkv = g(blk["qkv_w"]).copy()               # (EMBED, 3*EMBED)
        bqkv = g(blk["qkv_b"]).copy()               # (3*EMBED,)
        wqkv[:, 0:EMBED] *= ATTN_SCALE              # fold attention scale into Q
        bqkv[0:EMBED] *= ATTN_SCALE
        slab[base + R_WQKV:base + R_WQKV + EMBED, 0:3 * EMBED] = wqkv
        slab[base + R_WO:base + R_WO + EMBED, 0:EMBED] = g(blk["proj_w"])
        slab[base + R_FC1:base + R_FC1 + EMBED, 0:MLP_HIDDEN] = g(blk["fc1_w"])
        slab[base + R_FC2:base + R_FC2 + MLP_HIDDEN, 0:EMBED] = g(blk["fc2_w"])
        v = base + R_VEC
        slab[v + 0, 0:EMBED] = g(blk["ln1_g"])
        slab[v + 1, 0:EMBED] = g(blk["ln1_b"])
        slab[v + 2, 0:EMBED] = g(blk["ln2_g"])
        slab[v + 3, 0:EMBED] = g(blk["ln2_b"])
        slab[v + 4, 0:3 * EMBED] = bqkv
        slab[v + 5, 0:EMBED] = g(blk["proj_b"])
        slab[v + 6, 0:MLP_HIDDEN] = g(blk["fc1_b"])
        slab[v + 7, 0:EMBED] = g(blk["fc2_b"])

    slab[OFF_LNF + 0, 0:EMBED] = g(params["lnf_g"])
    slab[OFF_LNF + 1, 0:EMBED] = g(params["lnf_b"])
    slab[OFF_LNF + 2, 0:NUM_CLASSES] = g(params["head_b"])
    slab[OFF_HEADW:OFF_HEADW + EMBED, 0:NUM_CLASSES] = g(params["head_w"])

    return jnp.asarray(slab)


# ----------------------------- forward pass -----------------------------------
def vit_forward(x, w_slab):
    """x: (B, C, H, W) NCHW float32, w_slab: packed weights -> logits (B, NUM_CLASSES)."""
    B, C, H, W = x.shape
    assert (B, C, H, W) == (BATCH, IN_CH, IMG_SIZE, IMG_SIZE)
    gh = H // PATCH

    # Patch extraction (glue): Conv2d(kernel=stride=patch) == per-patch linear
    # over the (c, ph, pw) flattened pixel order.
    patches = (
        x.reshape(B, C, gh, PATCH, gh, PATCH)
        .transpose(0, 2, 4, 1, 3, 5)
        .reshape(B, NUM_PATCHES, PATCH_DIM)
    )
    # Row 0 of each image reserved for the cls token; rows SEQ..SEQ_PAD-1 are
    # zero padding.  Batch folded into the row (sublane) axis -> single grid step.
    patches = jnp.pad(patches, ((0, 0), (1, SEQ_PAD - SEQ), (0, 0)))
    patches = patches.reshape(TOK, PATCH_DIM)

    out = pl.pallas_call(
        _vit_fused_kernel,
        out_shape=jax.ShapeDtypeStruct((TOK, CLS_PAD), jnp.float32),
        grid=(1,),                               # whole batch in one step
        in_specs=[
            pl.BlockSpec((TOK, PATCH_DIM), lambda i: (0, 0)),
            pl.BlockSpec((TOTAL_ROWS, LANES), lambda i: (0, 0)),
        ],
        out_specs=pl.BlockSpec((TOK, CLS_PAD), lambda i: (0, 0)),
        compiler_params=pltpu.CompilerParams(
            dimension_semantics=("arbitrary",)),
    )(patches, w_slab)

    # cls token sits at row b*SEQ_PAD of each image.
    return out.reshape(BATCH, SEQ_PAD, CLS_PAD)[:, 0, :NUM_CLASSES]


# ----------------------------- pure-JAX reference -----------------------------
def _ln(v, g, b):
    mu = jnp.mean(v, axis=-1, keepdims=True)
    var = jnp.mean((v - mu) ** 2, axis=-1, keepdims=True)
    return (v - mu) * jax.lax.rsqrt(var + LN_EPS) * g + b


def vit_reference(x, params):
    """Unpadded pure-JAX forward mirroring the PyTorch module (eval mode)."""
    B = x.shape[0]
    gh = IMG_SIZE // PATCH
    xp = (
        x.reshape(B, IN_CH, gh, PATCH, gh, PATCH)
        .transpose(0, 2, 4, 1, 3, 5)
        .reshape(B, NUM_PATCHES, PATCH_DIM)
    )
    tok = xp @ params["patch_w"] + params["patch_b"]
    cls = jnp.broadcast_to(params["cls_token"], (B, 1, EMBED))
    h = jnp.concatenate([cls, tok], axis=1) + params["pos_embed"]
    for blk in params["blocks"]:
        y = _ln(h, blk["ln1_g"], blk["ln1_b"])
        qkv = (y @ blk["qkv_w"] + blk["qkv_b"]).reshape(
            B, SEQ, 3, HEADS, HEAD_DIM).transpose(2, 0, 3, 1, 4)
        q, k, v = qkv[0], qkv[1], qkv[2]
        s = jnp.einsum("bhqd,bhkd->bhqk", q, k) * ATTN_SCALE
        o = jnp.einsum("bhqk,bhkd->bhqd", jax.nn.softmax(s, axis=-1), v)
        o = o.transpose(0, 2, 1, 3).reshape(B, SEQ, EMBED)
        h = h + o @ blk["proj_w"] + blk["proj_b"]
        y = _ln(h, blk["ln2_g"], blk["ln2_b"])
        y = jax.nn.gelu(y @ blk["fc1_w"] + blk["fc1_b"], approximate=False)
        h = h + y @ blk["fc2_w"] + blk["fc2_b"]
    h = _ln(h, params["lnf_g"], params["lnf_b"])
    return h[:, 0] @ params["head_w"] + params["head_b"]


# ----------------------------- main -------------------------------------------
if __name__ == "__main__":
    key = jax.random.PRNGKey(0)
    pkey, xkey = jax.random.split(key)
    params = init_params(pkey)
    w_slab = pack_params(params)                 # packed ONCE, outside jit
    x = jax.random.normal(xkey, (BATCH, IN_CH, IMG_SIZE, IMG_SIZE), jnp.float32)

    logits = jax.jit(vit_forward)(x, w_slab)
    logits = jax.block_until_ready(logits)
    assert logits.shape == (BATCH, NUM_CLASSES)
    assert bool(jnp.all(jnp.isfinite(logits)))

    ref = vit_reference(x, params)
    max_diff = float(jnp.max(jnp.abs(logits - ref)))
    assert bool(jnp.allclose(logits, ref, rtol=1e-2, atol=1e-2)), (
        f"kernel/reference mismatch, max abs diff = {max_diff}"
    )
    print("KERNEL_OK")
</pallas_src>

<mosaic_0001>
module attributes {stable_mosaic.version = 11 : i64} {
  func.func @_vit_fused_kernel(%arg0: i32, %arg1: memref<48x64xf32, #tpu.memory_space<vmem>>, %arg2: memref<664x128xf32, #tpu.memory_space<vmem>>, %arg3: memref<48x128xf32, #tpu.memory_space<vmem>>) attributes {dimension_semantics = [#tpu.dimension_semantics<arbitrary>], iteration_bounds = array<i64: 1>, scalar_prefetch = 0 : i64, scratch_operands = 0 : i64, tpu.core_type = #tpu.core_type<tc>, window_params = [{pipeline_mode = #tpu.pipeline_mode<synchronous>, transform_indices = @transform_0, window_bounds = array<i64: 48, 64>}, {pipeline_mode = #tpu.pipeline_mode<synchronous>, transform_indices = @transform_1, window_bounds = array<i64: 664, 128>}, {pipeline_mode = #tpu.pipeline_mode<synchronous>, transform_indices = @transform_2, window_bounds = array<i64: 48, 128>}]} {
    %c0 = arith.constant 0 : index
    %c0_0 = arith.constant 0 : index
    %0 = vector.load %arg2[%c0, %c0_0] : memref<664x128xf32, #tpu.memory_space<vmem>>, vector<64x32xf32>
    %c64 = arith.constant 64 : index
    %c0_1 = arith.constant 0 : index
    %1 = vector.load %arg2[%c64, %c0_1] : memref<664x128xf32, #tpu.memory_space<vmem>>, vector<48x32xf32>
    %c112 = arith.constant 112 : index
    %c0_2 = arith.constant 0 : index
    %2 = vector.load %arg2[%c112, %c0_2] : memref<664x128xf32, #tpu.memory_space<vmem>>, vector<48x48xf32>
    %c0_3 = arith.constant 0 : index
    %c0_4 = arith.constant 0 : index
    %3 = vector.load %arg1[%c0_3, %c0_4] : memref<48x64xf32, #tpu.memory_space<vmem>>, vector<48x64xf32>
    %cst = arith.constant dense<0.000000e+00> : vector<48x32xf32>
    %4 = tpu.matmul %3, %0, %cst {dimension_numbers = #tpu.dot_dimension_numbers<[1], [0], [0], [1], [0, 0, 1, 1], [], []>} : vector<48x64xf32>, vector<64x32xf32>, vector<48x32xf32> -> vector<48x32xf32>
    %5 = arith.addf %4, %1 : vector<48x32xf32>
    %c160 = arith.constant 160 : index
    %c0_5 = arith.constant 0 : index
    %6 = vector.load %arg2[%c160, %c0_5] : memref<664x128xf32, #tpu.memory_space<vmem>>, vector<32x96xf32>
    %c192 = arith.constant 192 : index
    %c0_6 = arith.constant 0 : index
    %7 = vector.load %arg2[%c192, %c0_6] : memref<664x128xf32, #tpu.memory_space<vmem>>, vector<32x32xf32>
    %c224 = arith.constant 224 : index
    %c0_7 = arith.constant 0 : index
    %8 = vector.load %arg2[%c224, %c0_7] : memref<664x128xf32, #tpu.memory_space<vmem>>, vector<32x128xf32>
    %c256 = arith.constant 256 : index
    %c0_8 = arith.constant 0 : index
    %9 = vector.load %arg2[%c256, %c0_8] : memref<664x128xf32, #tpu.memory_space<vmem>>, vector<128x32xf32>
    %c384 = arith.constant 384 : index
    %c0_9 = arith.constant 0 : index
    %10 = vector.load %arg2[%c384, %c0_9] : memref<664x128xf32, #tpu.memory_space<vmem>>, vector<8x128xf32>
    %11 = vector.extract_strided_slice %10 {offsets = [0, 0], sizes = [1, 32], strides = [1, 1]} : vector<8x128xf32> to vector<1x32xf32>
    %12 = vector.extract_strided_slice %10 {offsets = [1, 0], sizes = [1, 32], strides = [1, 1]} : vector<8x128xf32> to vector<1x32xf32>
    %13 = vector.extract_strided_slice %10 {offsets = [2, 0], sizes = [1, 32], strides = [1, 1]} : vector<8x128xf32> to vector<1x32xf32>
    %14 = vector.extract_strided_slice %10 {offsets = [3, 0], sizes = [1, 32], strides = [1, 1]} : vector<8x128xf32> to vector<1x32xf32>
    %15 = vector.extract_strided_slice %10 {offsets = [4, 0], sizes = [1, 96], strides = [1, 1]} : vector<8x128xf32> to vector<1x96xf32>
    %16 = vector.extract_strided_slice %10 {offsets = [5, 0], sizes = [1, 32], strides = [1, 1]} : vector<8x128xf32> to vector<1x32xf32>
    %17 = vector.extract_strided_slice %10 {offsets = [6, 0], sizes = [1, 128], strides = [1, 1]} : vector<8x128xf32> to vector<1x128xf32>
    %18 = vector.extract_strided_slice %10 {offsets = [7, 0], sizes = [1, 32], strides = [1, 1]} : vector<8x128xf32> to vector<1x32xf32>
    %cst_10 = arith.constant dense<0.000000e+00> : vector<48xf32>
    %19 = vector.multi_reduction <add>, %5, %cst_10 [1] : vector<48x32xf32> to vector<48xf32>
    %20 = vector.shape_cast %19 : vector<48xf32> to vector<48x1xf32>
    %cst_11 = arith.constant 3.200000e+01 : f32
    %21 = vector.broadcast %cst_11 : f32 to vector<48x1xf32>
    %22 = arith.divf %20, %21 : vector<48x1xf32>
    %23 = vector.broadcast %22 : vector<48x1xf32> to vector<48x32xf32>
    %24 = arith.subf %5, %23 : vector<48x32xf32>
    %25 = arith.mulf %24, %24 : vector<48x32xf32>
    %cst_12 = arith.constant dense<0.000000e+00> : vector<48xf32>
    %26 = vector.multi_reduction <add>, %25, %cst_12 [1] : vector<48x32xf32> to vector<48xf32>
    %27 = vector.shape_cast %26 : vector<48xf32> to vector<48x1xf32>
    %cst_13 = arith.constant 3.200000e+01 : f32
    %28 = vector.broadcast %cst_13 : f32 to vector<48x1xf32>
    %29 = arith.divf %27, %28 : vector<48x1xf32>
    %30 = vector.broadcast %22 : vector<48x1xf32> to vector<48x32xf32>
    %31 = arith.subf %5, %30 : vector<48x32xf32>
    %cst_14 = arith.constant 9.99999974E-6 : f32
    %32 = vector.broadcast %cst_14 : f32 to vector<48x1xf32>
    %33 = arith.addf %29, %32 : vector<48x1xf32>
    %34 = math.rsqrt %33 : vector<48x1xf32>
    %35 = vector.broadcast %34 : vector<48x1xf32> to vector<48x32xf32>
    %36 = arith.mulf %31, %35 : vector<48x32xf32>
    %37 = vector.broadcast %11 : vector<1x32xf32> to vector<48x32xf32>
    %38 = arith.mulf %36, %37 : vector<48x32xf32>
    %39 = vector.broadcast %12 : vector<1x32xf32> to vector<48x32xf32>
    %40 = arith.addf %38, %39 : vector<48x32xf32>
    %cst_15 = arith.constant dense<0.000000e+00> : vector<48x96xf32>
    %41 = tpu.matmul %40, %6, %cst_15 {dimension_numbers = #tpu.dot_dimension_numbers<[1], [0], [0], [1], [0, 0, 1, 1], [], []>} : vector<48x32xf32>, vector<32x96xf32>, vector<48x96xf32> -> vector<48x96xf32>
    %42 = vector.broadcast %15 : vector<1x96xf32> to vector<48x96xf32>
    %43 = arith.addf %41, %42 : vector<48x96xf32>
    %44 = vector.extract_strided_slice %43 {offsets = [0, 0], sizes = [48, 8], strides = [1, 1]} : vector<48x96xf32> to vector<48x8xf32>
    %45 = vector.extract_strided_slice %43 {offsets = [0, 32], sizes = [48, 8], strides = [1, 1]} : vector<48x96xf32> to vector<48x8xf32>
    %46 = vector.extract_strided_slice %43 {offsets = [0, 64], sizes = [48, 8], strides = [1, 1]} : vector<48x96xf32> to vector<48x8xf32>
    %cst_16 = arith.constant dense<0.000000e+00> : vector<48x48xf32>
    %47 = tpu.matmul %44, %45, %cst_16 {dimension_numbers = #tpu.dot_dimension_numbers<[1], [1], [0], [0], [0, 0, 1, 0], [], []>} : vector<48x8xf32>, vector<48x8xf32>, vector<48x48xf32> -> vector<48x48xf32>
    %48 = arith.addf %47, %2 : vector<48x48xf32>
    %cst_17 = arith.constant dense<0xFF800000> : vector<48xf32>
    %49 = vector.multi_reduction <maximumf>, %48, %cst_17 [1] : vector<48x48xf32> to vector<48xf32>
    %50 = vector.shape_cast %49 : vector<48xf32> to vector<48x1xf32>
    %51 = vector.broadcast %50 : vector<48x1xf32> to vector<48x48xf32>
    %52 = arith.subf %48, %51 : vector<48x48xf32>
    %53 = math.exp %52 : vector<48x48xf32>
    %cst_18 = arith.constant dense<0.000000e+00> : vector<48xf32>
    %54 = vector.multi_reduction <add>, %53, %cst_18 [1] : vector<48x48xf32> to vector<48xf32>
    %55 = vector.shape_cast %54 : vector<48xf32> to vector<48x1xf32>
    %56 = vector.broadcast %55 : vector<48x1xf32> to vector<48x48xf32>
    %57 = arith.divf %53, %56 : vector<48x48xf32>
    %cst_19 = arith.constant dense<0.000000e+00> : vector<48x8xf32>
    %58 = tpu.matmul %57, %46, %cst_19 {dimension_numbers = #tpu.dot_dimension_numbers<[1], [0], [0], [1], [0, 0, 1, 1], [], []>} : vector<48x48xf32>, vector<48x8xf32>, vector<48x8xf32> -> vector<48x8xf32>
    %59 = vector.extract_strided_slice %43 {offsets = [0, 8], sizes = [48, 8], strides = [1, 1]} : vector<48x96xf32> to vector<48x8xf32>
    %60 = vector.extract_strided_slice %43 {offsets = [0, 40], sizes = [48, 8], strides = [1, 1]} : vector<48x96xf32> to vector<48x8xf32>
    %61 = vector.extract_strided_slice %43 {offsets = [0, 72], sizes = [48, 8], strides = [1, 1]} : vector<48x96xf32> to vector<48x8xf32>
    %cst_20 = arith.constant dense<0.000000e+00> : vector<48x48xf32>
    %62 = tpu.matmul %59, %60, %cst_20 {dimension_numbers = #tpu.dot_dimension_numbers<[1], [1], [0], [0], [0, 0, 1, 0], [], []>} : vector<48x8xf32>, vector<48x8xf32>, vector<48x48xf32> -> vector<48x48xf32>
    %63 = arith.addf %62, %2 : vector<48x48xf32>
    %cst_21 = arith.constant dense<0xFF800000> : vector<48xf32>
    %64 = vector.multi_reduction <maximumf>, %63, %cst_21 [1] : vector<48x48xf32> to vector<48xf32>
    %65 = vector.shape_cast %64 : vector<48xf32> to vector<48x1xf32>
    %66 = vector.broadcast %65 : vector<48x1xf32> to vector<48x48xf32>
    %67 = arith.subf %63, %66 : vector<48x48xf32>
    %68 = math.exp %67 : vector<48x48xf32>
    %cst_22 = arith.constant dense<0.000000e+00> : vector<48xf32>
    %69 = vector.multi_reduction <add>, %68, %cst_22 [1] : vector<48x48xf32> to vector<48xf32>
    %70 = vector.shape_cast %69 : vector<48xf32> to vector<48x1xf32>
    %71 = vector.broadcast %70 : vector<48x1xf32> to vector<48x48xf32>
    %72 = arith.divf %68, %71 : vector<48x48xf32>
    %cst_23 = arith.constant dense<0.000000e+00> : vector<48x8xf32>
    %73 = tpu.matmul %72, %61, %cst_23 {dimension_numbers = #tpu.dot_dimension_numbers<[1], [0], [0], [1], [0, 0, 1, 1], [], []>} : vector<48x48xf32>, vector<48x8xf32>, vector<48x8xf32> -> vector<48x8xf32>
    %74 = vector.extract_strided_slice %43 {offsets = [0, 16], sizes = [48, 8], strides = [1, 1]} : vector<48x96xf32> to vector<48x8xf32>
    %75 = vector.extract_strided_slice %43 {offsets = [0, 48], sizes = [48, 8], strides = [1, 1]} : vector<48x96xf32> to vector<48x8xf32>
    %76 = vector.extract_strided_slice %43 {offsets = [0, 80], sizes = [48, 8], strides = [1, 1]} : vector<48x96xf32> to vector<48x8xf32>
    %cst_24 = arith.constant dense<0.000000e+00> : vector<48x48xf32>
    %77 = tpu.matmul %74, %75, %cst_24 {dimension_numbers = #tpu.dot_dimension_numbers<[1], [1], [0], [0], [0, 0, 1, 0], [], []>} : vector<48x8xf32>, vector<48x8xf32>, vector<48x48xf32> -> vector<48x48xf32>
    %78 = arith.addf %77, %2 : vector<48x48xf32>
    %cst_25 = arith.constant dense<0xFF800000> : vector<48xf32>
    %79 = vector.multi_reduction <maximumf>, %78, %cst_25 [1] : vector<48x48xf32> to vector<48xf32>
    %80 = vector.shape_cast %79 : vector<48xf32> to vector<48x1xf32>
    %81 = vector.broadcast %80 : vector<48x1xf32> to vector<48x48xf32>
    %82 = arith.subf %78, %81 : vector<48x48xf32>
    %83 = math.exp %82 : vector<48x48xf32>
    %cst_26 = arith.constant dense<0.000000e+00> : vector<48xf32>
    %84 = vector.multi_reduction <add>, %83, %cst_26 [1] : vector<48x48xf32> to vector<48xf32>
    %85 = vector.shape_cast %84 : vector<48xf32> to vector<48x1xf32>
    %86 = vector.broadcast %85 : vector<48x1xf32> to vector<48x48xf32>
    %87 = arith.divf %83, %86 : vector<48x48xf32>
    %cst_27 = arith.constant dense<0.000000e+00> : vector<48x8xf32>
    %88 = tpu.matmul %87, %76, %cst_27 {dimension_numbers = #tpu.dot_dimension_numbers<[1], [0], [0], [1], [0, 0, 1, 1], [], []>} : vector<48x48xf32>, vector<48x8xf32>, vector<48x8xf32> -> vector<48x8xf32>
    %89 = vector.extract_strided_slice %43 {offsets = [0, 24], sizes = [48, 8], strides = [1, 1]} : vector<48x96xf32> to vector<48x8xf32>
    %90 = vector.extract_strided_slice %43 {offsets = [0, 56], sizes = [48, 8], strides = [1, 1]} : vector<48x96xf32> to vector<48x8xf32>
    %91 = vector.extract_strided_slice %43 {offsets = [0, 88], sizes = [48, 8], strides = [1, 1]} : vector<48x96xf32> to vector<48x8xf32>
    %cst_28 = arith.constant dense<0.000000e+00> : vector<48x48xf32>
    %92 = tpu.matmul %89, %90, %cst_28 {dimension_numbers = #tpu.dot_dimension_numbers<[1], [1], [0], [0], [0, 0, 1, 0], [], []>} : vector<48x8xf32>, vector<48x8xf32>, vector<48x48xf32> -> vector<48x48xf32>
    %93 = arith.addf %92, %2 : vector<48x48xf32>
    %cst_29 = arith.constant dense<0xFF800000> : vector<48xf32>
    %94 = vector.multi_reduction <maximumf>, %93, %cst_29 [1] : vector<48x48xf32> to vector<48xf32>
    %95 = vector.shape_cast %94 : vector<48xf32> to vector<48x1xf32>
    %96 = vector.broadcast %95 : vector<48x1xf32> to vector<48x48xf32>
    %97 = arith.subf %93, %96 : vector<48x48xf32>
    %98 = math.exp %97 : vector<48x48xf32>
    %cst_30 = arith.constant dense<0.000000e+00> : vector<48xf32>
    %99 = vector.multi_reduction <add>, %98, %cst_30 [1] : vector<48x48xf32> to vector<48xf32>
    %100 = vector.shape_cast %99 : vector<48xf32> to vector<48x1xf32>
    %101 = vector.broadcast %100 : vector<48x1xf32> to vector<48x48xf32>
    %102 = arith.divf %98, %101 : vector<48x48xf32>
    %cst_31 = arith.constant dense<0.000000e+00> : vector<48x8xf32>
    %103 = tpu.matmul %102, %91, %cst_31 {dimension_numbers = #tpu.dot_dimension_numbers<[1], [0], [0], [1], [0, 0, 1, 1], [], []>} : vector<48x48xf32>, vector<48x8xf32>, vector<48x8xf32> -> vector<48x8xf32>
    %104 = tpu.concatenate %58, %73, %88, %103 in 1 : vector<48x8xf32>, vector<48x8xf32>, vector<48x8xf32>, vector<48x8xf32> -> vector<48x32xf32>
    %cst_32 = arith.constant dense<0.000000e+00> : vector<48x32xf32>
    %105 = tpu.matmul %104, %7, %cst_32 {dimension_numbers = #tpu.dot_dimension_numbers<[1], [0], [0], [1], [0, 0, 1, 1], [], []>} : vector<48x32xf32>, vector<32x32xf32>, vector<48x32xf32> -> vector<48x32xf32>
    %106 = arith.addf %5, %105 : vector<48x32xf32>
    %107 = vector.broadcast %16 : vector<1x32xf32> to vector<48x32xf32>
    %108 = arith.addf %106, %107 : vector<48x32xf32>
    %cst_33 = arith.constant dense<0.000000e+00> : vector<48xf32>
    %109 = vector.multi_reduction <add>, %108, %cst_33 [1] : vector<48x32xf32> to vector<48xf32>
    %110 = vector.shape_cast %109 : vector<48xf32> to vector<48x1xf32>
    %cst_34 = arith.constant 3.200000e+01 : f32
    %111 = vector.broadcast %cst_34 : f32 to vector<48x1xf32>
    %112 = arith.divf %110, %111 : vector<48x1xf32>
    %113 = vector.broadcast %112 : vector<48x1xf32> to vector<48x32xf32>
    %114 = arith.subf %108, %113 : vector<48x32xf32>
    %115 = arith.mulf %114, %114 : vector<48x32xf32>
    %cst_35 = arith.constant dense<0.000000e+00> : vector<48xf32>
    %116 = vector.multi_reduction <add>, %115, %cst_35 [1] : vector<48x32xf32> to vector<48xf32>
    %117 = vector.shape_cast %116 : vector<48xf32> to vector<48x1xf32>
    %cst_36 = arith.constant 3.200000e+01 : f32
    %118 = vector.broadcast %cst_36 : f32 to vector<48x1xf32>
    %119 = arith.divf %117, %118 : vector<48x1xf32>
    %120 = vector.broadcast %112 : vector<48x1xf32> to vector<48x32xf32>
    %121 = arith.subf %108, %120 : vector<48x32xf32>
    %cst_37 = arith.constant 9.99999974E-6 : f32
    %122 = vector.broadcast %cst_37 : f32 to vector<48x1xf32>
    %123 = arith.addf %119, %122 : vector<48x1xf32>
    %124 = math.rsqrt %123 : vector<48x1xf32>
    %125 = vector.broadcast %124 : vector<48x1xf32> to vector<48x32xf32>
    %126 = arith.mulf %121, %125 : vector<48x32xf32>
    %127 = vector.broadcast %13 : vector<1x32xf32> to vector<48x32xf32>
    %128 = arith.mulf %126, %127 : vector<48x32xf32>
    %129 = vector.broadcast %14 : vector<1x32xf32> to vector<48x32xf32>
    %130 = arith.addf %128, %129 : vector<48x32xf32>
    %cst_38 = arith.constant dense<0.000000e+00> : vector<48x128xf32>
    %131 = tpu.matmul %130, %8, %cst_38 {dimension_numbers = #tpu.dot_dimension_numbers<[1], [0], [0], [1], [0, 0, 1, 1], [], []>} : vector<48x32xf32>, vector<32x128xf32>, vector<48x128xf32> -> vector<48x128xf32>
    %132 = vector.broadcast %17 : vector<1x128xf32> to vector<48x128xf32>
    %133 = arith.addf %131, %132 : vector<48x128xf32>
    %134 = arith.mulf %133, %133 : vector<48x128xf32>
    %135 = arith.mulf %133, %134 : vector<48x128xf32>
    %cst_39 = arith.constant 4.471500e-02 : f32
    %136 = vector.broadcast %cst_39 : f32 to vector<48x128xf32>
    %137 = arith.mulf %136, %135 : vector<48x128xf32>
    %138 = arith.addf %133, %137 : vector<48x128xf32>
    %cst_40 = arith.constant 0.797884583 : f32
    %139 = vector.broadcast %cst_40 : f32 to vector<48x128xf32>
    %140 = arith.mulf %139, %138 : vector<48x128xf32>
    %141 = math.tanh %140 : vector<48x128xf32>
    %cst_41 = arith.constant 1.000000e+00 : f32
    %142 = vector.broadcast %cst_41 : f32 to vector<48x128xf32>
    %143 = arith.addf %142, %141 : vector<48x128xf32>
    %cst_42 = arith.constant 5.000000e-01 : f32
    %144 = vector.broadcast %cst_42 : f32 to vector<48x128xf32>
    %145 = arith.mulf %144, %143 : vector<48x128xf32>
    %146 = arith.mulf %133, %145 : vector<48x128xf32>
    %cst_43 = arith.constant dense<0.000000e+00> : vector<48x32xf32>
    %147 = tpu.matmul %146, %9, %cst_43 {dimension_numbers = #tpu.dot_dimension_numbers<[1], [0], [0], [1], [0, 0, 1, 1], [], []>} : vector<48x128xf32>, vector<128x32xf32>, vector<48x32xf32> -> vector<48x32xf32>
    %148 = arith.addf %108, %147 : vector<48x32xf32>
    %149 = vector.broadcast %18 : vector<1x32xf32> to vector<48x32xf32>
    %150 = arith.addf %148, %149 : vector<48x32xf32>
    %c392 = arith.constant 392 : index
    %c0_44 = arith.constant 0 : index
    %151 = vector.load %arg2[%c392, %c0_44] : memref<664x128xf32, #tpu.memory_space<vmem>>, vector<32x96xf32>
    %c424 = arith.constant 424 : index
    %c0_45 = arith.constant 0 : index
    %152 = vector.load %arg2[%c424, %c0_45] : memref<664x128xf32, #tpu.memory_space<vmem>>, vector<32x32xf32>
    %c456 = arith.constant 456 : index
    %c0_46 = arith.constant 0 : index
    %153 = vector.load %arg2[%c456, %c0_46] : memref<664x128xf32, #tpu.memory_space<vmem>>, vector<32x128xf32>
    %c488 = arith.constant 488 : index
    %c0_47 = arith.constant 0 : index
    %154 = vector.load %arg2[%c488, %c0_47] : memref<664x128xf32, #tpu.memory_space<vmem>>, vector<128x32xf32>
    %c616 = arith.constant 616 : index
    %c0_48 = arith.constant 0 : index
    %155 = vector.load %arg2[%c616, %c0_48] : memref<664x128xf32, #tpu.memory_space<vmem>>, vector<8x128xf32>
    %156 = vector.extract_strided_slice %155 {offsets = [0, 0], sizes = [1, 32], strides = [1, 1]} : vector<8x128xf32> to vector<1x32xf32>
    %157 = vector.extract_strided_slice %155 {offsets = [1, 0], sizes = [1, 32], strides = [1, 1]} : vector<8x128xf32> to vector<1x32xf32>
    %158 = vector.extract_strided_slice %155 {offsets = [2, 0], sizes = [1, 32], strides = [1, 1]} : vector<8x128xf32> to vector<1x32xf32>
    %159 = vector.extract_strided_slice %155 {offsets = [3, 0], sizes = [1, 32], strides = [1, 1]} : vector<8x128xf32> to vector<1x32xf32>
    %160 = vector.extract_strided_slice %155 {offsets = [4, 0], sizes = [1, 96], strides = [1, 1]} : vector<8x128xf32> to vector<1x96xf32>
    %161 = vector.extract_strided_slice %155 {offsets = [5, 0], sizes = [1, 32], strides = [1, 1]} : vector<8x128xf32> to vector<1x32xf32>
    %162 = vector.extract_strided_slice %155 {offsets = [6, 0], sizes = [1, 128], strides = [1, 1]} : vector<8x128xf32> to vector<1x128xf32>
    %163 = vector.extract_strided_slice %155 {offsets = [7, 0], sizes = [1, 32], strides = [1, 1]} : vector<8x128xf32> to vector<1x32xf32>
    %cst_49 = arith.constant dense<0.000000e+00> : vector<48xf32>
    %164 = vector.multi_reduction <add>, %150, %cst_49 [1] : vector<48x32xf32> to vector<48xf32>
    %165 = vector.shape_cast %164 : vector<48xf32> to vector<48x1xf32>
    %cst_50 = arith.constant 3.200000e+01 : f32
    %166 = vector.broadcast %cst_50 : f32 to vector<48x1xf32>
    %167 = arith.divf %165, %166 : vector<48x1xf32>
    %168 = vector.broadcast %167 : vector<48x1xf32> to vector<48x32xf32>
    %169 = arith.subf %150, %168 : vector<48x32xf32>
    %170 = arith.mulf %169, %169 : vector<48x32xf32>
    %cst_51 = arith.constant dense<0.000000e+00> : vector<48xf32>
    %171 = vector.multi_reduction <add>, %170, %cst_51 [1] : vector<48x32xf32> to vector<48xf32>
    %172 = vector.shape_cast %171 : vector<48xf32> to vector<48x1xf32>
    %cst_52 = arith.constant 3.200000e+01 : f32
    %173 = vector.broadcast %cst_52 : f32 to vector<48x1xf32>
    %174 = arith.divf %172, %173 : vector<48x1xf32>
    %175 = vector.broadcast %167 : vector<48x1xf32> to vector<48x32xf32>
    %176 = arith.subf %150, %175 : vector<48x32xf32>
    %cst_53 = arith.constant 9.99999974E-6 : f32
    %177 = vector.broadcast %cst_53 : f32 to vector<48x1xf32>
    %178 = arith.addf %174, %177 : vector<48x1xf32>
    %179 = math.rsqrt %178 : vector<48x1xf32>
    %180 = vector.broadcast %179 : vector<48x1xf32> to vector<48x32xf32>
    %181 = arith.mulf %176, %180 : vector<48x32xf32>
    %182 = vector.broadcast %156 : vector<1x32xf32> to vector<48x32xf32>
    %183 = arith.mulf %181, %182 : vector<48x32xf32>
    %184 = vector.broadcast %157 : vector<1x32xf32> to vector<48x32xf32>
    %185 = arith.addf %183, %184 : vector<48x32xf32>
    %cst_54 = arith.constant dense<0.000000e+00> : vector<48x96xf32>
    %186 = tpu.matmul %185, %151, %cst_54 {dimension_numbers = #tpu.dot_dimension_numbers<[1], [0], [0], [1], [0, 0, 1, 1], [], []>} : vector<48x32xf32>, vector<32x96xf32>, vector<48x96xf32> -> vector<48x96xf32>
    %187 = vector.broadcast %160 : vector<1x96xf32> to vector<48x96xf32>
    %188 = arith.addf %186, %187 : vector<48x96xf32>
    %189 = vector.extract_strided_slice %188 {offsets = [0, 0], sizes = [48, 8], strides = [1, 1]} : vector<48x96xf32> to vector<48x8xf32>
    %190 = vector.extract_strided_slice %188 {offsets = [0, 32], sizes = [48, 8], strides = [1, 1]} : vector<48x96xf32> to vector<48x8xf32>
    %191 = vector.extract_strided_slice %188 {offsets = [0, 64], sizes = [48, 8], strides = [1, 1]} : vector<48x96xf32> to vector<48x8xf32>
    %cst_55 = arith.constant dense<0.000000e+00> : vector<48x48xf32>
    %192 = tpu.matmul %189, %190, %cst_55 {dimension_numbers = #tpu.dot_dimension_numbers<[1], [1], [0], [0], [0, 0, 1, 0], [], []>} : vector<48x8xf32>, vector<48x8xf32>, vector<48x48xf32> -> vector<48x48xf32>
    %193 = arith.addf %192, %2 : vector<48x48xf32>
    %cst_56 = arith.constant dense<0xFF800000> : vector<48xf32>
    %194 = vector.multi_reduction <maximumf>, %193, %cst_56 [1] : vector<48x48xf32> to vector<48xf32>
    %195 = vector.shape_cast %194 : vector<48xf32> to vector<48x1xf32>
    %196 = vector.broadcast %195 : vector<48x1xf32> to vector<48x48xf32>
    %197 = arith.subf %193, %196 : vector<48x48xf32>
    %198 = math.exp %197 : vector<48x48xf32>
    %cst_57 = arith.constant dense<0.000000e+00> : vector<48xf32>
    %199 = vector.multi_reduction <add>, %198, %cst_57 [1] : vector<48x48xf32> to vector<48xf32>
    %200 = vector.shape_cast %199 : vector<48xf32> to vector<48x1xf32>
    %201 = vector.broadcast %200 : vector<48x1xf32> to vector<48x48xf32>
    %202 = arith.divf %198, %201 : vector<48x48xf32>
    %cst_58 = arith.constant dense<0.000000e+00> : vector<48x8xf32>
    %203 = tpu.matmul %202, %191, %cst_58 {dimension_numbers = #tpu.dot_dimension_numbers<[1], [0], [0], [1], [0, 0, 1, 1], [], []>} : vector<48x48xf32>, vector<48x8xf32>, vector<48x8xf32> -> vector<48x8xf32>
    %204 = vector.extract_strided_slice %188 {offsets = [0, 8], sizes = [48, 8], strides = [1, 1]} : vector<48x96xf32> to vector<48x8xf32>
    %205 = vector.extract_strided_slice %188 {offsets = [0, 40], sizes = [48, 8], strides = [1, 1]} : vector<48x96xf32> to vector<48x8xf32>
    %206 = vector.extract_strided_slice %188 {offsets = [0, 72], sizes = [48, 8], strides = [1, 1]} : vector<48x96xf32> to vector<48x8xf32>
    %cst_59 = arith.constant dense<0.000000e+00> : vector<48x48xf32>
    %207 = tpu.matmul %204, %205, %cst_59 {dimension_numbers = #tpu.dot_dimension_numbers<[1], [1], [0], [0], [0, 0, 1, 0], [], []>} : vector<48x8xf32>, vector<48x8xf32>, vector<48x48xf32> -> vector<48x48xf32>
    %208 = arith.addf %207, %2 : vector<48x48xf32>
    %cst_60 = arith.constant dense<0xFF800000> : vector<48xf32>
    %209 = vector.multi_reduction <maximumf>, %208, %cst_60 [1] : vector<48x48xf32> to vector<48xf32>
    %210 = vector.shape_cast %209 : vector<48xf32> to vector<48x1xf32>
    %211 = vector.broadcast %210 : vector<48x1xf32> to vector<48x48xf32>
    %212 = arith.subf %208, %211 : vector<48x48xf32>
    %213 = math.exp %212 : vector<48x48xf32>
    %cst_61 = arith.constant dense<0.000000e+00> : vector<48xf32>
    %214 = vector.multi_reduction <add>, %213, %cst_61 [1] : vector<48x48xf32> to vector<48xf32>
    %215 = vector.shape_cast %214 : vector<48xf32> to vector<48x1xf32>
    %216 = vector.broadcast %215 : vector<48x1xf32> to vector<48x48xf32>
    %217 = arith.divf %213, %216 : vector<48x48xf32>
    %cst_62 = arith.constant dense<0.000000e+00> : vector<48x8xf32>
    %218 = tpu.matmul %217, %206, %cst_62 {dimension_numbers = #tpu.dot_dimension_numbers<[1], [0], [0], [1], [0, 0, 1, 1], [], []>} : vector<48x48xf32>, vector<48x8xf32>, vector<48x8xf32> -> vector<48x8xf32>
    %219 = vector.extract_strided_slice %188 {offsets = [0, 16], sizes = [48, 8], strides = [1, 1]} : vector<48x96xf32> to vector<48x8xf32>
    %220 = vector.extract_strided_slice %188 {offsets = [0, 48], sizes = [48, 8], strides = [1, 1]} : vector<48x96xf32> to vector<48x8xf32>
    %221 = vector.extract_strided_slice %188 {offsets = [0, 80], sizes = [48, 8], strides = [1, 1]} : vector<48x96xf32> to vector<48x8xf32>
    %cst_63 = arith.constant dense<0.000000e+00> : vector<48x48xf32>
    %222 = tpu.matmul %219, %220, %cst_63 {dimension_numbers = #tpu.dot_dimension_numbers<[1], [1], [0], [0], [0, 0, 1, 0], [], []>} : vector<48x8xf32>, vector<48x8xf32>, vector<48x48xf32> -> vector<48x48xf32>
    %223 = arith.addf %222, %2 : vector<48x48xf32>
    %cst_64 = arith.constant dense<0xFF800000> : vector<48xf32>
    %224 = vector.multi_reduction <maximumf>, %223, %cst_64 [1] : vector<48x48xf32> to vector<48xf32>
    %225 = vector.shape_cast %224 : vector<48xf32> to vector<48x1xf32>
    %226 = vector.broadcast %225 : vector<48x1xf32> to vector<48x48xf32>
    %227 = arith.subf %223, %226 : vector<48x48xf32>
    %228 = math.exp %227 : vector<48x48xf32>
    %cst_65 = arith.constant dense<0.000000e+00> : vector<48xf32>
    %229 = vector.multi_reduction <add>, %228, %cst_65 [1] : vector<48x48xf32> to vector<48xf32>
    %230 = vector.shape_cast %229 : vector<48xf32> to vector<48x1xf32>
    %231 = vector.broadcast %230 : vector<48x1xf32> to vector<48x48xf32>
    %232 = arith.divf %228, %231 : vector<48x48xf32>
    %cst_66 = arith.constant dense<0.000000e+00> : vector<48x8xf32>
    %233 = tpu.matmul %232, %221, %cst_66 {dimension_numbers = #tpu.dot_dimension_numbers<[1], [0], [0], [1], [0, 0, 1, 1], [], []>} : vector<48x48xf32>, vector<48x8xf32>, vector<48x8xf32> -> vector<48x8xf32>
    %234 = vector.extract_strided_slice %188 {offsets = [0, 24], sizes = [48, 8], strides = [1, 1]} : vector<48x96xf32> to vector<48x8xf32>
    %235 = vector.extract_strided_slice %188 {offsets = [0, 56], sizes = [48, 8], strides = [1, 1]} : vector<48x96xf32> to vector<48x8xf32>
    %236 = vector.extract_strided_slice %188 {offsets = [0, 88], sizes = [48, 8], strides = [1, 1]} : vector<48x96xf32> to vector<48x8xf32>
    %cst_67 = arith.constant dense<0.000000e+00> : vector<48x48xf32>
    %237 = tpu.matmul %234, %235, %cst_67 {dimension_numbers = #tpu.dot_dimension_numbers<[1], [1], [0], [0], [0, 0, 1, 0], [], []>} : vector<48x8xf32>, vector<48x8xf32>, vector<48x48xf32> -> vector<48x48xf32>
    %238 = arith.addf %237, %2 : vector<48x48xf32>
    %cst_68 = arith.constant dense<0xFF800000> : vector<48xf32>
    %239 = vector.multi_reduction <maximumf>, %238, %cst_68 [1] : vector<48x48xf32> to vector<48xf32>
    %240 = vector.shape_cast %239 : vector<48xf32> to vector<48x1xf32>
    %241 = vector.broadcast %240 : vector<48x1xf32> to vector<48x48xf32>
    %242 = arith.subf %238, %241 : vector<48x48xf32>
    %243 = math.exp %242 : vector<48x48xf32>
    %cst_69 = arith.constant dense<0.000000e+00> : vector<48xf32>
    %244 = vector.multi_reduction <add>, %243, %cst_69 [1] : vector<48x48xf32> to vector<48xf32>
    %245 = vector.shape_cast %244 : vector<48xf32> to vector<48x1xf32>
    %246 = vector.broadcast %245 : vector<48x1xf32> to vector<48x48xf32>
    %247 = arith.divf %243, %246 : vector<48x48xf32>
    %cst_70 = arith.constant dense<0.000000e+00> : vector<48x8xf32>
    %248 = tpu.matmul %247, %236, %cst_70 {dimension_numbers = #tpu.dot_dimension_numbers<[1], [0], [0], [1], [0, 0, 1, 1], [], []>} : vector<48x48xf32>, vector<48x8xf32>, vector<48x8xf32> -> vector<48x8xf32>
    %249 = tpu.concatenate %203, %218, %233, %248 in 1 : vector<48x8xf32>, vector<48x8xf32>, vector<48x8xf32>, vector<48x8xf32> -> vector<48x32xf32>
    %cst_71 = arith.constant dense<0.000000e+00> : vector<48x32xf32>
    %250 = tpu.matmul %249, %152, %cst_71 {dimension_numbers = #tpu.dot_dimension_numbers<[1], [0], [0], [1], [0, 0, 1, 1], [], []>} : vector<48x32xf32>, vector<32x32xf32>, vector<48x32xf32> -> vector<48x32xf32>
    %251 = arith.addf %150, %250 : vector<48x32xf32>
    %252 = vector.broadcast %161 : vector<1x32xf32> to vector<48x32xf32>
    %253 = arith.addf %251, %252 : vector<48x32xf32>
    %cst_72 = arith.constant dense<0.000000e+00> : vector<48xf32>
    %254 = vector.multi_reduction <add>, %253, %cst_72 [1] : vector<48x32xf32> to vector<48xf32>
    %255 = vector.shape_cast %254 : vector<48xf32> to vector<48x1xf32>
    %cst_73 = arith.constant 3.200000e+01 : f32
    %256 = vector.broadcast %cst_73 : f32 to vector<48x1xf32>
    %257 = arith.divf %255, %256 : vector<48x1xf32>
    %258 = vector.broadcast %257 : vector<48x1xf32> to vector<48x32xf32>
    %259 = arith.subf %253, %258 : vector<48x32xf32>
    %260 = arith.mulf %259, %259 : vector<48x32xf32>
    %cst_74 = arith.constant dense<0.000000e+00> : vector<48xf32>
    %261 = vector.multi_reduction <add>, %260, %cst_74 [1] : vector<48x32xf32> to vector<48xf32>
    %262 = vector.shape_cast %261 : vector<48xf32> to vector<48x1xf32>
    %cst_75 = arith.constant 3.200000e+01 : f32
    %263 = vector.broadcast %cst_75 : f32 to vector<48x1xf32>
    %264 = arith.divf %262, %263 : vector<48x1xf32>
    %265 = vector.broadcast %257 : vector<48x1xf32> to vector<48x32xf32>
    %266 = arith.subf %253, %265 : vector<48x32xf32>
    %cst_76 = arith.constant 9.99999974E-6 : f32
    %267 = vector.broadcast %cst_76 : f32 to vector<48x1xf32>
    %268 = arith.addf %264, %267 : vector<48x1xf32>
    %269 = math.rsqrt %268 : vector<48x1xf32>
    %270 = vector.broadcast %269 : vector<48x1xf32> to vector<48x32xf32>
    %271 = arith.mulf %266, %270 : vector<48x32xf32>
    %272 = vector.broadcast %158 : vector<1x32xf32> to vector<48x32xf32>
    %273 = arith.mulf %271, %272 : vector<48x32xf32>
    %274 = vector.broadcast %159 : vector<1x32xf32> to vector<48x32xf32>
    %275 = arith.addf %273, %274 : vector<48x32xf32>
    %cst_77 = arith.constant dense<0.000000e+00> : vector<48x128xf32>
    %276 = tpu.matmul %275, %153, %cst_77 {dimension_numbers = #tpu.dot_dimension_numbers<[1], [0], [0], [1], [0, 0, 1, 1], [], []>} : vector<48x32xf32>, vector<32x128xf32>, vector<48x128xf32> -> vector<48x128xf32>
    %277 = vector.broadcast %162 : vector<1x128xf32> to vector<48x128xf32>
    %278 = arith.addf %276, %277 : vector<48x128xf32>
    %279 = arith.mulf %278, %278 : vector<48x128xf32>
    %280 = arith.mulf %278, %279 : vector<48x128xf32>
    %cst_78 = arith.constant 4.471500e-02 : f32
    %281 = vector.broadcast %cst_78 : f32 to vector<48x128xf32>
    %282 = arith.mulf %281, %280 : vector<48x128xf32>
    %283 = arith.addf %278, %282 : vector<48x128xf32>
    %cst_79 = arith.constant 0.797884583 : f32
    %284 = vector.broadcast %cst_79 : f32 to vector<48x128xf32>
    %285 = arith.mulf %284, %283 : vector<48x128xf32>
    %286 = math.tanh %285 : vector<48x128xf32>
    %cst_80 = arith.constant 1.000000e+00 : f32
    %287 = vector.broadcast %cst_80 : f32 to vector<48x128xf32>
    %288 = arith.addf %287, %286 : vector<48x128xf32>
    %cst_81 = arith.constant 5.000000e-01 : f32
    %289 = vector.broadcast %cst_81 : f32 to vector<48x128xf32>
    %290 = arith.mulf %289, %288 : vector<48x128xf32>
    %291 = arith.mulf %278, %290 : vector<48x128xf32>
    %cst_82 = arith.constant dense<0.000000e+00> : vector<48x32xf32>
    %292 = tpu.matmul %291, %154, %cst_82 {dimension_numbers = #tpu.dot_dimension_numbers<[1], [0], [0], [1], [0, 0, 1, 1], [], []>} : vector<48x128xf32>, vector<128x32xf32>, vector<48x32xf32> -> vector<48x32xf32>
    %293 = arith.addf %253, %292 : vector<48x32xf32>
    %294 = vector.broadcast %163 : vector<1x32xf32> to vector<48x32xf32>
    %295 = arith.addf %293, %294 : vector<48x32xf32>
    %c624 = arith.constant 624 : index
    %c0_83 = arith.constant 0 : index
    %296 = vector.load %arg2[%c624, %c0_83] : memref<664x128xf32, #tpu.memory_space<vmem>>, vector<1x32xf32>
    %c625 = arith.constant 625 : index
    %c0_84 = arith.constant 0 : index
    %297 = vector.load %arg2[%c625, %c0_84] : memref<664x128xf32, #tpu.memory_space<vmem>>, vector<1x32xf32>
    %c626 = arith.constant 626 : index
    %c0_85 = arith.constant 0 : index
    %298 = vector.load %arg2[%c626, %c0_85] : memref<664x128xf32, #tpu.memory_space<vmem>>, vector<1x128xf32>
    %c632 = arith.constant 632 : index
    %c0_86 = arith.constant 0 : index
    %299 = vector.load %arg2[%c632, %c0_86] : memref<664x128xf32, #tpu.memory_space<vmem>>, vector<32x128xf32>
    %cst_87 = arith.constant dense<0.000000e+00> : vector<48xf32>
    %300 = vector.multi_reduction <add>, %295, %cst_87 [1] : vector<48x32xf32> to vector<48xf32>
    %301 = vector.shape_cast %300 : vector<48xf32> to vector<48x1xf32>
    %cst_88 = arith.constant 3.200000e+01 : f32
    %302 = vector.broadcast %cst_88 : f32 to vector<48x1xf32>
    %303 = arith.divf %301, %302 : vector<48x1xf32>
    %304 = vector.broadcast %303 : vector<48x1xf32> to vector<48x32xf32>
    %305 = arith.subf %295, %304 : vector<48x32xf32>
    %306 = arith.mulf %305, %305 : vector<48x32xf32>
    %cst_89 = arith.constant dense<0.000000e+00> : vector<48xf32>
    %307 = vector.multi_reduction <add>, %306, %cst_89 [1] : vector<48x32xf32> to vector<48xf32>
    %308 = vector.shape_cast %307 : vector<48xf32> to vector<48x1xf32>
    %cst_90 = arith.constant 3.200000e+01 : f32
    %309 = vector.broadcast %cst_90 : f32 to vector<48x1xf32>
    %310 = arith.divf %308, %309 : vector<48x1xf32>
    %311 = vector.broadcast %303 : vector<48x1xf32> to vector<48x32xf32>
    %312 = arith.subf %295, %311 : vector<48x32xf32>
    %cst_91 = arith.constant 9.99999974E-6 : f32
    %313 = vector.broadcast %cst_91 : f32 to vector<48x1xf32>
    %314 = arith.addf %310, %313 : vector<48x1xf32>
    %315 = math.rsqrt %314 : vector<48x1xf32>
    %316 = vector.broadcast %315 : vector<48x1xf32> to vector<48x32xf32>
    %317 = arith.mulf %312, %316 : vector<48x32xf32>
    %318 = vector.broadcast %296 : vector<1x32xf32> to vector<48x32xf32>
    %319 = arith.mulf %317, %318 : vector<48x32xf32>
    %320 = vector.broadcast %297 : vector<1x32xf32> to vector<48x32xf32>
    %321 = arith.addf %319, %320 : vector<48x32xf32>
    %cst_92 = arith.constant dense<0.000000e+00> : vector<48x128xf32>
    %322 = tpu.matmul %321, %299, %cst_92 {dimension_numbers = #tpu.dot_dimension_numbers<[1], [0], [0], [1], [0, 0, 1, 1], [], []>} : vector<48x32xf32>, vector<32x128xf32>, vector<48x128xf32> -> vector<48x128xf32>
    %323 = vector.broadcast %298 : vector<1x128xf32> to vector<48x128xf32>
    %324 = arith.addf %322, %323 : vector<48x128xf32>
    %c0_93 = arith.constant 0 : index
    %c0_94 = arith.constant 0 : index
    %325 = vector.load %arg3[%c0_93, %c0_94] : memref<48x128xf32, #tpu.memory_space<vmem>>, vector<48x128xf32>
    tpu.vector_store %arg3[%c0_93, %c0_94], %324 {strides = array<i32>} : memref<48x128xf32, #tpu.memory_space<vmem>>, vector<48x128xf32>,
    return
  }
  func.func @transform_0(%arg0: i32) -> (i32, i32) {
    %c0_i32 = arith.constant 0 : i32
    %c0_i32_0 = arith.constant 0 : i32
    %c0_i32_1 = arith.constant 0 : i32
    return %c0_i32, %c0_i32_0 : i32, i32
  }
  func.func @transform_1(%arg0: i32) -> (i32, i32) {
    %c0_i32 = arith.constant 0 : i32
    %c0_i32_0 = arith.constant 0 : i32
    %c0_i32_1 = arith.constant 0 : i32
    return %c0_i32, %c0_i32_0 : i32, i32
  }
  func.func @transform_2(%arg0: i32) -> (i32, i32) {
    %c0_i32 = arith.constant 0 : i32
    %c0_i32_0 = arith.constant 0 : i32
    %c0_i32_1 = arith.constant 0 : i32
    return %c0_i32, %c0_i32_0 : i32, i32
  }
}

</mosaic_0001>

<bundles_post_ra>
// kernel: vit_forward.1
= control target key start
LH: loop header
LB: loop body
LE: loop exit
PB: predicated region body
PF: predicated region fallthrough
CT: control target
= control target key end

     0   :  { %vm37_vm0 = vcmask 523264   ;;  %vm180_vm1 = vcmask 261120   ;;  %vm415_vm2 = vcmask 64512   ;;  %s6158_s30 = smov 96   ;;  %s6159_s3 = smov 64   ;;  %vm535_vm3 = vcmask 392192   ;;  %s7928_s1 = inlined_call_operand.vmem [shape: f32[664,128], index: 1, kind: input, shape index: {}]   ;;  %s7929_s0 = inlined_call_operand.vmem [shape: f32[48,64], index: 0, kind: input, shape index: {}]   ;;  %s7930_s2 = inlined_call_operand.vmem [shape: f32[48,128], index: 2, kind: output, shape index: {}]  }
   0x1   :  { %v18_v0 = vld [vmem:[%s7928_s1 + $0x38] sm:$0xff]  ;;  %v17_v1 = vld [vmem:[%s7928_s1 + $0x30] sm:$0xff]  ;;  %v16_v2 = vld [vmem:[%s7928_s1 + $0x28] sm:$0xff]  ;;  %s6160_s4 = smov 88   ;;  %s6161_s16 = smov 120   ;;  %vm1831_vm4 = vcmask 130048  }
   0x2   :  { %5298 = vmatprep.subr.mxu0 %v18_v0  ;;  %v31_v3 = vld [vmem:[%s7929_s0] sm:$0xff]  ;;  %v14_v5 = vld [vmem:[%s7928_s1 + $0x18] sm:$0xff]  ;;  %v13_v6 = vld [vmem:[%s7928_s1 + $0x10] sm:$0xff]  ;;  %s6162_s17 = smov 56   ;;  %s6163_s18 = smov 80   ;;  %vm1838_vm5 = vcmask 195584  }
   0x3   :  { %5299 = vmatpush3.msra.mxu0 %v18_v0  ;;  %5314 = vmatprep.mubr.msk.f32.mxu0 %vm37_vm0, %v31_v3  ;;  %v15_v4 = vld [vmem:[%s7928_s1 + $0x20] sm:$0xff]  ;;  %v12_v7 = vld [vmem:[%s7928_s1 + $0x8] sm:$0xff]  ;;  %v33_v10 = vld [vmem:[%s7929_s0 + $0x10] sm:$0xff]  ;;  %s6164_s19 = smov 112   ;;  %s6165_s20 = smov 48  }
   0x4   :  { %5300 = vmatprep.subr.mxu0 %v17_v1  ;;  %v11_v8 = vld [vmem:[%s7928_s1] sm:$0xff]  ;;  %v32_v9 = vld [vmem:[%s7929_s0 + $0x8] sm:$0xff]  ;;  %v34_v11 = vld [vmem:[%s7929_s0 + $0x18] sm:$0xff]  ;;  %s6166_s21 = smov 72   ;;  %s6167_s22 = smov 104  }
   0x5   :  { %5301 = vmatpush3.msra.mxu0 %v17_v1  ;;  %v35_v12 = vld [vmem:[%s7929_s0 + $0x20] sm:$0xff]  ;;  %v36_v13 = vld [vmem:[%s7929_s0 + $0x28] sm:$0xff]  ;;  %v21_v20 = vld [vmem:[%s7928_s1 + $0x50] sm:$0xff]  ;;  %s6168_s23 = smov 40   ;;  %s6169_s24 = smov 8  }
   0x6   :  { %5302 = vmatprep.subr.mxu0 %v16_v2  ;;  %v19_v15 = vld [vmem:[%s7928_s1 + $0x40] sm:$0xff]  ;;  %v20_v16 = vld [vmem:[%s7928_s1 + $0x48] sm:$0xff]  ;;  %v22_v23 = vld [vmem:[%s7928_s1 + $0x58] sm:$0xff]  ;;  %s6170_s25 = smov 16   ;;  %s6171_s9 = smov 24  }
   0x7   :  { %5303 = vmatpush3.msra.mxu0 %v16_v2  ;;  %v23_v27 = vld [vmem:[%s7928_s1 + $0x60] sm:$0xff]  ;;  %v24_v31 = vld [vmem:[%s7928_s1 + $0x68] sm:$0xff] }
   0x8   :  { %5304 = vmatprep.subr.mxu0 %v15_v4 }
   0x9   :  { %5305 = vmatpush3.msra.mxu0 %v15_v4  ;;  %v154_v4 = vld [vmem:[%s7928_s1 + $0xb8] sm:$0xff] }
   0xa   :  { %5306 = vmatprep.subr.mxu0 %v14_v5  ;;  %5323 = vmatprep.subr.mxu1 %v154_v4 }
   0xb   :  { %5307 = vmatpush3.msra.mxu0 %v14_v5  ;;  %v153_v5 = vld [vmem:[%s7928_s1 + $0xb0] sm:$0xff]  ;;  %5324 = vmatpush3.msra.mxu1 %v154_v4 }
   0xc   :  { %5308 = vmatprep.subr.mxu0 %v13_v6  ;;  %5325 = vmatprep.subr.mxu1 %v153_v5 }
   0xd   :  { %5309 = vmatpush3.msra.mxu0 %v13_v6  ;;  %v152_v6 = vld [vmem:[%s7928_s1 + $0xa8] sm:$0xff]  ;;  %5326 = vmatpush3.msra.mxu1 %v153_v5 }
   0xe   :  { %5310 = vmatprep.subr.mxu0 %v12_v7  ;;  %5327 = vmatprep.subr.mxu1 %v152_v6 }
   0xf   :  { %5311 = vmatpush3.msra.mxu0 %v12_v7  ;;  %5328 = vmatpush3.msra.mxu1 %v152_v6  ;;  %v151_v7 = vld [vmem:[%s7928_s1 + $0xa0] sm:$0xff] }
  0x10   :  { %5312 = vmatprep.subr.mxu0 %v11_v8  ;;  %5329 = vmatprep.subr.mxu1 %v151_v7 }
  0x11   :  { %5313 = vmatpush3.msra.mxu0 %v11_v8  ;;  %5330 = vmatpush3.msra.mxu1 %v151_v7 }
  0x12   :  { %5315 = vmatmul.mubr.msk.f32.vlgmr.msra.gmra.mxu0 %vm37_vm0, %v32_v9 }
  0x13   :  { %5317 = vmatprep.mubr.msk.f32.mxu0 %vm37_vm0, %v33_v10 }
  0x16   :  { %5318 = vmatmul.mubr.msk.f32.gmra.mxu0 %vm37_vm0, %v34_v11 }
  0x17   :  { %5320 = vmatprep.mubr.msk.f32.mxu0 %vm37_vm0, %v35_v12 }
  0x1a   :  { %5321 = vmatmul.mubr.msk.f32.gmra.mxu0 %vm37_vm0, %v36_v13 }
  0xd2   :  { %v5316_v14 = vpop.f32.mrf.mxu0 }
  0xd3   :  { %v6246_v21 = vadd.f32 %v5316_v14, %v20_v16 }
  0xd4   :  { %v122_v17 = vpop.f32.mrf.mxu0 }
  0xd5   :  { %v6241_v18 = vadd.f32 %v122_v17, %v19_v15  ;;  %v184_v30 = vsel %vm180_vm1, %v6246_v21, 0.0  ;;  %v260_v15 = vlaneseq }
  0xd6   :  { %v5319_v19 = vpop.f32.mrf.mxu0 }
  0xd7   :  { %v181_v22 = vsel %vm180_vm1, %v6241_v18, 0.0  ;;  %v6258_v28 = vadd.f32 %v5319_v19, %v22_v23 }
  0xd8   :  { %v132_v24 = vpop.f32.mrf.mxu0  ;;  %182 = vadd.xlane.f32.xlu0 %v181_v22 }
  0xd9   :  { %v6253_v25 = vadd.f32 %v132_v24, %v21_v20  ;;  %v190_v35 = vsel %vm180_vm1, %v6258_v28, 0.0  ;;  %v6325_v24 = vshrl.u32 %v260_v15, 7 }
  0xda   :  { %v5322_v26 = vpop.f32.mrf.mxu0 }
  0xdb   :  { %v187_v29 = vsel %vm180_vm1, %v6253_v25, 0.0  ;;  %v6269_v34 = vadd.f32 %v5322_v26, %v24_v31  ;;  %v262_v31 = vsub.s32 0, %v6325_v24 }
  0xdc   :  { %v142_v32 = vpop.f32.mrf.mxu0  ;;  %188 = vadd.xlane.f32.xlu1 %v187_v29  ;;  %185 = vadd.xlane.f32.xlu0 %v184_v30 }
  0xdd   :  { %v6267_v33 = vadd.f32 %v142_v32, %v23_v27  ;;  %v196_v37 = vsel %vm180_vm1, %v6269_v34, 0.0  ;;  %v179_v32 = vld [vmem:[%s7928_s1 + $0x180] sm:$0xff] }
  0xdf   :  { %v193_v36 = vsel %vm180_vm1, %v6267_v33, 0.0 }
  0xe0   :  { %191 = vadd.xlane.f32.xlu1 %v190_v35  ;;  %194 = vadd.xlane.f32.xlu0 %v193_v36  ;;  %v272_v36 = vsub.s32 1, %v6325_v24 }
  0xe4   :  { %197 = vadd.xlane.f32.xlu1 %v196_v37  ;;  %v263_v37 = vrot.slane %v179_v32, %v262_v31 }
 0x161   :  { %v183_v38 = vpop.xlane.xlu0 %182 }
 0x162   :  { %v200_v39 = vmul.f32 0.03125, %v183_v38 }
 0x164   :  { %v6278_v40 = vsub.f32 %v6241_v18, %v200_v39 }
 0x165   :  { %v189_v41 = vpop.xlane.xlu1 %188  ;;  %v186_v42 = vpop.xlane.xlu0 %185 }
 0x166   :  { %v202_v43 = vmul.f32 0.03125, %v189_v41  ;;  %v201_v44 = vmul.f32 0.03125, %v186_v42  ;;  %v212_v45 = vmul.f32 %v6278_v40, %v6278_v40  ;;  %v273_v41 = vrot.slane %v179_v32, %v272_v36 }
 0x168   :  { %v6283_v46 = vsub.f32 %v6253_v25, %v202_v43  ;;  %v6286_v47 = vsub.f32 %v6246_v21, %v201_v44  ;;  %v218_v48 = vsel %vm180_vm1, %v212_v45, 0.0 }
 0x169   :  { %v192_v49 = vpop.xlane.xlu1 %191  ;;  %219 = vadd.xlane.f32.xlu0 %v218_v48  ;;  %v195_v50 = vpop.xlane.xlu0 %194 }
 0x16a   :  { %v203_v51 = vmul.f32 0.03125, %v192_v49  ;;  %v204_v52 = vmul.f32 0.03125, %v195_v50  ;;  %v214_v53 = vmul.f32 %v6283_v46, %v6283_v46  ;;  %v213_v54 = vmul.f32 %v6286_v47, %v6286_v47 }
 0x16c   :  { %v6294_v55 = vsub.f32 %v6258_v28, %v203_v51  ;;  %v6297_v56 = vsub.f32 %v6267_v33, %v204_v52  ;;  %v224_v57 = vsel %vm180_vm1, %v214_v53, 0.0  ;;  %v221_v58 = vsel %vm180_vm1, %v213_v54, 0.0 }
 0x16d   :  { %v198_v59 = vpop.xlane.xlu1 %197  ;;  %225 = vadd.xlane.f32.xlu0 %v224_v57  ;;  %222 = vadd.xlane.f32.xlu1 %v221_v58 }
 0x16e   :  { %v205_v60 = vmul.f32 0.03125, %v198_v59  ;;  %v215_v61 = vmul.f32 %v6294_v55, %v6294_v55  ;;  %v216_v62 = vmul.f32 %v6297_v56, %v6297_v56 }
 0x170   :  { %v6306_v63 = vsub.f32 %v6269_v34, %v205_v60  ;;  %v227_v0 = vsel %vm180_vm1, %v215_v61, 0.0  ;;  %v230_v1 = vsel %vm180_vm1, %v216_v62, 0.0 }
 0x171   :  { %228 = vadd.xlane.f32.xlu1 %v227_v0  ;;  %231 = vadd.xlane.f32.xlu0 %v230_v1 }
 0x172   :  { %v217_v2 = vmul.f32 %v6306_v63, %v6306_v63 }
 0x174   :  { %v233_v3 = vsel %vm180_vm1, %v217_v2, 0.0 }
 0x175   :  { %234 = vadd.xlane.f32.xlu1 %v233_v3 }
 0x1f2   :  { %v220_v8 = vpop.xlane.xlu0 %219 }
 0x1f3   :  { %v236_v9 = vmul.f32 0.03125, %v220_v8 }
 0x1f5   :  { %v242_v10 = vadd.f32 1e-05, %v236_v9 }
 0x1f6   :  { %v223_v11 = vpop.xlane.xlu1 %222  ;;  %v226_v12 = vpop.xlane.xlu0 %225 }
 0x1f7   :  { %5874 = vrsqrt.f32 %v242_v10  ;;  %v237_v13 = vmul.f32 0.03125, %v223_v11  ;;  %v238_v14 = vmul.f32 0.03125, %v226_v12 }
 0x1f9   :  { %v243_v16 = vadd.f32 1e-05, %v237_v13  ;;  %v244_v17 = vadd.f32 1e-05, %v238_v14 }
 0x1fa   :  { %v229_v19 = vpop.xlane.xlu1 %228  ;;  %v232_v20 = vpop.xlane.xlu0 %231 }
 0x1fb   :  { %5876 = vrsqrt.f32 %v243_v16  ;;  %v239_v22 = vmul.f32 0.03125, %v229_v19  ;;  %v240_v23 = vmul.f32 0.03125, %v232_v20 }
 0x1fc   :  { %5878 = vrsqrt.f32 %v244_v17 }
 0x1fd   :  { %v245_v26 = vadd.f32 1e-05, %v239_v22  ;;  %v246_v27 = vadd.f32 1e-05, %v240_v23 }
 0x1fe   :  { %v235_v29 = vpop.xlane.xlu1 %234 }
 0x1ff   :  { %5880 = vrsqrt.f32 %v245_v26  ;;  %v241_v30 = vmul.f32 0.03125, %v235_v29 }
 0x200   :  { %5882 = vrsqrt.f32 %v246_v27 }
 0x201   :  { %v247_v35 = vadd.f32 1e-05, %v241_v30 }
 0x203   :  { %5884 = vrsqrt.f32 %v247_v35 }
 0x204   :  { %v5875_v38 = vpop.eup %5874 }
 0x205   :  { %v254_v39 = vmul.f32 %v5875_v38, %v6278_v40 }
 0x207   :  { %v264_v42 = vmul.f32 %v263_v37, %v254_v39 }
 0x208   :  { %v5877_v43 = vpop.eup %5876 }
 0x209   :  { %v5879_v44 = vpop.eup %5878  ;;  %v274_v45 = vadd.f32 %v273_v41, %v264_v42  ;;  %v255_v48 = vmul.f32 %v5877_v43, %v6286_v47 }
 0x20a   :  { %v256_v49 = vmul.f32 %v5879_v44, %v6283_v46 }
 0x20b   :  { %5331 = vmatprep.mubr.msk.f32.mxu1 %vm180_vm1, %v274_v45  ;;  %v265_v50 = vmul.f32 %v263_v37, %v255_v48 }
 0x20c   :  { %v5881_v51 = vpop.eup %5880  ;;  %v266_v52 = vmul.f32 %v263_v37, %v256_v49 }
 0x20d   :  { %v5883_v53 = vpop.eup %5882  ;;  %v275_v54 = vadd.f32 %v273_v41, %v265_v50  ;;  %v257_v40 = vmul.f32 %v5881_v51, %v6294_v55  ;;  %v6442_v50 = vld [vmem:[%s7928_s1 + $0x80] sm:$0xff]  ;;  %v6447_v51 = vld [vmem:[%s7928_s1 + $0x98] sm:$0xff] }
 0x20e   :  { %v276_v57 = vadd.f32 %v273_v41, %v266_v52  ;;  %v258_v58 = vmul.f32 %v5883_v53, %v6297_v56  ;;  %v282_v56 = vsub.s32 4, %v6325_v24 }
 0x20f   :  { %5332 = vmatmul.mubr.msk.f32.vlgmr.msra.gmra.mxu1 %vm180_vm1, %v275_v54  ;;  %v267_v59 = vmul.f32 %v263_v37, %v257_v40 }
 0x210   :  { %v5885_v60 = vpop.eup %5884  ;;  %5334 = vmatprep.mubr.msk.f32.mxu1 %vm180_vm1, %v276_v57  ;;  %v268_v47 = vmul.f32 %v263_v37, %v258_v58  ;;  %v283_v2 = vrot.slane %v179_v32, %v282_v56  ;;  %v6422_v32 = vld [vmem:[%s7928_s1 + $0x78] sm:$0xff]  ;;  %v6455_v58 = vld [vmem:[%s7928_s1 + $0x90] sm:$0xff] }
 0x211   :  { %v277_v46 = vadd.f32 %v273_v41, %v267_v59  ;;  %v259_v61 = vmul.f32 %v5885_v60, %v6306_v63 }
 0x212   :  { %v278_v62 = vadd.f32 %v273_v41, %v268_v47 }
 0x213   :  { %5335 = vmatmul.mubr.msk.f32.gmra.mxu1 %vm180_vm1, %v277_v46  ;;  %v269_v0 = vmul.f32 %v263_v37, %v259_v61  ;;  %v6427_v37 = vld [vmem:[%s7928_s1 + $0x70] sm:$0xff] }
 0x214   :  { %5337 = vmatprep.mubr.msk.f32.mxu1 %vm180_vm1, %v278_v62 }
 0x215   :  { %v279_v55 = vadd.f32 %v273_v41, %v269_v0  ;;  %v6433_v41 = vld [vmem:[%s7928_s1 + $0x88] sm:$0xff] }
 0x217   :  { %5338 = vmatmul.mubr.msk.f32.gmra.mxu1 %vm180_vm1, %v279_v55 }
 0x2cf   :  { %v5333_v1 = vpop.f32.mrf.mxu1 }
 0x2d0   :  { %v6361_v10 = vadd.f32 %v5333_v1, %v283_v2 }
 0x2d1   :  { %v368_v3 = vpop.f32.mrf.mxu1 }
 0x2d2   :  { %v6351_v4 = vadd.f32 %v368_v3, %v283_v2 }
 0x2d3   :  { %v5336_v63 = vpop.f32.mrf.mxu1 }
 0x2d4   :  { %5352 = vmatprep.mubr.msk.f32.mxu1 %vm415_vm2, %v6351_v4  ;;  %v6365_v11 = vadd.f32 %v5336_v63, %v283_v2 }
 0x2d5   :  { %v378_v5 = vpop.f32.mrf.mxu1 }
 0x2d6   :  { %v6371_v12 = vadd.f32 %v378_v5, %v283_v2 }
 0x2d7   :  { %v5339_v6 = vpop.f32.mrf.mxu1 }
 0x2d8   :  { %v6355_v7 = vadd.f32 %v5339_v6, %v283_v2 }
 0x2d9   :  { %v388_v8 = vpop.f32.mrf.mxu1 }
 0x2da   :  { %v6357_v9 = vadd.f32 %v388_v8, %v283_v2  ;;  %413 = vrot.lane.b32.xlu0 %v6355_v7, %s6158_s30 }
 0x2dc   :  { %411 = vrot.lane.b32.xlu1 %v6357_v9, %s6158_s30 }
 0x2de   :  { %405 = vrot.lane.b32.xlu0 %v6361_v10, %s6158_s30 }
 0x2e0   :  { %409 = vrot.lane.b32.xlu1 %v6365_v11, %s6158_s30 }
 0x2e2   :  { %612 = vrot.lane.b32.xlu0 %v6355_v7, %s6159_s3 }
 0x2e4   :  { %407 = vrot.lane.b32.xlu1 %v6371_v12, %s6158_s30 }
 0x2e6   :  { %608 = vrot.lane.b32.xlu0 %v6365_v11, %s6159_s3 }
 0x2e8   :  { %403 = vrot.lane.b32.xlu1 %v6351_v4, %s6158_s30 }
 0x2ea   :  { %755 = vrot.lane.b32.xlu0 %v6355_v7, %s6160_s4 }
 0x2ec   :  { %606 = vrot.lane.b32.xlu1 %v6371_v12, %s6159_s3 }
 0x2f0   :  { %604 = vrot.lane.b32.xlu1 %v6361_v10, %s6159_s3 }
 0x2f4   :  { %602 = vrot.lane.b32.xlu1 %v6351_v4, %s6159_s3 }
 0x2f8   :  { %610 = vrot.lane.b32.xlu1 %v6357_v9, %s6159_s3 }
 0x2fc   :  { %753 = vrot.lane.b32.xlu1 %v6357_v9, %s6160_s4 }
 0x34c   :  { %v414_v13 = vpop.permute.xlu0 %413 }
 0x34d   :  { %5340 = vmatprep.subr.msk.mxu1 %vm415_vm2, %v414_v13 }
 0x34e   :  { %5341 = vmatpush3.xpose.msk.msra.mxu1 %vm415_vm2, %v414_v13  ;;  %v412_v14 = vpop.permute.xlu1 %411 }
 0x34f   :  { %5342 = vmatprep.subr.msk.mxu1 %vm415_vm2, %v412_v14 }
 0x350   :  { %v406_v15 = vpop.permute.xlu0 %405 }
 0x352   :  { %5343 = vmatpush3.xpose.msk.msra.mxu1 %vm415_vm2, %v412_v14  ;;  %v410_v16 = vpop.permute.xlu1 %409 }
 0x353   :  { %5344 = vmatprep.subr.msk.mxu1 %vm415_vm2, %v410_v16 }
 0x354   :  { %v613_v17 = vpop.permute.xlu0 %612 }
 0x355   :  { %5361 = vmatprep.subr.mxu0 %v613_v17 }
 0x356   :  { %5345 = vmatpush3.xpose.msk.msra.mxu1 %vm415_vm2, %v410_v16  ;;  %5362 = vmatpush3.msra.mxu0 %v613_v17  ;;  %v408_v19 = vpop.permute.xlu1 %407 }
 0x357   :  { %5346 = vmatprep.subr.msk.mxu1 %vm415_vm2, %v408_v19 }
 0x358   :  { %v609_v29 = vpop.permute.xlu0 %608 }
 0x35a   :  { %5347 = vmatpush3.xpose.msk.msra.mxu1 %vm415_vm2, %v408_v19  ;;  %v404_v20 = vpop.permute.xlu1 %403 }
 0x35b   :  { %5348 = vmatprep.subr.msk.mxu1 %vm415_vm2, %v406_v15 }
 0x35c   :  { %v6415_v30 = vpop.permute.xlu0 %755 }
 0x35e   :  { %5349 = vmatpush3.xpose.msk.msra.mxu1 %vm415_vm2, %v406_v15  ;;  %v607_v22 = vpop.permute.xlu1 %606 }
 0x35f   :  { %5350 = vmatprep.subr.msk.mxu1 %vm415_vm2, %v404_v20 }
 0x362   :  { %5351 = vmatpush3.xpose.msk.msra.mxu1 %vm415_vm2, %v404_v20  ;;  %v605_v23 = vpop.permute.xlu1 %604 }
 0x365   :  { %5353 = vmatmul.mubr.msk.f32.vlgmr.msra.gmra.mxu1 %vm415_vm2, %v6361_v10 }
 0x366   :  { %5355 = vmatprep.mubr.msk.f32.mxu1 %vm415_vm2, %v6371_v12  ;;  %v603_v26 = vpop.permute.xlu1 %602 }
 0x369   :  { %5356 = vmatmul.mubr.msk.f32.gmra.mxu1 %vm415_vm2, %v6365_v11 }
 0x36a   :  { %5358 = vmatprep.mubr.msk.f32.mxu1 %vm415_vm2, %v6357_v9  ;;  %v611_v27 = vpop.permute.xlu1 %610 }
 0x36b   :  { %5363 = vmatprep.subr.mxu0 %v611_v27 }
 0x36c   :  { %5364 = vmatpush3.msra.mxu0 %v611_v27 }
 0x36d   :  { %5359 = vmatmul.mubr.msk.f32.gmra.mxu1 %vm415_vm2, %v6355_v7  ;;  %5365 = vmatprep.subr.mxu0 %v609_v29 }
 0x36e   :  { %5366 = vmatpush3.msra.mxu0 %v609_v29  ;;  %v6465_v61 = vpop.permute.xlu1 %753 }
 0x36f   :  { %5367 = vmatprep.subr.mxu0 %v607_v22 }
 0x370   :  { %5368 = vmatpush3.msra.mxu0 %v607_v22 }
 0x371   :  { %5369 = vmatprep.subr.mxu0 %v605_v23 }
 0x372   :  { %5370 = vmatpush3.msra.mxu0 %v605_v23 }
 0x373   :  { %5371 = vmatprep.subr.mxu0 %v603_v26 }
 0x374   :  { %5372 = vmatpush3.msra.mxu0 %v603_v26 }
 0x375   :  { %5382 = vmatprep.subr.msk.mxu0 %vm415_vm2, %v6415_v30 }
 0x425   :  { %v5354_v35 = vpop.f32.mrf.mxu1 }
 0x426   :  { %v512_v38 = vadd.f32 %v5354_v35, %v6422_v32 }
 0x427   :  { %v506_v39 = vpop.f32.mrf.mxu1 }
 0x428   :  { %v507_v42 = vadd.f32 %v506_v39, %v6427_v37  ;;  %v539_v43 = vsel %vm535_vm3, %v512_v38, -inf }
 0x429   :  { %540 = vmax.xlane.f32.xlu1 %v539_v43  ;;  %v5357_v44 = vpop.f32.mrf.mxu1 }
 0x42a   :  { %v522_v45 = vadd.f32 %v5357_v44, %v6433_v41  ;;  %v536_v48 = vsel %vm535_vm3, %v507_v42, -inf }
 0x42b   :  { %v516_v49 = vpop.f32.mrf.mxu1  ;;  %537 = vmax.xlane.f32.xlu0 %v536_v48 }
 0x42c   :  { %v517_v53 = vadd.f32 %v516_v49, %v6442_v50  ;;  %v545_v40 = vsel %vm535_vm3, %v522_v45, -inf }
 0x42d   :  { %v5360_v52 = vpop.f32.mrf.mxu1 }
 0x42e   :  { %v532_v54 = vadd.f32 %v5360_v52, %v6447_v51  ;;  %v542_v47 = vsel %vm535_vm3, %v517_v53, -inf }
 0x42f   :  { %v526_v57 = vpop.f32.mrf.mxu1  ;;  %546 = vmax.xlane.f32.xlu0 %v545_v40 }
 0x430   :  { %v551_v59 = vsel %vm535_vm3, %v532_v54, -inf  ;;  %v527_v60 = vadd.f32 %v526_v57, %v6455_v58 }
 0x431   :  { %552 = vmax.xlane.f32.xlu1 %v551_v59 }
 0x432   :  { %v548_v46 = vsel %vm535_vm3, %v527_v60, -inf }
 0x433   :  { %543 = vmax.xlane.f32.xlu0 %v542_v47 }
 0x437   :  { %549 = vmax.xlane.f32.xlu0 %v548_v46 }
 0x442   :  { %749 = vrot.lane.b32.xlu1 %v6371_v12, %s6160_s4 }
 0x44d   :  { %751 = vrot.lane.b32.xlu0 %v6365_v11, %s6160_s4 }
 0x4b2   :  { %v541_v62 = vpop.xlane.xlu1 %540 }
 0x4b3   :  { %v555_v0 = vsub.f32 %v512_v38, %v541_v62 }
 0x4b4   :  { %v538_v55 = vpop.xlane.xlu0 %537 }
 0x4b5   :  { %v562_v1 = vmul.f32 1.442695, %v555_v0  ;;  %v554_v2 = vsub.f32 %v507_v42, %v538_v55 }
 0x4b7   :  { %5886 = vpow2.f32 %v562_v1  ;;  %v560_v3 = vmul.f32 1.442695, %v554_v2 }
 0x4b8   :  { %v547_v63 = vpop.xlane.xlu0 %546 }
 0x4b9   :  { %5888 = vpow2.f32 %v560_v3  ;;  %v557_v5 = vsub.f32 %v522_v45, %v547_v63 }
 0x4ba   :  { %v553_v35 = vpop.xlane.xlu1 %552 }
 0x4bb   :  { %v566_v6 = vmul.f32 1.442695, %v557_v5  ;;  %v559_v38 = vsub.f32 %v532_v54, %v553_v35 }
 0x4bc   :  { %v544_v8 = vpop.xlane.xlu0 %543 }
 0x4bd   :  { %5890 = vpow2.f32 %v566_v6  ;;  %v556_v13 = vsub.f32 %v517_v53, %v544_v8  ;;  %v570_v42 = vmul.f32 1.442695, %v559_v38 }
 0x4be   :  { %v750_v49 = vpop.permute.xlu1 %749 }
 0x4bf   :  { %v564_v14 = vmul.f32 1.442695, %v556_v13 }
 0x4c0   :  { %v550_v27 = vpop.xlane.xlu0 %549 }
 0x4c1   :  { %5892 = vpow2.f32 %v564_v14  ;;  %v558_v29 = vsub.f32 %v527_v60, %v550_v27 }
 0x4c3   :  { %v568_v39 = vmul.f32 1.442695, %v558_v29 }
 0x4c4   :  { %v5887_v15 = vpop.eup %5886  ;;  %v752_v52 = vpop.permute.xlu0 %751 }
 0x4c5   :  { %v575_v16 = vsel %vm535_vm3, %v5887_v15, 0.0  ;;  %5894 = vpow2.f32 %v568_v39 }
 0x4c6   :  { %v5889_v17 = vpop.eup %5888  ;;  %576 = vadd.xlane.f32.xlu1 %v575_v16  ;;  %5896 = vpow2.f32 %v570_v42 }
 0x4c7   :  { %v572_v19 = vsel %vm535_vm3, %v5889_v17, 0.0 }
 0x4c8   :  { %573 = vadd.xlane.f32.xlu0 %v572_v19 }
 0x4ca   :  { %v5891_v20 = vpop.eup %5890 }
 0x4cb   :  { %v581_v22 = vsel %vm535_vm3, %v5891_v20, 0.0 }
 0x4cc   :  { %582 = vadd.xlane.f32.xlu1 %v581_v22 }
 0x4ce   :  { %v5893_v23 = vpop.eup %5892 }
 0x4cf   :  { %v578_v26 = vsel %vm535_vm3, %v5893_v23, 0.0 }
 0x4d0   :  { %579 = vadd.xlane.f32.xlu0 %v578_v26 }
 0x4d2   :  { %v6475_v43 = vpop.eup %5894 }
 0x4d3   :  { %v584_v44 = vsel %vm535_vm3, %v6475_v43, 0.0  ;;  %v6479_v45 = vpop.eup %5896 }
 0x4d4   :  { %v587_v48 = vsel %vm535_vm3, %v6479_v45, 0.0 }
 0x4dd   :  { %745 = vrot.lane.b32.xlu1 %v6351_v4, %s6160_s4 }
 0x4e6   :  { %747 = vrot.lane.b32.xlu0 %v6361_v10, %s6160_s4 }
 0x501   :  { %585 = vadd.xlane.f32.xlu1 %v584_v44 }
 0x505   :  { %588 = vadd.xlane.f32.xlu0 %v587_v48 }
 0x512   :  { %735 = vrot.lane.b32.xlu1 %v6361_v10, %s6161_s16 }
 0x516   :  { %739 = vrot.lane.b32.xlu1 %v6365_v11, %s6161_s16 }
 0x51a   :  { %743 = vrot.lane.b32.xlu1 %v6355_v7, %s6161_s16 }
 0x51b   :  { %733 = vrot.lane.b32.xlu0 %v6351_v4, %s6161_s16 }
 0x51e   :  { %950 = vrot.lane.b32.xlu1 %v6357_v9, %s6162_s17 }
 0x51f   :  { %737 = vrot.lane.b32.xlu0 %v6371_v12, %s6161_s16 }
 0x522   :  { %946 = vrot.lane.b32.xlu1 %v6371_v12, %s6162_s17 }
 0x523   :  { %741 = vrot.lane.b32.xlu0 %v6357_v9, %s6161_s16 }
 0x526   :  { %944 = vrot.lane.b32.xlu1 %v6361_v10, %s6162_s17 }
 0x527   :  { %952 = vrot.lane.b32.xlu0 %v6355_v7, %s6162_s17 }
 0x52a   :  { %942 = vrot.lane.b32.xlu1 %v6351_v4, %s6162_s17 }
 0x52b   :  { %948 = vrot.lane.b32.xlu0 %v6365_v11, %s6162_s17 }
 0x52e   :  { %1093 = vrot.lane.b32.xlu1 %v6357_v9, %s6163_s18 }
 0x52f   :  { %1095 = vrot.lane.b32.xlu0 %v6355_v7, %s6163_s18 }
 0x54f   :  { %v577_v53 = vpop.xlane.xlu1 %576 }
 0x550   :  { %5898 = vrcp.f32 %v577_v53 }
 0x551   :  { %v574_v54 = vpop.xlane.xlu0 %573 }
 0x552   :  { %5900 = vrcp.f32 %v574_v54 }
 0x555   :  { %v583_v40 = vpop.xlane.xlu1 %582 }
 0x556   :  { %5902 = vrcp.f32 %v583_v40 }
 0x559   :  { %v580_v57 = vpop.xlane.xlu0 %579  ;;  %v746_v2 = vpop.permute.xlu1 %745 }
 0x55a   :  { %5904 = vrcp.f32 %v580_v57 }
 0x55d   :  { %v5899_v59 = vpop.eup %5898 }
 0x55e   :  { %v593_v46 = vmul.f32 %v5899_v59, %v5887_v15 }
 0x55f   :  { %v5901_v60 = vpop.eup %5900 }
 0x560   :  { %v591_v47 = vmul.f32 %v5901_v60, %v5889_v17 }
 0x562   :  { %5373 = vmatprep.mubr.msk.f32.mxu0 %vm535_vm3, %v591_v47 }
 0x563   :  { %5374 = vmatmul.mubr.msk.f32.vlgmr.msra.gmra.mxu0 %vm535_vm3, %v593_v46  ;;  %v5903_v62 = vpop.eup %5902 }
 0x564   :  { %5383 = vmatpush3.xpose.msk.msra.mxu0 %vm415_vm2, %v6415_v30  ;;  %v597_v1 = vmul.f32 %v5903_v62, %v5891_v20  ;;  %v748_v30 = vpop.permute.xlu0 %747 }
 0x565   :  { %5384 = vmatprep.subr.msk.mxu0 %vm415_vm2, %v6465_v61 }
 0x567   :  { %v5905_v0 = vpop.eup %5904 }
 0x568   :  { %5385 = vmatpush3.xpose.msk.msra.mxu0 %vm415_vm2, %v6465_v61  ;;  %v595_v55 = vmul.f32 %v5905_v0, %v5893_v23 }
 0x569   :  { %5386 = vmatprep.subr.msk.mxu0 %vm415_vm2, %v752_v52 }
 0x56a   :  { %5376 = vmatprep.mubr.msk.f32.mxu0 %vm535_vm3, %v595_v55 }
 0x56b   :  { %5377 = vmatmul.mubr.msk.f32.gmra.mxu0 %vm535_vm3, %v597_v1 }
 0x56c   :  { %5387 = vmatpush3.xpose.msk.msra.mxu0 %vm415_vm2, %v752_v52 }
 0x56d   :  { %5388 = vmatprep.subr.msk.mxu0 %vm415_vm2, %v750_v49 }
 0x570   :  { %5389 = vmatpush3.xpose.msk.msra.mxu0 %vm415_vm2, %v750_v49 }
 0x571   :  { %5390 = vmatprep.subr.msk.mxu0 %vm415_vm2, %v748_v30 }
 0x574   :  { %5391 = vmatpush3.xpose.msk.msra.mxu0 %vm415_vm2, %v748_v30 }
 0x575   :  { %5392 = vmatprep.subr.msk.mxu0 %vm415_vm2, %v746_v2 }
 0x578   :  { %5393 = vmatpush3.xpose.msk.msra.mxu0 %vm415_vm2, %v746_v2 }
 0x58a   :  { %v586_v61 = vpop.xlane.xlu1 %585 }
 0x58b   :  { %5906 = vrcp.f32 %v586_v61 }
 0x58e   :  { %v589_v3 = vpop.xlane.xlu0 %588  ;;  %v736_v63 = vpop.permute.xlu1 %735 }
 0x58f   :  { %5908 = vrcp.f32 %v589_v3 }
 0x592   :  { %v734_v5 = vpop.permute.xlu0 %733  ;;  %v740_v6 = vpop.permute.xlu1 %739 }
 0x596   :  { %v738_v8 = vpop.permute.xlu0 %737  ;;  %v744_v13 = vpop.permute.xlu1 %743 }
 0x598   :  { %v5907_v14 = vpop.eup %5906 }
 0x599   :  { %v599_v15 = vmul.f32 %v5907_v14, %v6475_v43 }
 0x59a   :  { %v742_v16 = vpop.permute.xlu0 %741  ;;  %v951_v17 = vpop.permute.xlu1 %950 }
 0x59b   :  { %5379 = vmatprep.mubr.msk.f32.mxu0 %vm535_vm3, %v599_v15 }
 0x59c   :  { %v5909_v19 = vpop.eup %5908 }
 0x59d   :  { %v601_v20 = vmul.f32 %v5909_v19, %v6479_v45 }
 0x59e   :  { %v953_v22 = vpop.permute.xlu0 %952  ;;  %v947_v23 = vpop.permute.xlu1 %946 }
 0x59f   :  { %5380 = vmatmul.mubr.msk.f32.gmra.mxu0 %vm535_vm3, %v601_v20  ;;  %5403 = vmatprep.subr.mxu1 %v953_v22 }
 0x5a0   :  { %5394 = vmatprep.mubr.msk.f32.mxu0 %vm415_vm2, %v734_v5  ;;  %5404 = vmatpush3.msra.mxu1 %v953_v22 }
 0x5a1   :  { %5405 = vmatprep.subr.mxu1 %v951_v17 }
 0x5a2   :  { %v949_v26 = vpop.permute.xlu0 %948  ;;  %5406 = vmatpush3.msra.mxu1 %v951_v17  ;;  %v945_v27 = vpop.permute.xlu1 %944 }
 0x5a3   :  { %5395 = vmatmul.mubr.msk.f32.vlgmr.msra.gmra.mxu0 %vm415_vm2, %v736_v63  ;;  %5407 = vmatprep.subr.mxu1 %v949_v26 }
 0x5a4   :  { %5397 = vmatprep.mubr.msk.f32.mxu0 %vm415_vm2, %v738_v8  ;;  %5408 = vmatpush3.msra.mxu1 %v949_v26 }
 0x5a5   :  { %5409 = vmatprep.subr.mxu1 %v947_v23 }
 0x5a6   :  { %5410 = vmatpush3.msra.mxu1 %v947_v23  ;;  %v943_v29 = vpop.permute.xlu1 %942  ;;  %v6538_v35 = vpop.permute.xlu0 %1095 }
 0x5a7   :  { %5398 = vmatmul.mubr.msk.f32.gmra.mxu0 %vm415_vm2, %v740_v6  ;;  %5411 = vmatprep.subr.mxu1 %v945_v27 }
 0x5a8   :  { %5400 = vmatprep.mubr.msk.f32.mxu0 %vm415_vm2, %v742_v16  ;;  %5412 = vmatpush3.msra.mxu1 %v945_v27 }
 0x5a9   :  { %5413 = vmatprep.subr.mxu1 %v943_v29 }
 0x5aa   :  { %5414 = vmatpush3.msra.mxu1 %v943_v29  ;;  %v6571_v3 = vpop.permute.xlu1 %1093 }
 0x5ab   :  { %5401 = vmatmul.mubr.msk.f32.gmra.mxu0 %vm415_vm2, %v744_v13  ;;  %5424 = vmatprep.subr.msk.mxu1 %vm415_vm2, %v6538_v35 }
 0x623   :  { %v6543_v38 = vpop.f32.mrf.mxu0 }
 0x625   :  { %v6545_v39 = vpop.f32.mrf.mxu0 }
 0x62b   :  { %v6547_v42 = vpop.f32.mrf.mxu0 }
 0x62d   :  { %v6549_v43 = vpop.f32.mrf.mxu0 }
 0x65f   :  { %v6551_v44 = vpop.f32.mrf.mxu0 }
 0x661   :  { %v6553_v45 = vpop.f32.mrf.mxu0 }
 0x663   :  { %v5396_v48 = vpop.f32.mrf.mxu0 }
 0x664   :  { %v853_v49 = vadd.f32 %v5396_v48, %v6422_v32 }
 0x665   :  { %v847_v52 = vpop.f32.mrf.mxu0 }
 0x666   :  { %v848_v53 = vadd.f32 %v847_v52, %v6427_v37  ;;  %v879_v54 = vsel %vm535_vm3, %v853_v49, -inf }
 0x667   :  { %880 = vmax.xlane.f32.xlu1 %v879_v54  ;;  %v5399_v40 = vpop.f32.mrf.mxu0 }
 0x668   :  { %v863_v57 = vadd.f32 %v5399_v40, %v6433_v41  ;;  %v876_v59 = vsel %vm535_vm3, %v848_v53, -inf }
 0x669   :  { %877 = vmax.xlane.f32.xlu0 %v876_v59  ;;  %v857_v60 = vpop.f32.mrf.mxu0 }
 0x66a   :  { %v858_v46 = vadd.f32 %v857_v60, %v6442_v50  ;;  %v885_v0 = vsel %vm535_vm3, %v863_v57, -inf }
 0x66b   :  { %v5402_v47 = vpop.f32.mrf.mxu0 }
 0x66c   :  { %v873_v62 = vadd.f32 %v5402_v47, %v6447_v51  ;;  %v882_v2 = vsel %vm535_vm3, %v858_v46, -inf }
 0x66d   :  { %886 = vmax.xlane.f32.xlu0 %v885_v0  ;;  %v867_v55 = vpop.f32.mrf.mxu0 }
 0x66e   :  { %v891_v1 = vsel %vm535_vm3, %v873_v62, -inf  ;;  %v868_v30 = vadd.f32 %v867_v55, %v6455_v58 }
 0x66f   :  { %892 = vmax.xlane.f32.xlu1 %v891_v1 }
 0x670   :  { %v888_v61 = vsel %vm535_vm3, %v868_v30, -inf }
 0x671   :  { %883 = vmax.xlane.f32.xlu0 %v882_v2 }
 0x675   :  { %889 = vmax.xlane.f32.xlu0 %v888_v61 }
 0x680   :  { %1089 = vrot.lane.b32.xlu1 %v6371_v12, %s6163_s18 }
 0x68b   :  { %1091 = vrot.lane.b32.xlu0 %v6365_v11, %s6163_s18 }
 0x6f0   :  { %v881_v63 = vpop.xlane.xlu1 %880 }
 0x6f1   :  { %v895_v5 = vsub.f32 %v853_v49, %v881_v63 }
 0x6f2   :  { %v878_v6 = vpop.xlane.xlu0 %877 }
 0x6f3   :  { %v902_v8 = vmul.f32 1.442695, %v895_v5  ;;  %v894_v13 = vsub.f32 %v848_v53, %v878_v6 }
 0x6f5   :  { %5910 = vpow2.f32 %v902_v8  ;;  %v900_v14 = vmul.f32 1.442695, %v894_v13 }
 0x6f6   :  { %v887_v15 = vpop.xlane.xlu0 %886 }
 0x6f7   :  { %5912 = vpow2.f32 %v900_v14  ;;  %v897_v16 = vsub.f32 %v863_v57, %v887_v15 }
 0x6f8   :  { %v893_v57 = vpop.xlane.xlu1 %892 }
 0x6f9   :  { %v906_v17 = vmul.f32 1.442695, %v897_v16  ;;  %v899_v59 = vsub.f32 %v873_v62, %v893_v57 }
 0x6fa   :  { %v884_v19 = vpop.xlane.xlu0 %883 }
 0x6fb   :  { %5914 = vpow2.f32 %v906_v17  ;;  %v896_v20 = vsub.f32 %v858_v46, %v884_v19  ;;  %v910_v47 = vmul.f32 1.442695, %v899_v59 }
 0x6fc   :  { %v1090_v62 = vpop.permute.xlu1 %1089 }
 0x6fd   :  { %v904_v22 = vmul.f32 1.442695, %v896_v20 }
 0x6fe   :  { %v890_v54 = vpop.xlane.xlu0 %889 }
 0x6ff   :  { %5916 = vpow2.f32 %v904_v22  ;;  %v898_v40 = vsub.f32 %v868_v30, %v890_v54 }
 0x701   :  { %v908_v60 = vmul.f32 1.442695, %v898_v40 }
 0x702   :  { %v5911_v23 = vpop.eup %5910  ;;  %v1092_v30 = vpop.permute.xlu0 %1091 }
 0x703   :  { %v915_v26 = vsel %vm535_vm3, %v5911_v23, 0.0  ;;  %5918 = vpow2.f32 %v908_v60 }
 0x704   :  { %v5913_v27 = vpop.eup %5912  ;;  %916 = vadd.xlane.f32.xlu1 %v915_v26  ;;  %5920 = vpow2.f32 %v910_v47 }
 0x705   :  { %v912_v29 = vsel %vm535_vm3, %v5913_v27, 0.0 }
 0x706   :  { %913 = vadd.xlane.f32.xlu0 %v912_v29 }
 0x708   :  { %v5915_v48 = vpop.eup %5914 }
 0x709   :  { %v921_v49 = vsel %vm535_vm3, %v5915_v48, 0.0 }
 0x70a   :  { %922 = vadd.xlane.f32.xlu1 %v921_v49 }
 0x70c   :  { %v5917_v52 = vpop.eup %5916 }
 0x70d   :  { %v918_v53 = vsel %vm535_vm3, %v5917_v52, 0.0 }
 0x70e   :  { %919 = vadd.xlane.f32.xlu0 %v918_v53 }
 0x710   :  { %v6581_v46 = vpop.eup %5918 }
 0x711   :  { %v924_v0 = vsel %vm535_vm3, %v6581_v46, 0.0  ;;  %v6585_v55 = vpop.eup %5920 }
 0x712   :  { %v927_v1 = vsel %vm535_vm3, %v6585_v55, 0.0 }
 0x71b   :  { %1085 = vrot.lane.b32.xlu1 %v6351_v4, %s6163_s18 }
 0x724   :  { %1087 = vrot.lane.b32.xlu0 %v6361_v10, %s6163_s18 }
 0x73f   :  { %925 = vadd.xlane.f32.xlu1 %v924_v0 }
 0x743   :  { %928 = vadd.xlane.f32.xlu0 %v927_v1 }
 0x750   :  { %1075 = vrot.lane.b32.xlu1 %v6361_v10, %s6164_s19 }
 0x754   :  { %1079 = vrot.lane.b32.xlu1 %v6365_v11, %s6164_s19 }
 0x758   :  { %1083 = vrot.lane.b32.xlu1 %v6355_v7, %s6164_s19 }
 0x759   :  { %1073 = vrot.lane.b32.xlu0 %v6351_v4, %s6164_s19 }
 0x75c   :  { %1290 = vrot.lane.b32.xlu1 %v6357_v9, %s6165_s20 }
 0x75d   :  { %1077 = vrot.lane.b32.xlu0 %v6371_v12, %s6164_s19 }
 0x760   :  { %1286 = vrot.lane.b32.xlu1 %v6371_v12, %s6165_s20 }
 0x761   :  { %1081 = vrot.lane.b32.xlu0 %v6357_v9, %s6164_s19 }
 0x764   :  { %1284 = vrot.lane.b32.xlu1 %v6361_v10, %s6165_s20 }
 0x765   :  { %1292 = vrot.lane.b32.xlu0 %v6355_v7, %s6165_s20 }
 0x768   :  { %1282 = vrot.lane.b32.xlu1 %v6351_v4, %s6165_s20 }
 0x769   :  { %1288 = vrot.lane.b32.xlu0 %v6365_v11, %s6165_s20 }
 0x76c   :  { %1433 = vrot.lane.b32.xlu1 %v6357_v9, %s6166_s21 }
 0x76d   :  { %1435 = vrot.lane.b32.xlu0 %v6355_v7, %s6166_s21 }
 0x78d   :  { %v917_v2 = vpop.xlane.xlu1 %916 }
 0x78e   :  { %5922 = vrcp.f32 %v917_v2 }
 0x78f   :  { %v914_v61 = vpop.xlane.xlu0 %913 }
 0x790   :  { %5924 = vrcp.f32 %v914_v61 }
 0x793   :  { %v923_v63 = vpop.xlane.xlu1 %922 }
 0x794   :  { %5926 = vrcp.f32 %v923_v63 }
 0x797   :  { %v920_v5 = vpop.xlane.xlu0 %919  ;;  %v1086_v20 = vpop.permute.xlu1 %1085 }
 0x798   :  { %5928 = vrcp.f32 %v920_v5 }
 0x79b   :  { %v5923_v6 = vpop.eup %5922 }
 0x79c   :  { %v933_v14 = vmul.f32 %v5923_v6, %v5911_v23 }
 0x79d   :  { %v5925_v8 = vpop.eup %5924 }
 0x79e   :  { %v931_v13 = vmul.f32 %v5925_v8, %v5913_v27 }
 0x7a0   :  { %5415 = vmatprep.mubr.msk.f32.mxu1 %vm535_vm3, %v931_v13 }
 0x7a1   :  { %5416 = vmatmul.mubr.msk.f32.vlgmr.msra.gmra.mxu1 %vm535_vm3, %v933_v14  ;;  %v5927_v15 = vpop.eup %5926 }
 0x7a2   :  { %5425 = vmatpush3.xpose.msk.msra.mxu1 %vm415_vm2, %v6538_v35  ;;  %v937_v19 = vmul.f32 %v5927_v15, %v5915_v48  ;;  %v1088_v35 = vpop.permute.xlu0 %1087 }
 0x7a3   :  { %5426 = vmatprep.subr.msk.mxu1 %vm415_vm2, %v6571_v3 }
 0x7a5   :  { %v5929_v16 = vpop.eup %5928 }
 0x7a6   :  { %5427 = vmatpush3.xpose.msk.msra.mxu1 %vm415_vm2, %v6571_v3  ;;  %v935_v17 = vmul.f32 %v5929_v16, %v5917_v52 }
 0x7a7   :  { %5428 = vmatprep.subr.msk.mxu1 %vm415_vm2, %v1092_v30 }
 0x7a8   :  { %5418 = vmatprep.mubr.msk.f32.mxu1 %vm535_vm3, %v935_v17 }
 0x7a9   :  { %5419 = vmatmul.mubr.msk.f32.gmra.mxu1 %vm535_vm3, %v937_v19 }
 0x7aa   :  { %5429 = vmatpush3.xpose.msk.msra.mxu1 %vm415_vm2, %v1092_v30 }
 0x7ab   :  { %5430 = vmatprep.subr.msk.mxu1 %vm415_vm2, %v1090_v62 }
 0x7ae   :  { %5431 = vmatpush3.xpose.msk.msra.mxu1 %vm415_vm2, %v1090_v62 }
 0x7af   :  { %5432 = vmatprep.subr.msk.mxu1 %vm415_vm2, %v1088_v35 }
 0x7b2   :  { %5433 = vmatpush3.xpose.msk.msra.mxu1 %vm415_vm2, %v1088_v35 }
 0x7b3   :  { %5434 = vmatprep.subr.msk.mxu1 %vm415_vm2, %v1086_v20 }
 0x7b6   :  { %5435 = vmatpush3.xpose.msk.msra.mxu1 %vm415_vm2, %v1086_v20 }
 0x7c8   :  { %v926_v3 = vpop.xlane.xlu1 %925 }
 0x7c9   :  { %5930 = vrcp.f32 %v926_v3 }
 0x7cc   :  { %v929_v22 = vpop.xlane.xlu0 %928  ;;  %v1076_v23 = vpop.permute.xlu1 %1075 }
 0x7cd   :  { %5932 = vrcp.f32 %v929_v22 }
 0x7d0   :  { %v1074_v26 = vpop.permute.xlu0 %1073  ;;  %v1080_v27 = vpop.permute.xlu1 %1079 }
 0x7d4   :  { %v1078_v29 = vpop.permute.xlu0 %1077  ;;  %v1084_v48 = vpop.permute.xlu1 %1083 }
 0x7d6   :  { %v5931_v49 = vpop.eup %5930 }
 0x7d7   :  { %v939_v52 = vmul.f32 %v5931_v49, %v6581_v46 }
 0x7d8   :  { %v1082_v53 = vpop.permute.xlu0 %1081  ;;  %v1291_v54 = vpop.permute.xlu1 %1290 }
 0x7d9   :  { %5421 = vmatprep.mubr.msk.f32.mxu1 %vm535_vm3, %v939_v52 }
 0x7da   :  { %v5933_v40 = vpop.eup %5932 }
 0x7db   :  { %v941_v57 = vmul.f32 %v5933_v40, %v6585_v55 }
 0x7dc   :  { %v1293_v59 = vpop.permute.xlu0 %1292  ;;  %v1287_v60 = vpop.permute.xlu1 %1286 }
 0x7dd   :  { %5422 = vmatmul.mubr.msk.f32.gmra.mxu1 %vm535_vm3, %v941_v57  ;;  %5445 = vmatprep.subr.mxu0 %v1293_v59 }
 0x7de   :  { %5436 = vmatprep.mubr.msk.f32.mxu1 %vm415_vm2, %v1074_v26  ;;  %5446 = vmatpush3.msra.mxu0 %v1293_v59 }
 0x7df   :  { %5447 = vmatprep.subr.mxu0 %v1291_v54 }
 0x7e0   :  { %v1289_v47 = vpop.permute.xlu0 %1288  ;;  %5448 = vmatpush3.msra.mxu0 %v1291_v54  ;;  %v1285_v0 = vpop.permute.xlu1 %1284 }
 0x7e1   :  { %5437 = vmatmul.mubr.msk.f32.vlgmr.msra.gmra.mxu1 %vm415_vm2, %v1076_v23  ;;  %5449 = vmatprep.subr.mxu0 %v1289_v47 }
 0x7e2   :  { %5439 = vmatprep.mubr.msk.f32.mxu1 %vm415_vm2, %v1078_v29  ;;  %5450 = vmatpush3.msra.mxu0 %v1289_v47 }
 0x7e3   :  { %5451 = vmatprep.subr.mxu0 %v1287_v60 }
 0x7e4   :  { %5452 = vmatpush3.msra.mxu0 %v1287_v60  ;;  %v1283_v46 = vpop.permute.xlu1 %1282  ;;  %v6644_v55 = vpop.permute.xlu0 %1435 }
 0x7e5   :  { %5440 = vmatmul.mubr.msk.f32.gmra.mxu1 %vm415_vm2, %v1080_v27  ;;  %5453 = vmatprep.subr.mxu0 %v1285_v0 }
 0x7e6   :  { %5442 = vmatprep.mubr.msk.f32.mxu1 %vm415_vm2, %v1082_v53  ;;  %5454 = vmatpush3.msra.mxu0 %v1285_v0 }
 0x7e7   :  { %5455 = vmatprep.subr.mxu0 %v1283_v46 }
 0x7e8   :  { %5456 = vmatpush3.msra.mxu0 %v1283_v46  ;;  %v6677_v49 = vpop.permute.xlu1 %1433 }
 0x7e9   :  { %5443 = vmatmul.mubr.msk.f32.gmra.mxu1 %vm415_vm2, %v1084_v48  ;;  %5466 = vmatprep.subr.msk.mxu0 %vm415_vm2, %v6644_v55 }
 0x861   :  { %v6649_v1 = vpop.f32.mrf.mxu1 }
 0x863   :  { %v6651_v62 = vpop.f32.mrf.mxu1 }
 0x869   :  { %v6653_v30 = vpop.f32.mrf.mxu1 }
 0x86b   :  { %v6655_v2 = vpop.f32.mrf.mxu1 }
 0x89d   :  { %v6657_v61 = vpop.f32.mrf.mxu1 }
 0x89f   :  { %v6659_v63 = vpop.f32.mrf.mxu1 }
 0x8a1   :  { %v5438_v5 = vpop.f32.mrf.mxu1 }
 0x8a2   :  { %v1193_v6 = vadd.f32 %v5438_v5, %v6422_v32 }
 0x8a3   :  { %v1187_v8 = vpop.f32.mrf.mxu1 }
 0x8a4   :  { %v1188_v13 = vadd.f32 %v1187_v8, %v6427_v37  ;;  %v1219_v14 = vsel %vm535_vm3, %v1193_v6, -inf }
 0x8a5   :  { %1220 = vmax.xlane.f32.xlu1 %v1219_v14  ;;  %v5441_v15 = vpop.f32.mrf.mxu1 }
 0x8a6   :  { %v1203_v16 = vadd.f32 %v5441_v15, %v6433_v41  ;;  %v1216_v17 = vsel %vm535_vm3, %v1188_v13, -inf }
 0x8a7   :  { %1217 = vmax.xlane.f32.xlu0 %v1216_v17  ;;  %v1197_v19 = vpop.f32.mrf.mxu1 }
 0x8a8   :  { %v1198_v20 = vadd.f32 %v1197_v19, %v6442_v50  ;;  %v1225_v22 = vsel %vm535_vm3, %v1203_v16, -inf }
 0x8a9   :  { %v5444_v35 = vpop.f32.mrf.mxu1 }
 0x8aa   :  { %v1213_v3 = vadd.f32 %v5444_v35, %v6447_v51  ;;  %v1222_v29 = vsel %vm535_vm3, %v1198_v20, -inf }
 0x8ab   :  { %1226 = vmax.xlane.f32.xlu0 %v1225_v22  ;;  %v1207_v23 = vpop.f32.mrf.mxu1 }
 0x8ac   :  { %v1231_v26 = vsel %vm535_vm3, %v1213_v3, -inf  ;;  %v1208_v27 = vadd.f32 %v1207_v23, %v6455_v58 }
 0x8ad   :  { %1232 = vmax.xlane.f32.xlu1 %v1231_v26 }
 0x8ae   :  { %v1228_v48 = vsel %vm535_vm3, %v1208_v27, -inf }
 0x8af   :  { %1223 = vmax.xlane.f32.xlu0 %v1222_v29 }
 0x8b3   :  { %1229 = vmax.xlane.f32.xlu0 %v1228_v48 }
 0x8be   :  { %1429 = vrot.lane.b32.xlu1 %v6371_v12, %s6166_s21 }
 0x8c9   :  { %1431 = vrot.lane.b32.xlu0 %v6365_v11, %s6166_s21 }
 0x92e   :  { %v1221_v52 = vpop.xlane.xlu1 %1220 }
 0x92f   :  { %v1235_v53 = vsub.f32 %v1193_v6, %v1221_v52 }
 0x930   :  { %v1218_v54 = vpop.xlane.xlu0 %1217 }
 0x931   :  { %v1242_v40 = vmul.f32 1.442695, %v1235_v53  ;;  %v1234_v57 = vsub.f32 %v1188_v13, %v1218_v54 }
 0x933   :  { %5934 = vpow2.f32 %v1242_v40  ;;  %v1240_v59 = vmul.f32 1.442695, %v1234_v57 }
 0x934   :  { %v1227_v60 = vpop.xlane.xlu0 %1226 }
 0x935   :  { %5936 = vpow2.f32 %v1240_v59  ;;  %v1237_v47 = vsub.f32 %v1203_v16, %v1227_v60 }
 0x936   :  { %v1233_v23 = vpop.xlane.xlu1 %1232 }
 0x937   :  { %v1246_v0 = vmul.f32 1.442695, %v1237_v47  ;;  %v1239_v26 = vsub.f32 %v1213_v3, %v1233_v23 }
 0x938   :  { %v1224_v46 = vpop.xlane.xlu0 %1223 }
 0x939   :  { %5938 = vpow2.f32 %v1246_v0  ;;  %v1236_v5 = vsub.f32 %v1198_v20, %v1224_v46  ;;  %v1250_v48 = vmul.f32 1.442695, %v1239_v26 }
 0x93a   :  { %v1430_v3 = vpop.permute.xlu1 %1429 }
 0x93b   :  { %v1244_v8 = vmul.f32 1.442695, %v1236_v5 }
 0x93c   :  { %v1230_v20 = vpop.xlane.xlu0 %1229 }
 0x93d   :  { %5940 = vpow2.f32 %v1244_v8  ;;  %v1238_v22 = vsub.f32 %v1208_v27, %v1230_v20 }
 0x93f   :  { %v1248_v29 = vmul.f32 1.442695, %v1238_v22 }
 0x940   :  { %v5935_v14 = vpop.eup %5934  ;;  %v1432_v27 = vpop.permute.xlu0 %1431 }
 0x941   :  { %v1255_v15 = vsel %vm535_vm3, %v5935_v14, 0.0  ;;  %5942 = vpow2.f32 %v1248_v29 }
 0x942   :  { %v5937_v17 = vpop.eup %5936  ;;  %1256 = vadd.xlane.f32.xlu1 %v1255_v15  ;;  %5944 = vpow2.f32 %v1250_v48 }
 0x943   :  { %v1252_v6 = vsel %vm535_vm3, %v5937_v17, 0.0 }
 0x944   :  { %1253 = vadd.xlane.f32.xlu0 %v1252_v6 }
 0x946   :  { %v5939_v13 = vpop.eup %5938 }
 0x947   :  { %v1261_v19 = vsel %vm535_vm3, %v5939_v13, 0.0 }
 0x948   :  { %1262 = vadd.xlane.f32.xlu1 %v1261_v19 }
 0x94a   :  { %v5941_v35 = vpop.eup %5940 }
 0x94b   :  { %v1258_v16 = vsel %vm535_vm3, %v5941_v35, 0.0 }
 0x94c   :  { %1259 = vadd.xlane.f32.xlu0 %v1258_v16 }
 0x94e   :  { %v5943_v52 = vpop.eup %5942 }
 0x94f   :  { %v1264_v53 = vsel %vm535_vm3, %v5943_v52, 0.0  ;;  %v5945_v54 = vpop.eup %5944 }
 0x950   :  { %v1267_v40 = vsel %vm535_vm3, %v5945_v54, 0.0 }
 0x959   :  { %1425 = vrot.lane.b32.xlu1 %v6351_v4, %s6166_s21 }
 0x962   :  { %1427 = vrot.lane.b32.xlu0 %v6361_v10, %s6166_s21 }
 0x97d   :  { %1265 = vadd.xlane.f32.xlu1 %v1264_v53 }
 0x981   :  { %1268 = vadd.xlane.f32.xlu0 %v1267_v40 }
 0x98e   :  { %1415 = vrot.lane.b32.xlu1 %v6361_v10, %s6167_s22 }
 0x992   :  { %1419 = vrot.lane.b32.xlu1 %v6365_v11, %s6167_s22 }
 0x996   :  { %1423 = vrot.lane.b32.xlu1 %v6355_v7, %s6167_s22 }
 0x997   :  { %1413 = vrot.lane.b32.xlu0 %v6351_v4, %s6167_s22 }
 0x99b   :  { %1417 = vrot.lane.b32.xlu0 %v6371_v12, %s6167_s22 }
 0x99f   :  { %1421 = vrot.lane.b32.xlu0 %v6357_v9, %s6167_s22 }
 0x9cb   :  { %v1257_v57 = vpop.xlane.xlu1 %1256 }
 0x9cc   :  { %5946 = vrcp.f32 %v1257_v57 }
 0x9cd   :  { %v1254_v59 = vpop.xlane.xlu0 %1253 }
 0x9ce   :  { %5948 = vrcp.f32 %v1254_v59 }
 0x9d1   :  { %v1263_v60 = vpop.xlane.xlu1 %1262 }
 0x9d2   :  { %5950 = vrcp.f32 %v1263_v60 }
 0x9d5   :  { %v1260_v47 = vpop.xlane.xlu0 %1259 }
 0x9d6   :  { %5952 = vrcp.f32 %v1260_v47 }
 0x9d9   :  { %v5947_v0 = vpop.eup %5946 }
 0x9da   :  { %v1273_v8 = vmul.f32 %v5947_v0, %v5935_v14  ;;  %v1426_v14 = vpop.permute.xlu1 %1425 }
 0x9db   :  { %v5949_v46 = vpop.eup %5948 }
 0x9dc   :  { %v1271_v5 = vmul.f32 %v5949_v46, %v5937_v17 }
 0x9de   :  { %5457 = vmatprep.mubr.msk.f32.mxu0 %vm535_vm3, %v1271_v5 }
 0x9df   :  { %5458 = vmatmul.mubr.msk.f32.vlgmr.msra.gmra.mxu0 %vm535_vm3, %v1273_v8  ;;  %v5951_v15 = vpop.eup %5950 }
 0x9e0   :  { %5467 = vmatpush3.xpose.msk.msra.mxu0 %vm415_vm2, %v6644_v55  ;;  %v1277_v17 = vmul.f32 %v5951_v15, %v5939_v13  ;;  %v1428_v55 = vpop.permute.xlu0 %1427 }
 0x9e1   :  { %5468 = vmatprep.subr.msk.mxu0 %vm415_vm2, %v6677_v49 }
 0x9e3   :  { %v5953_v6 = vpop.eup %5952 }
 0x9e4   :  { %5469 = vmatpush3.xpose.msk.msra.mxu0 %vm415_vm2, %v6677_v49  ;;  %v1275_v19 = vmul.f32 %v5953_v6, %v5941_v35 }
 0x9e5   :  { %5470 = vmatprep.subr.msk.mxu0 %vm415_vm2, %v1432_v27 }
 0x9e6   :  { %5460 = vmatprep.mubr.msk.f32.mxu0 %vm535_vm3, %v1275_v19 }
 0x9e7   :  { %5461 = vmatmul.mubr.msk.f32.gmra.mxu0 %vm535_vm3, %v1277_v17 }
 0x9e8   :  { %5471 = vmatpush3.xpose.msk.msra.mxu0 %vm415_vm2, %v1432_v27 }
 0x9e9   :  { %5472 = vmatprep.subr.msk.mxu0 %vm415_vm2, %v1430_v3 }
 0x9ec   :  { %5473 = vmatpush3.xpose.msk.msra.mxu0 %vm415_vm2, %v1430_v3 }
 0x9ed   :  { %5474 = vmatprep.subr.msk.mxu0 %vm415_vm2, %v1428_v55 }
 0x9f0   :  { %5475 = vmatpush3.xpose.msk.msra.mxu0 %vm415_vm2, %v1428_v55 }
 0x9f1   :  { %5476 = vmatprep.subr.msk.mxu0 %vm415_vm2, %v1426_v14 }
 0x9f4   :  { %5477 = vmatpush3.xpose.msk.msra.mxu0 %vm415_vm2, %v1426_v14 }
 0xa06   :  { %v1266_v49 = vpop.xlane.xlu1 %1265 }
 0xa07   :  { %5954 = vrcp.f32 %v1266_v49 }
 0xa0a   :  { %v1269_v13 = vpop.xlane.xlu0 %1268  ;;  %v1416_v26 = vpop.permute.xlu1 %1415 }
 0xa0b   :  { %5956 = vrcp.f32 %v1269_v13 }
 0xa0e   :  { %v1414_v20 = vpop.permute.xlu0 %1413  ;;  %v1420_v48 = vpop.permute.xlu1 %1419 }
 0xa12   :  { %v1418_v29 = vpop.permute.xlu0 %1417 }
 0xa14   :  { %v5955_v35 = vpop.eup %5954 }
 0xa15   :  { %v1279_v16 = vmul.f32 %v5955_v35, %v5943_v52  ;;  %v1424_v52 = vpop.permute.xlu1 %1423 }
 0xa16   :  { %v1422_v53 = vpop.permute.xlu0 %1421 }
 0xa17   :  { %5463 = vmatprep.mubr.msk.f32.mxu0 %vm535_vm3, %v1279_v16 }
 0xa18   :  { %v5957_v22 = vpop.eup %5956 }
 0xa19   :  { %v1281_v23 = vmul.f32 %v5957_v22, %v5945_v54 }
 0xa1b   :  { %5464 = vmatmul.mubr.msk.f32.gmra.mxu0 %vm535_vm3, %v1281_v23 }
 0xa1c   :  { %5478 = vmatprep.mubr.msk.f32.mxu0 %vm415_vm2, %v1414_v20 }
 0xa1f   :  { %5479 = vmatmul.mubr.msk.f32.vlgmr.msra.gmra.mxu0 %vm415_vm2, %v1416_v26 }
 0xa20   :  { %5481 = vmatprep.mubr.msk.f32.mxu0 %vm415_vm2, %v1418_v29 }
 0xa23   :  { %5482 = vmatmul.mubr.msk.f32.gmra.mxu0 %vm415_vm2, %v1420_v48 }
 0xa24   :  { %5484 = vmatprep.mubr.msk.f32.mxu0 %vm415_vm2, %v1422_v53 }
 0xa27   :  { %5485 = vmatmul.mubr.msk.f32.gmra.mxu0 %vm415_vm2, %v1424_v52 }
 0xa9f   :  { %v6727_v54 = vpop.f32.mrf.mxu0 }
 0xaa1   :  { %v6729_v40 = vpop.f32.mrf.mxu0 }
 0xaa7   :  { %v6731_v3 = vpop.f32.mrf.mxu0 }
 0xaa9   :  { %v6733_v27 = vpop.f32.mrf.mxu0 }
 0xadb   :  { %v6735_v57 = vpop.f32.mrf.mxu0 }
 0xadd   :  { %v6737_v59 = vpop.f32.mrf.mxu0 }
 0xadf   :  { %v5480_v60 = vpop.f32.mrf.mxu0 }
 0xae0   :  { %v1533_v47 = vadd.f32 %v5480_v60, %v6422_v32 }
 0xae1   :  { %v1527_v0 = vpop.f32.mrf.mxu0 }
 0xae2   :  { %v1528_v46 = vadd.f32 %v1527_v0, %v6427_v37  ;;  %v1559_v5 = vsel %vm535_vm3, %v1533_v47, -inf }
 0xae3   :  { %1560 = vmax.xlane.f32.xlu1 %v1559_v5  ;;  %v5483_v8 = vpop.f32.mrf.mxu0 }
 0xae4   :  { %v1543_v15 = vadd.f32 %v5483_v8, %v6433_v41  ;;  %v1556_v6 = vsel %vm535_vm3, %v1528_v46, -inf }
 0xae5   :  { %1557 = vmax.xlane.f32.xlu0 %v1556_v6  ;;  %v1537_v19 = vpop.f32.mrf.mxu0 }
 0xae6   :  { %v1538_v55 = vadd.f32 %v1537_v19, %v6442_v50  ;;  %v1565_v32 = vsel %vm535_vm3, %v1543_v15, -inf }
 0xae7   :  { %v5486_v17 = vpop.f32.mrf.mxu0 }
 0xae8   :  { %v1553_v14 = vadd.f32 %v5486_v17, %v6447_v51  ;;  %v1562_v41 = vsel %vm535_vm3, %v1538_v55, -inf }
 0xae9   :  { %1566 = vmax.xlane.f32.xlu0 %v1565_v32  ;;  %v1547_v49 = vpop.f32.mrf.mxu0 }
 0xaea   :  { %v1571_v37 = vsel %vm535_vm3, %v1553_v14, -inf  ;;  %v1548_v13 = vadd.f32 %v1547_v49, %v6455_v58 }
 0xaeb   :  { %1572 = vmax.xlane.f32.xlu1 %v1571_v37 }
 0xaec   :  { %v1568_v35 = vsel %vm535_vm3, %v1548_v13, -inf }
 0xaed   :  { %1563 = vmax.xlane.f32.xlu0 %v1562_v41 }
 0xaf1   :  { %1569 = vmax.xlane.f32.xlu0 %v1568_v35 }
 0xafc   :  { %1630 = vrot.lane.b32.xlu1 %v6357_v9, %s6168_s23 }
 0xb00   :  { %1628 = vrot.lane.b32.xlu1 %v6365_v11, %s6168_s23 }
 0xb04   :  { %1626 = vrot.lane.b32.xlu1 %v6371_v12, %s6168_s23 }
 0xb07   :  { %1632 = vrot.lane.b32.xlu0 %v6355_v7, %s6168_s23 }
 0xb6c   :  { %v1561_v50 = vpop.xlane.xlu1 %1560 }
 0xb6d   :  { %v1575_v51 = vsub.f32 %v1533_v47, %v1561_v50 }
 0xb6e   :  { %v1558_v58 = vpop.xlane.xlu0 %1557 }
 0xb6f   :  { %v1582_v16 = vmul.f32 1.442695, %v1575_v51  ;;  %v1574_v20 = vsub.f32 %v1528_v46, %v1558_v58 }
 0xb71   :  { %5958 = vpow2.f32 %v1582_v16  ;;  %v1580_v22 = vmul.f32 1.442695, %v1574_v20 }
 0xb72   :  { %v1567_v23 = vpop.xlane.xlu0 %1566 }
 0xb73   :  { %5960 = vpow2.f32 %v1580_v22  ;;  %v1577_v26 = vsub.f32 %v1543_v15, %v1567_v23  ;;  %v158_v23 = vld [vmem:[%s7928_s1 + $0xd8] sm:$0xff] }
 0xb74   :  { %v1573_v9 = vpop.xlane.xlu1 %1572 }
 0xb75   :  { %v1586_v29 = vmul.f32 1.442695, %v1577_v26  ;;  %v1579_v48 = vsub.f32 %v1553_v14, %v1573_v9  ;;  %v157_v26 = vld [vmem:[%s7928_s1 + $0xd0] sm:$0xff]  ;;  %v156_v9 = vld [vmem:[%s7928_s1 + $0xc8] sm:$0xff] }
 0xb76   :  { %v1564_v11 = vpop.xlane.xlu0 %1563 }
 0xb77   :  { %5962 = vpow2.f32 %v1586_v29  ;;  %v1590_v53 = vmul.f32 1.442695, %v1579_v48  ;;  %v1576_v12 = vsub.f32 %v1538_v55, %v1564_v11  ;;  %v155_v29 = vld [vmem:[%s7928_s1 + $0xc0] sm:$0xff] }
 0xb78   :  { %v1631_v52 = vpop.permute.xlu1 %1630 }
 0xb79   :  { %5964 = vpow2.f32 %v1590_v53  ;;  %v1584_v7 = vmul.f32 1.442695, %v1576_v12 }
 0xb7a   :  { %v1570_v60 = vpop.xlane.xlu0 %1569 }
 0xb7b   :  { %5966 = vpow2.f32 %v1584_v7  ;;  %v1578_v47 = vsub.f32 %v1548_v13, %v1570_v60 }
 0xb7c   :  { %v1629_v5 = vpop.permute.xlu1 %1628 }
 0xb7d   :  { %v1588_v0 = vmul.f32 1.442695, %v1578_v47 }
 0xb7e   :  { %v6759_v46 = vpop.eup %5958  ;;  %v1633_v8 = vpop.permute.xlu0 %1632 }
 0xb7f   :  { %5968 = vpow2.f32 %v1588_v0  ;;  %5487 = vmatprep.subr.mxu1 %v1633_v8  ;;  %v1595_v15 = vsel %vm535_vm3, %v6759_v46, 0.0 }
 0xb80   :  { %v5961_v6 = vpop.eup %5960  ;;  %5488 = vmatpush3.msra.mxu1 %v1633_v8  ;;  %1596 = vadd.xlane.f32.xlu1 %v1595_v15  ;;  %v1627_v55 = vpop.permute.xlu1 %1626 }
 0xb81   :  { %5489 = vmatprep.subr.mxu1 %v1631_v52  ;;  %v1592_v19 = vsel %vm535_vm3, %v5961_v6, 0.0 }
 0xb82   :  { %1593 = vadd.xlane.f32.xlu0 %v1592_v19  ;;  %5490 = vmatpush3.msra.mxu1 %v1631_v52 }
 0xb83   :  { %5491 = vmatprep.subr.mxu1 %v1629_v5 }
 0xb84   :  { %v5963_v17 = vpop.eup %5962  ;;  %5492 = vmatpush3.msra.mxu1 %v1629_v5 }
 0xb85   :  { %5493 = vmatprep.subr.mxu1 %v1627_v55  ;;  %v1601_v14 = vsel %vm535_vm3, %v5963_v17, 0.0 }
 0xb86   :  { %v5965_v32 = vpop.eup %5964  ;;  %1602 = vadd.xlane.f32.xlu1 %v1601_v14  ;;  %5494 = vmatpush3.msra.mxu1 %v1627_v55 }
 0xb87   :  { %v1607_v13 = vsel %vm535_vm3, %v5965_v32, 0.0 }
 0xb88   :  { %v5967_v49 = vpop.eup %5966 }
 0xb89   :  { %v1598_v37 = vsel %vm535_vm3, %v5967_v49, 0.0 }
 0xb8a   :  { %1599 = vadd.xlane.f32.xlu0 %v1598_v37  ;;  %1608 = vadd.xlane.f32.xlu1 %v1607_v13 }
 0xb8c   :  { %v5969_v41 = vpop.eup %5968 }
 0xb8d   :  { %v1604_v35 = vsel %vm535_vm3, %v5969_v41, 0.0 }
 0xb8e   :  { %1605 = vadd.xlane.f32.xlu0 %v1604_v35 }
 0xb9b   :  { %1622 = vrot.lane.b32.xlu1 %v6351_v4, %s6168_s23 }
 0xb9f   :  { %1761 = vrot.lane.b32.xlu1 %v6649_v1, %s6169_s24 }
 0xba3   :  { %1785 = vrot.lane.b32.xlu1 %v6727_v54, %s6170_s25 }
 0xba4   :  { %1624 = vrot.lane.b32.xlu0 %v6361_v10, %s6168_s23 }
 0xba7   :  { %1765 = vrot.lane.b32.xlu1 %v6653_v30, %s6169_s24 }
 0xba8   :  { %1759 = vrot.lane.b32.xlu0 %v6651_v62, %s6169_s24 }
 0xbab   :  { %1789 = vrot.lane.b32.xlu1 %v6731_v3, %s6170_s25 }
 0xbac   :  { %1783 = vrot.lane.b32.xlu0 %v6729_v40, %s6170_s25 }
 0xbaf   :  { %1769 = vrot.lane.b32.xlu1 %v6657_v61, %s6169_s24 }
 0xbb0   :  { %1763 = vrot.lane.b32.xlu0 %v6655_v2, %s6169_s24 }
 0xbb3   :  { %1793 = vrot.lane.b32.xlu1 %v6735_v57, %s6170_s25 }
 0xbb4   :  { %1787 = vrot.lane.b32.xlu0 %v6733_v27, %s6170_s25 }
 0xbb8   :  { %1767 = vrot.lane.b32.xlu0 %v6659_v63, %s6169_s24 }
 0xbbc   :  { %1791 = vrot.lane.b32.xlu0 %v6737_v59, %s6170_s25 }
 0xc09   :  { %v1597_v4 = vpop.xlane.xlu1 %1596 }
 0xc0b   :  { %v1594_v10 = vpop.xlane.xlu0 %1593 }
 0xc0c   :  { %5970 = vrcp.f32 %v1594_v10 }
 0xc0d   :  { %5972 = vrcp.f32 %v1597_v4 }
 0xc0f   :  { %v1603_v1 = vpop.xlane.xlu1 %1602 }
 0xc10   :  { %5974 = vrcp.f32 %v1603_v1 }
 0xc13   :  { %v1600_v62 = vpop.xlane.xlu0 %1599  ;;  %v1609_v30 = vpop.xlane.xlu1 %1608 }
 0xc14   :  { %5976 = vrcp.f32 %v1600_v62 }
 0xc15   :  { %5978 = vrcp.f32 %v1609_v30 }
 0xc17   :  { %v1606_v2 = vpop.xlane.xlu0 %1605  ;;  %v1623_v63 = vpop.permute.xlu1 %1622 }
 0xc18   :  { %5980 = vrcp.f32 %v1606_v2 }
 0xc19   :  { %v5971_v61 = vpop.eup %5970 }
 0xc1a   :  { %v1611_v54 = vmul.f32 %v5971_v61, %v5961_v6  ;;  %v5973_v40 = vpop.eup %5972 }
 0xc1b   :  { %v1625_v3 = vpop.permute.xlu0 %1624  ;;  %v1613_v27 = vmul.f32 %v5973_v40, %v6759_v46  ;;  %v1762_v60 = vpop.permute.xlu1 %1761 }
 0xc1c   :  { %5495 = vmatprep.subr.mxu1 %v1625_v3  ;;  %5499 = vmatprep.mubr.msk.f32.mxu1 %vm535_vm3, %v1611_v54  ;;  %v1826_v37 = vsel %vm415_vm2, %v6543_v38, %v1762_v60 }
 0xc1d   :  { %5496 = vmatpush3.msra.mxu1 %v1625_v3  ;;  %v5975_v57 = vpop.eup %5974 }
 0xc1e   :  { %5497 = vmatprep.subr.mxu1 %v1623_v63  ;;  %v1617_v51 = vmul.f32 %v5975_v57, %v5963_v17 }
 0xc1f   :  { %5498 = vmatpush3.msra.mxu1 %v1623_v63  ;;  %v1760_v47 = vpop.permute.xlu0 %1759  ;;  %v1786_v0 = vpop.permute.xlu1 %1785 }
 0xc20   :  { %5500 = vmatmul.mubr.msk.f32.vlgmr.msra.gmra.mxu1 %vm535_vm3, %v1613_v27  ;;  %5508 = vmatprep.subr.mxu1 %v158_v23  ;;  %v1833_v35 = vsel %vm1831_vm4, %v1826_v37, %v1786_v0 }
 0xc21   :  { %v5977_v59 = vpop.eup %5976  ;;  %5509 = vmatpush3.msra.mxu1 %v158_v23 }
 0xc22   :  { %v1615_v50 = vmul.f32 %v5977_v59, %v5967_v49  ;;  %v5979_v58 = vpop.eup %5978  ;;  %5510 = vmatprep.subr.mxu1 %v157_v26  ;;  %v1825_v49 = vsel %vm415_vm2, %v6545_v39, %v1760_v47 }
 0xc23   :  { %v1621_v22 = vmul.f32 %v5979_v58, %v5965_v32  ;;  %5511 = vmatpush3.msra.mxu1 %v157_v26  ;;  %v1784_v46 = vpop.permute.xlu0 %1783  ;;  %v1766_v5 = vpop.permute.xlu1 %1765 }
 0xc24   :  { %5502 = vmatprep.mubr.msk.f32.mxu1 %vm535_vm3, %v1615_v50  ;;  %5512 = vmatprep.subr.mxu1 %v156_v9  ;;  %v1832_v13 = vsel %vm1831_vm4, %v1825_v49, %v1784_v46  ;;  %v1828_v38 = vsel %vm415_vm2, %v6547_v42, %v1766_v5  ;;  %v6855_v50 = vld [vmem:[%s7928_s1 + $0x180] sm:$0xff] }
 0xc25   :  { %v5981_v16 = vpop.eup %5980  ;;  %5503 = vmatmul.mubr.msk.f32.gmra.mxu1 %vm535_vm3, %v1617_v51 }
 0xc26   :  { %v1619_v20 = vmul.f32 %v5981_v16, %v5969_v41  ;;  %5513 = vmatpush3.msra.mxu1 %v156_v9 }
 0xc27   :  { %5514 = vmatprep.subr.mxu1 %v155_v29  ;;  %v1764_v8 = vpop.permute.xlu0 %1763  ;;  %v1790_v15 = vpop.permute.xlu1 %1789 }
 0xc28   :  { %5505 = vmatprep.mubr.msk.f32.mxu1 %vm535_vm3, %v1619_v20  ;;  %5515 = vmatpush3.msra.mxu1 %v155_v29  ;;  %v1827_v39 = vsel %vm415_vm2, %v6549_v43, %v1764_v8  ;;  %v1835_v2 = vsel %vm1831_vm4, %v1828_v38, %v1790_v15 }
 0xc29   :  { %5506 = vmatmul.mubr.msk.f32.gmra.mxu1 %vm535_vm3, %v1621_v22 }
 0xc2b   :  { %v1788_v6 = vpop.permute.xlu0 %1787  ;;  %v1770_v19 = vpop.permute.xlu1 %1769 }
 0xc2c   :  { %v1834_v62 = vsel %vm1831_vm4, %v1827_v39, %v1788_v6  ;;  %v1830_v42 = vsel %vm415_vm2, %v6551_v44, %v1770_v19 }
 0xc2f   :  { %v1768_v17 = vpop.permute.xlu0 %1767  ;;  %v1794_v55 = vpop.permute.xlu1 %1793 }
 0xc30   :  { %v1829_v40 = vsel %vm415_vm2, %v6553_v45, %v1768_v17  ;;  %v1837_v27 = vsel %vm1831_vm4, %v1830_v42, %v1794_v55  ;;  %v1966_v45 = vsub.s32 5, %v6325_v24 }
 0xc32   :  { %v1967_v44 = vrot.slane %v6855_v50, %v1966_v45 }
 0xc33   :  { %v1792_v14 = vpop.permute.xlu0 %1791 }
 0xc34   :  { %v1836_v43 = vsel %vm1831_vm4, %v1829_v40, %v1792_v14 }
 0xce0   :  { %v5501_v48 = vpop.f32.mrf.mxu1 }
 0xce1   :  { %1809 = vrot.lane.b32.xlu1 %v5501_v48, %s6171_s9 }
 0xce2   :  { %v1724_v11 = vpop.f32.mrf.mxu1 }
 0xce3   :  { %1807 = vrot.lane.b32.xlu0 %v1724_v11, %s6171_s9 }
 0xce5   :  { %v5504_v53 = vpop.f32.mrf.mxu1 }
 0xce6   :  { %1813 = vrot.lane.b32.xlu1 %v5504_v53, %s6171_s9 }
 0xce7   :  { %v1734_v12 = vpop.f32.mrf.mxu1 }
 0xce8   :  { %1811 = vrot.lane.b32.xlu0 %v1734_v12, %s6171_s9 }
 0xce9   :  { %v5507_v52 = vpop.f32.mrf.mxu1 }
 0xcea   :  { %1817 = vrot.lane.b32.xlu1 %v5507_v52, %s6171_s9 }
 0xceb   :  { %v1744_v7 = vpop.f32.mrf.mxu1 }
 0xcec   :  { %1815 = vrot.lane.b32.xlu0 %v1744_v7, %s6171_s9 }
 0xd53   :  { %v1810_v32 = vpop.permute.xlu1 %1809 }
 0xd54   :  { %v1840_v10 = vsel %vm1838_vm5, %v1833_v35, %v1810_v32 }
 0xd55   :  { %v1808_v41 = vpop.permute.xlu0 %1807 }
 0xd56   :  { %v1839_v4 = vsel %vm1838_vm5, %v1832_v13, %v1808_v41 }
 0xd57   :  { %5516 = vmatprep.mubr.msk.f32.mxu1 %vm180_vm1, %v1839_v4 }
 0xd58   :  { %5517 = vmatmul.mubr.msk.f32.vlgmr.msra.gmra.mxu1 %vm180_vm1, %v1840_v10  ;;  %v1814_v1 = vpop.permute.xlu1 %1813 }
 0xd59   :  { %v1842_v54 = vsel %vm1838_vm5, %v1835_v2, %v1814_v1 }
 0xd5a   :  { %v1812_v30 = vpop.permute.xlu0 %1811 }
 0xd5b   :  { %v1841_v61 = vsel %vm1838_vm5, %v1834_v62, %v1812_v30 }
 0xd5c   :  { %5519 = vmatprep.mubr.msk.f32.mxu1 %vm180_vm1, %v1841_v61  ;;  %v1818_v3 = vpop.permute.xlu1 %1817 }
 0xd5d   :  { %5520 = vmatmul.mubr.msk.f32.gmra.mxu1 %vm180_vm1, %v1842_v54  ;;  %v1844_v59 = vsel %vm1838_vm5, %v1837_v27, %v1818_v3  ;;  %v162_v27 = vld [vmem:[%s7928_s1 + $0xf8] sm:$0xff] }
 0xd5e   :  { %v1816_v63 = vpop.permute.xlu0 %1815  ;;  %5525 = vmatprep.subr.mxu0 %v162_v27 }
 0xd5f   :  { %v1843_v57 = vsel %vm1838_vm5, %v1836_v43, %v1816_v63  ;;  %5526 = vmatpush3.msra.mxu0 %v162_v27 }
 0xd60   :  { %5522 = vmatprep.mubr.msk.f32.mxu1 %vm180_vm1, %v1843_v57  ;;  %v161_v57 = vld [vmem:[%s7928_s1 + $0xf0] sm:$0xff] }
 0xd61   :  { %5523 = vmatmul.mubr.msk.f32.gmra.mxu1 %vm180_vm1, %v1844_v59  ;;  %v160_v59 = vld [vmem:[%s7928_s1 + $0xe8] sm:$0xff]  ;;  %5527 = vmatprep.subr.mxu0 %v161_v57 }
 0xd62   :  { %5528 = vmatpush3.msra.mxu0 %v161_v57  ;;  %v175_v57 = vld [vmem:[%s7928_s1 + $0x160] sm:$0xff] }
 0xd63   :  { %5529 = vmatprep.subr.mxu0 %v160_v59 }
 0xd64   :  { %5530 = vmatpush3.msra.mxu0 %v160_v59  ;;  %v174_v59 = vld [vmem:[%s7928_s1 + $0x158] sm:$0xff] }
 0xe18   :  { %v5518_v51 = vpop.f32.mrf.mxu1 }
 0xe19   :  { %v1959_v58 = vadd.f32 %v5518_v51, %v6246_v21 }
 0xe1a   :  { %v1929_v16 = vpop.f32.mrf.mxu1 }
 0xe1b   :  { %v6861_v20 = vadd.f32 %v1967_v44, %v1959_v58  ;;  %v1958_v22 = vadd.f32 %v1929_v16, %v6241_v18 }
 0xe1d   :  { %v6864_v23 = vadd.f32 %v1967_v44, %v1958_v22  ;;  %v5521_v26 = vpop.f32.mrf.mxu1  ;;  %v1977_v9 = vsel %vm180_vm1, %v6861_v20, 0.0 }
 0xe1e   :  { %v1961_v29 = vadd.f32 %v5521_v26, %v6258_v28  ;;  %1978 = vadd.xlane.f32.xlu1 %v1977_v9 }
 0xe1f   :  { %v1939_v48 = vpop.f32.mrf.mxu1  ;;  %v1974_v11 = vsel %vm180_vm1, %v6864_v23, 0.0 }
 0xe20   :  { %v6871_v53 = vadd.f32 %v1967_v44, %v1961_v29  ;;  %v1960_v21 = vadd.f32 %v1939_v48, %v6253_v25  ;;  %1975 = vadd.xlane.f32.xlu0 %v1974_v11 }
 0xe21   :  { %v5524_v12 = vpop.f32.mrf.mxu1 }
 0xe22   :  { %v1963_v18 = vadd.f32 %v5524_v12, %v6269_v34  ;;  %v1983_v52 = vsel %vm180_vm1, %v6871_v53, 0.0  ;;  %v6877_v7 = vadd.f32 %v1967_v44, %v1960_v21 }
 0xe23   :  { %v1949_v60 = vpop.f32.mrf.mxu1 }
 0xe24   :  { %v6879_v28 = vadd.f32 %v1967_v44, %v1963_v18  ;;  %v1962_v47 = vadd.f32 %v1949_v60, %v6267_v33  ;;  %1984 = vadd.xlane.f32.xlu0 %v1983_v52  ;;  %v1980_v25 = vsel %vm180_vm1, %v6877_v7, 0.0 }
 0xe26   :  { %v1989_v0 = vsel %vm180_vm1, %v6879_v28, 0.0  ;;  %v6884_v46 = vadd.f32 %v1967_v44, %v1962_v47  ;;  %v159_v44 = vld [vmem:[%s7928_s1 + $0xe0] sm:$0xff] }
 0xe27   :  { %1990 = vadd.xlane.f32.xlu1 %v1989_v0  ;;  %5531 = vmatprep.subr.mxu0 %v159_v44  ;;  %v2054_v0 = vsub.s32 2, %v6325_v24 }
 0xe28   :  { %1981 = vadd.xlane.f32.xlu0 %v1980_v25  ;;  %v1986_v34 = vsel %vm180_vm1, %v6884_v46, 0.0  ;;  %5532 = vmatpush3.msra.mxu0 %v159_v44  ;;  %v173_v44 = vld [vmem:[%s7928_s1 + $0x150] sm:$0xff] }
 0xe2c   :  { %1987 = vadd.xlane.f32.xlu0 %v1986_v34 }
 0xea7   :  { %v1979_v5 = vpop.xlane.xlu1 %1978 }
 0xea8   :  { %v1993_v8 = vmul.f32 0.03125, %v1979_v5 }
 0xea9   :  { %v1976_v15 = vpop.xlane.xlu0 %1975 }
 0xeaa   :  { %v6891_v33 = vsub.f32 %v6861_v20, %v1993_v8  ;;  %v1992_v6 = vmul.f32 0.03125, %v1976_v15  ;;  %v2055_v15 = vrot.slane %v6855_v50, %v2054_v0 }
 0xeac   :  { %v6894_v19 = vsub.f32 %v6864_v23, %v1992_v6  ;;  %v2005_v17 = vmul.f32 %v6891_v33, %v6891_v33  ;;  %v2064_v6 = vsub.s32 3, %v6325_v24 }
 0xead   :  { %v1985_v55 = vpop.xlane.xlu0 %1984 }
 0xeae   :  { %v1995_v14 = vmul.f32 0.03125, %v1985_v55  ;;  %v2013_v32 = vsel %vm180_vm1, %v2005_v17, 0.0  ;;  %v2004_v49 = vmul.f32 %v6894_v19, %v6894_v19 }
 0xeaf   :  { %2014 = vadd.xlane.f32.xlu1 %v2013_v32 }
 0xeb0   :  { %v6902_v37 = vsub.f32 %v6871_v53, %v1995_v14  ;;  %v1991_v13 = vpop.xlane.xlu1 %1990  ;;  %v2010_v41 = vsel %vm180_vm1, %v2004_v49, 0.0  ;;  %v2065_v49 = vrot.slane %v6855_v50, %v2064_v6 }
 0xeb1   :  { %v1997_v35 = vmul.f32 0.03125, %v1991_v13  ;;  %v1982_v4 = vpop.xlane.xlu0 %1981  ;;  %2011 = vadd.xlane.f32.xlu0 %v2010_v41 }
 0xeb2   :  { %v1994_v10 = vmul.f32 0.03125, %v1982_v4  ;;  %v2007_v1 = vmul.f32 %v6902_v37, %v6902_v37 }
 0xeb3   :  { %v6908_v39 = vsub.f32 %v6879_v28, %v1997_v35 }
 0xeb4   :  { %v6911_v38 = vsub.f32 %v6877_v7, %v1994_v10  ;;  %v2019_v62 = vsel %vm180_vm1, %v2007_v1, 0.0 }
 0xeb5   :  { %v1988_v30 = vpop.xlane.xlu0 %1987  ;;  %2020 = vadd.xlane.f32.xlu1 %v2019_v62  ;;  %v2009_v2 = vmul.f32 %v6908_v39, %v6908_v39 }
 0xeb6   :  { %v1996_v61 = vmul.f32 0.03125, %v1988_v30  ;;  %v2006_v54 = vmul.f32 %v6911_v38, %v6911_v38 }
 0xeb7   :  { %v2025_v40 = vsel %vm180_vm1, %v2009_v2, 0.0 }
 0xeb8   :  { %v6920_v3 = vsub.f32 %v6884_v46, %v1996_v61  ;;  %v2016_v42 = vsel %vm180_vm1, %v2006_v54, 0.0 }
 0xeb9   :  { %2017 = vadd.xlane.f32.xlu0 %v2016_v42  ;;  %2026 = vadd.xlane.f32.xlu1 %v2025_v40 }
 0xeba   :  { %v2008_v43 = vmul.f32 %v6920_v3, %v6920_v3 }
 0xebc   :  { %v2022_v63 = vsel %vm180_vm1, %v2008_v43, 0.0 }
 0xebd   :  { %2023 = vadd.xlane.f32.xlu0 %v2022_v63 }
 0xf38   :  { %v2015_v51 = vpop.xlane.xlu1 %2014 }
 0xf39   :  { %v2029_v58 = vmul.f32 0.03125, %v2015_v51  ;;  %v172_v51 = vld [vmem:[%s7928_s1 + $0x148] sm:$0xff] }
 0xf3a   :  { %v2012_v16 = vpop.xlane.xlu0 %2011 }
 0xf3b   :  { %v2035_v22 = vadd.f32 1e-05, %v2029_v58  ;;  %v2028_v26 = vmul.f32 0.03125, %v2012_v16  ;;  %v171_v58 = vld [vmem:[%s7928_s1 + $0x140] sm:$0xff]  ;;  %v170_v16 = vld [vmem:[%s7928_s1 + $0x138] sm:$0xff] }
 0xf3d   :  { %5982 = vrsqrt.f32 %v2035_v22  ;;  %v2034_v9 = vadd.f32 1e-05, %v2028_v26  ;;  %v169_v22 = vld [vmem:[%s7928_s1 + $0x130] sm:$0xff]  ;;  %v168_v26 = vld [vmem:[%s7928_s1 + $0x128] sm:$0xff] }
 0xf3e   :  { %v2021_v29 = vpop.xlane.xlu1 %2020 }
 0xf3f   :  { %5984 = vrsqrt.f32 %v2034_v9  ;;  %v2031_v48 = vmul.f32 0.03125, %v2021_v29  ;;  %v167_v9 = vld [vmem:[%s7928_s1 + $0x120] sm:$0xff]  ;;  %v166_v29 = vld [vmem:[%s7928_s1 + $0x118] sm:$0xff] }
 0xf41   :  { %v2037_v11 = vadd.f32 1e-05, %v2031_v48  ;;  %v165_v48 = vld [vmem:[%s7928_s1 + $0x110] sm:$0xff] }
 0xf42   :  { %v2018_v21 = vpop.xlane.xlu0 %2017  ;;  %v2027_v12 = vpop.xlane.xlu1 %2026 }
 0xf43   :  { %5986 = vrsqrt.f32 %v2037_v11  ;;  %v2030_v18 = vmul.f32 0.03125, %v2018_v21  ;;  %v2033_v52 = vmul.f32 0.03125, %v2027_v12  ;;  %v164_v11 = vld [vmem:[%s7928_s1 + $0x108] sm:$0xff]  ;;  %v163_v21 = vld [vmem:[%s7928_s1 + $0x100] sm:$0xff]  ;;  %v2074_v12 = vsub.s32 6, %v6325_v24 }
 0xf45   :  { %v2036_v60 = vadd.f32 1e-05, %v2030_v18  ;;  %v2039_v47 = vadd.f32 1e-05, %v2033_v52  ;;  %v2075_v18 = vrot.slane %v6855_v50, %v2074_v12 }
 0xf46   :  { %v2024_v25 = vpop.xlane.xlu0 %2023 }
 0xf47   :  { %5988 = vrsqrt.f32 %v2036_v60  ;;  %v2032_v34 = vmul.f32 0.03125, %v2024_v25 }
 0xf48   :  { %5990 = vrsqrt.f32 %v2039_v47 }
 0xf49   :  { %v2038_v5 = vadd.f32 1e-05, %v2032_v34 }
 0xf4a   :  { %v5983_v8 = vpop.eup %5982 }
 0xf4b   :  { %v2047_v17 = vmul.f32 %v5983_v8, %v6891_v33  ;;  %5992 = vrsqrt.f32 %v2038_v5 }
 0xf4c   :  { %v5985_v55 = vpop.eup %5984 }
 0xf4d   :  { %v2046_v14 = vmul.f32 %v5985_v55, %v6894_v19  ;;  %v2057_v32 = vmul.f32 %v2055_v15, %v2047_v17 }
 0xf4f   :  { %v2056_v13 = vmul.f32 %v2055_v15, %v2046_v14  ;;  %v2067_v4 = vadd.f32 %v2065_v49, %v2057_v32 }
 0xf50   :  { %v5987_v41 = vpop.eup %5986 }
 0xf51   :  { %v2066_v35 = vadd.f32 %v2065_v49, %v2056_v13  ;;  %v2049_v10 = vmul.f32 %v5987_v41, %v6902_v37 }
 0xf53   :  { %5533 = vmatprep.mubr.msk.f32.mxu0 %vm180_vm1, %v2066_v35  ;;  %v2059_v19 = vmul.f32 %v2055_v15, %v2049_v10 }
 0xf54   :  { %v5989_v1 = vpop.eup %5988  ;;  %5534 = vmatmul.mubr.msk.f32.vlgmr.msra.gmra.mxu0 %vm180_vm1, %v2067_v4 }
 0xf55   :  { %v5991_v33 = vpop.eup %5990  ;;  %v2048_v62 = vmul.f32 %v5989_v1, %v6911_v38  ;;  %v2069_v42 = vadd.f32 %v2065_v49, %v2059_v19  ;;  %v177_v38 = vld [vmem:[%s7928_s1 + $0x170] sm:$0xff] }
 0xf56   :  { %v2051_v30 = vmul.f32 %v5991_v33, %v6908_v39  ;;  %v178_v39 = vld [vmem:[%s7928_s1 + $0x178] sm:$0xff] }
 0xf57   :  { %v2058_v2 = vmul.f32 %v2055_v15, %v2048_v62  ;;  %5542 = vmatprep.subr.mxu1 %v178_v39 }
 0xf58   :  { %v5993_v61 = vpop.eup %5992  ;;  %v2061_v43 = vmul.f32 %v2055_v15, %v2051_v30  ;;  %5543 = vmatpush3.msra.mxu1 %v178_v39 }
 0xf59   :  { %v2068_v54 = vadd.f32 %v2065_v49, %v2058_v2  ;;  %v2050_v40 = vmul.f32 %v5993_v61, %v6920_v3  ;;  %5544 = vmatprep.subr.mxu1 %v177_v38  ;;  %v176_v3 = vld [vmem:[%s7928_s1 + $0x168] sm:$0xff] }
 0xf5a   :  { %v2071_v27 = vadd.f32 %v2065_v49, %v2061_v43  ;;  %5545 = vmatpush3.msra.mxu1 %v177_v38 }
 0xf5b   :  { %5536 = vmatprep.mubr.msk.f32.mxu0 %vm180_vm1, %v2068_v54  ;;  %v2060_v37 = vmul.f32 %v2055_v15, %v2050_v40  ;;  %5546 = vmatprep.subr.mxu1 %v176_v3 }
 0xf5c   :  { %5537 = vmatmul.mubr.msk.f32.gmra.mxu0 %vm180_vm1, %v2069_v42  ;;  %5547 = vmatpush3.msra.mxu1 %v176_v3 }
 0xf5d   :  { %v2070_v63 = vadd.f32 %v2065_v49, %v2060_v37  ;;  %5548 = vmatprep.subr.mxu1 %v175_v57 }
 0xf5e   :  { %5549 = vmatpush3.msra.mxu1 %v175_v57 }
 0xf5f   :  { %5539 = vmatprep.mubr.msk.f32.mxu0 %vm180_vm1, %v2070_v63  ;;  %5550 = vmatprep.subr.mxu1 %v174_v59 }
 0xf60   :  { %5540 = vmatmul.mubr.msk.f32.gmra.mxu0 %vm180_vm1, %v2071_v27  ;;  %5551 = vmatpush3.msra.mxu1 %v174_v59 }
 0xf61   :  { %5552 = vmatprep.subr.mxu1 %v173_v44 }
 0xf62   :  { %5553 = vmatpush3.msra.mxu1 %v173_v44 }
 0xf63   :  { %5554 = vmatprep.subr.mxu1 %v172_v51 }
 0xf64   :  { %5555 = vmatpush3.msra.mxu1 %v172_v51 }
 0xf65   :  { %5556 = vmatprep.subr.mxu1 %v171_v58 }
 0xf66   :  { %5557 = vmatpush3.msra.mxu1 %v171_v58 }
 0xf67   :  { %5558 = vmatprep.subr.mxu1 %v170_v16 }
 0xf68   :  { %5559 = vmatpush3.msra.mxu1 %v170_v16 }
 0xf69   :  { %5560 = vmatprep.subr.mxu1 %v169_v22 }
 0xf6a   :  { %5561 = vmatpush3.msra.mxu1 %v169_v22 }
 0xf6b   :  { %5562 = vmatprep.subr.mxu1 %v168_v26 }
 0xf6c   :  { %5563 = vmatpush3.msra.mxu1 %v168_v26 }
 0xf6d   :  { %5564 = vmatprep.subr.mxu1 %v167_v9 }
 0xf6e   :  { %5565 = vmatpush3.msra.mxu1 %v167_v9 }
 0xf6f   :  { %5566 = vmatprep.subr.mxu1 %v166_v29 }
 0xf70   :  { %5567 = vmatpush3.msra.mxu1 %v166_v29 }
 0xf71   :  { %5568 = vmatprep.subr.mxu1 %v165_v48 }
 0xf72   :  { %5569 = vmatpush3.msra.mxu1 %v165_v48 }
 0xf73   :  { %5570 = vmatprep.subr.mxu1 %v164_v11 }
 0xf74   :  { %5571 = vmatpush3.msra.mxu1 %v164_v11 }
 0xf75   :  { %5572 = vmatprep.subr.mxu1 %v163_v21 }
 0xf76   :  { %5573 = vmatpush3.msra.mxu1 %v163_v21 }
0x1014   :  { %v5535_v52 = vpop.f32.mrf.mxu0 }
0x1015   :  { %v2166_v60 = vadd.f32 %v5535_v52, %v2075_v18 }
0x1016   :  { %v2160_v47 = vpop.f32.mrf.mxu0 }
0x1017   :  { %v2190_v25 = vmul.f32 %v2166_v60, %v2166_v60  ;;  %v2161_v34 = vadd.f32 %v2160_v47, %v2075_v18 }
0x1019   :  { %v2196_v5 = vmul.f32 %v2190_v25, %v2166_v60  ;;  %v2189_v8 = vmul.f32 %v2161_v34, %v2161_v34 }
0x101b   :  { %v2202_v15 = vmul.f32 0.044715, %v2196_v5  ;;  %v2195_v17 = vmul.f32 %v2189_v8, %v2161_v34 }
0x101c   :  { %v5538_v55 = vpop.f32.mrf.mxu0 }
0x101d   :  { %v2208_v14 = vadd.f32 %v2202_v15, %v2166_v60  ;;  %v2201_v32 = vmul.f32 0.044715, %v2195_v17  ;;  %v2176_v49 = vadd.f32 %v5538_v55, %v2075_v18 }
0x101e   :  { %v2170_v13 = vpop.f32.mrf.mxu0 }
0x101f   :  { %v2214_v41 = vmul.f32 0.7978846, %v2208_v14  ;;  %v2207_v35 = vadd.f32 %v2201_v32, %v2161_v34  ;;  %v2192_v4 = vmul.f32 %v2176_v49, %v2176_v49  ;;  %v2171_v10 = vadd.f32 %v2170_v13, %v2075_v18 }
0x1020   :  { %v5541_v1 = vpop.f32.mrf.mxu0 }
0x1021   :  { %5994 = vtanh.f32 %v2214_v41  ;;  %v2213_v33 = vmul.f32 0.7978846, %v2207_v35  ;;  %v2198_v62 = vmul.f32 %v2192_v4, %v2176_v49  ;;  %v2191_v19 = vmul.f32 %v2171_v10, %v2171_v10 }
0x1022   :  { %v2186_v30 = vadd.f32 %v5541_v1, %v2075_v18  ;;  %v2180_v2 = vpop.f32.mrf.mxu0 }
0x1023   :  { %5996 = vtanh.f32 %v2213_v33  ;;  %v2204_v61 = vmul.f32 0.044715, %v2198_v62  ;;  %v2197_v54 = vmul.f32 %v2191_v19, %v2171_v10  ;;  %v2181_v40 = vadd.f32 %v2180_v2, %v2075_v18 }
0x1024   :  { %v2194_v42 = vmul.f32 %v2186_v30, %v2186_v30 }
0x1025   :  { %v2210_v43 = vadd.f32 %v2204_v61, %v2176_v49  ;;  %v2203_v37 = vmul.f32 0.044715, %v2197_v54  ;;  %v2193_v63 = vmul.f32 %v2181_v40, %v2181_v40 }
0x1026   :  { %v2200_v27 = vmul.f32 %v2194_v42, %v2186_v30 }
0x1027   :  { %v2216_v39 = vmul.f32 0.7978846, %v2210_v43  ;;  %v2209_v38 = vadd.f32 %v2203_v37, %v2171_v10  ;;  %v2199_v3 = vmul.f32 %v2193_v63, %v2181_v40 }
0x1028   :  { %v2206_v57 = vmul.f32 0.044715, %v2200_v27 }
0x1029   :  { %5998 = vtanh.f32 %v2216_v39  ;;  %v2215_v59 = vmul.f32 0.7978846, %v2209_v38  ;;  %v2205_v44 = vmul.f32 0.044715, %v2199_v3 }
0x102a   :  { %v2212_v51 = vadd.f32 %v2206_v57, %v2186_v30 }
0x102b   :  { %6000 = vtanh.f32 %v2215_v59  ;;  %v2211_v58 = vadd.f32 %v2205_v44, %v2181_v40 }
0x102c   :  { %v2218_v16 = vmul.f32 0.7978846, %v2212_v51 }
0x102d   :  { %v2217_v22 = vmul.f32 0.7978846, %v2211_v58 }
0x102e   :  { %v5995_v26 = vpop.eup %5994  ;;  %6002 = vtanh.f32 %v2218_v16 }
0x102f   :  { %v2226_v9 = vadd.f32 1.0, %v5995_v26  ;;  %6004 = vtanh.f32 %v2217_v22 }
0x1030   :  { %v5997_v29 = vpop.eup %5996 }
0x1031   :  { %v2225_v48 = vadd.f32 1.0, %v5997_v29  ;;  %v2232_v11 = vmul.f32 0.5, %v2226_v9 }
0x1033   :  { %v2231_v21 = vmul.f32 0.5, %v2225_v48  ;;  %v2238_v47 = vmul.f32 %v2232_v11, %v2166_v60  ;;  %v2346_v60 = vsub.s32 7, %v6325_v24 }
0x1035   :  { %v2237_v18 = vmul.f32 %v2231_v21, %v2161_v34  ;;  %v2347_v62 = vrot.slane %v6855_v50, %v2346_v60 }
0x1036   :  { %v5999_v52 = vpop.eup %5998 }
0x1037   :  { %5574 = vmatprep.mubr.f32.mxu1 %v2237_v18  ;;  %v2228_v25 = vadd.f32 1.0, %v5999_v52 }
0x1038   :  { %v6001_v5 = vpop.eup %6000  ;;  %5575 = vmatmul.mubr.f32.vlgmr.msra.gmra.mxu1 %v2238_v47 }
0x1039   :  { %v2227_v8 = vadd.f32 1.0, %v6001_v5  ;;  %v2234_v15 = vmul.f32 0.5, %v2228_v25 }
0x103b   :  { %v6003_v17 = vpop.eup %6002  ;;  %v2233_v55 = vmul.f32 0.5, %v2227_v8  ;;  %v2240_v35 = vmul.f32 %v2234_v15, %v2176_v49 }
0x103c   :  { %v6005_v14 = vpop.eup %6004  ;;  %v2230_v32 = vadd.f32 1.0, %v6003_v17 }
0x103d   :  { %v2239_v13 = vmul.f32 %v2233_v55, %v2171_v10  ;;  %v2229_v41 = vadd.f32 1.0, %v6005_v14 }
0x103e   :  { %v2236_v4 = vmul.f32 0.5, %v2230_v32 }
0x103f   :  { %5577 = vmatprep.mubr.f32.mxu1 %v2239_v13  ;;  %v2235_v1 = vmul.f32 0.5, %v2229_v41 }
0x1040   :  { %5578 = vmatmul.mubr.f32.gmra.mxu1 %v2240_v35  ;;  %v2242_v33 = vmul.f32 %v2236_v4, %v2186_v30 }
0x1041   :  { %v2241_v34 = vmul.f32 %v2235_v1, %v2181_v40 }
0x1043   :  { %5580 = vmatprep.mubr.f32.mxu1 %v2241_v34 }
0x1044   :  { %5581 = vmatmul.mubr.f32.gmra.mxu1 %v2242_v33 }
0x10f8   :  { %v5576_v19 = vpop.f32.mrf.mxu1 }
0x10f9   :  { %v2339_v2 = vadd.f32 %v5576_v19, %v6861_v20  ;;  %v2356_v19 = vld [vmem:[%s7928_s1 + $0x198] sm:$0xff] }
0x10fa   :  { %v2309_v10 = vpop.f32.mrf.mxu1 }
0x10fb   :  { %v7015_v61 = vadd.f32 %v2347_v62, %v2339_v2  ;;  %v2338_v49 = vadd.f32 %v2309_v10, %v6864_v23  ;;  %v2355_v2 = vld [vmem:[%s7928_s1 + $0x190] sm:$0xff]  ;;  %v2354_v10 = vld [vmem:[%s7928_s1 + $0x188] sm:$0xff] }
0x10fd   :  { %v7018_v54 = vadd.f32 %v2347_v62, %v2338_v49  ;;  %v2386_v30 = vsel %vm180_vm1, %v7015_v61, 0.0 }
0x10fe   :  { %2387 = vadd.xlane.f32.xlu1 %v2386_v30 }
0x10ff   :  { %v2383_v40 = vsel %vm180_vm1, %v7018_v54, 0.0 }
0x1100   :  { %2384 = vadd.xlane.f32.xlu0 %v2383_v40  ;;  %v5579_v42 = vpop.f32.mrf.mxu1 }
0x1101   :  { %v2341_v50 = vadd.f32 %v5579_v42, %v6871_v53 }
0x1102   :  { %v2319_v43 = vpop.f32.mrf.mxu1 }
0x1103   :  { %v7025_v20 = vadd.f32 %v2347_v62, %v2341_v50  ;;  %v2340_v37 = vadd.f32 %v2319_v43, %v6877_v7 }
0x1104   :  { %v5582_v63 = vpop.f32.mrf.mxu1 }
0x1105   :  { %v7028_v23 = vadd.f32 %v2347_v62, %v2340_v37  ;;  %v2343_v27 = vadd.f32 %v5582_v63, %v6879_v28  ;;  %v2392_v39 = vsel %vm180_vm1, %v7025_v20, 0.0 }
0x1106   :  { %2393 = vadd.xlane.f32.xlu1 %v2392_v39  ;;  %v2329_v38 = vpop.f32.mrf.mxu1 }
0x1107   :  { %v7033_v3 = vadd.f32 %v2347_v62, %v2343_v27  ;;  %v2342_v57 = vadd.f32 %v2329_v38, %v6884_v46  ;;  %v2389_v53 = vsel %vm180_vm1, %v7028_v23, 0.0 }
0x1108   :  { %2390 = vadd.xlane.f32.xlu0 %v2389_v53 }
0x1109   :  { %v7038_v59 = vadd.f32 %v2347_v62, %v2342_v57  ;;  %v2398_v7 = vsel %vm180_vm1, %v7033_v3, 0.0  ;;  %v2357_v62 = vld [vmem:[%s7928_s1 + $0x1a0] sm:$0xff] }
0x110a   :  { %2399 = vadd.xlane.f32.xlu1 %v2398_v7  ;;  %5583 = vmatprep.subr.mxu0 %v2357_v62 }
0x110b   :  { %v2395_v28 = vsel %vm180_vm1, %v7038_v59, 0.0  ;;  %5584 = vmatpush3.msra.mxu0 %v2357_v62 }
0x110c   :  { %2396 = vadd.xlane.f32.xlu0 %v2395_v28  ;;  %5585 = vmatprep.subr.mxu0 %v2356_v19  ;;  %v2382_v28 = vld [vmem:[%s7928_s1 + $0x268] sm:$0xff] }
0x110d   :  { %5586 = vmatpush3.msra.mxu0 %v2356_v19 }
0x110e   :  { %5587 = vmatprep.subr.mxu0 %v2355_v2 }
0x110f   :  { %5588 = vmatpush3.msra.mxu0 %v2355_v2 }
0x1110   :  { %5589 = vmatprep.subr.mxu0 %v2354_v10 }
0x1111   :  { %5590 = vmatpush3.msra.mxu0 %v2354_v10 }
0x1187   :  { %v2388_v44 = vpop.xlane.xlu1 %2387 }
0x1188   :  { %v2402_v51 = vmul.f32 0.03125, %v2388_v44 }
0x1189   :  { %v2385_v58 = vpop.xlane.xlu0 %2384 }
0x118a   :  { %v7045_v16 = vsub.f32 %v7015_v61, %v2402_v51  ;;  %v2401_v46 = vmul.f32 0.03125, %v2385_v58 }
0x118c   :  { %v7048_v22 = vsub.f32 %v7018_v54, %v2401_v46  ;;  %v2414_v26 = vmul.f32 %v7045_v16, %v7045_v16  ;;  %v2464_v46 = vrot.slane %v2382_v28, %v262_v31 }
0x118e   :  { %v2422_v9 = vsel %vm180_vm1, %v2414_v26, 0.0  ;;  %v2413_v29 = vmul.f32 %v7048_v22, %v7048_v22 }
0x118f   :  { %2423 = vadd.xlane.f32.xlu1 %v2422_v9  ;;  %v2394_v48 = vpop.xlane.xlu1 %2393 }
0x1190   :  { %v2404_v11 = vmul.f32 0.03125, %v2394_v48  ;;  %v2419_v21 = vsel %vm180_vm1, %v2413_v29, 0.0  ;;  %v2474_v29 = vrot.slane %v2382_v28, %v272_v36 }
0x1191   :  { %v2391_v18 = vpop.xlane.xlu0 %2390  ;;  %2420 = vadd.xlane.f32.xlu0 %v2419_v21 }
0x1192   :  { %v7057_v52 = vsub.f32 %v7025_v20, %v2404_v11  ;;  %v2403_v47 = vmul.f32 0.03125, %v2391_v18 }
0x1193   :  { %v2400_v25 = vpop.xlane.xlu1 %2399 }
0x1194   :  { %v7060_v5 = vsub.f32 %v7028_v23, %v2403_v47  ;;  %v2406_v8 = vmul.f32 0.03125, %v2400_v25  ;;  %v2416_v15 = vmul.f32 %v7057_v52, %v7057_v52 }
0x1195   :  { %v2397_v17 = vpop.xlane.xlu0 %2396 }
0x1196   :  { %v7065_v55 = vsub.f32 %v7033_v3, %v2406_v8  ;;  %v2405_v14 = vmul.f32 0.03125, %v2397_v17  ;;  %v2428_v32 = vsel %vm180_vm1, %v2416_v15, 0.0  ;;  %v2415_v13 = vmul.f32 %v7060_v5, %v7060_v5 }
0x1197   :  { %2429 = vadd.xlane.f32.xlu1 %v2428_v32 }
0x1198   :  { %v7071_v41 = vsub.f32 %v7038_v59, %v2405_v14  ;;  %v2425_v35 = vsel %vm180_vm1, %v2415_v13, 0.0  ;;  %v2418_v4 = vmul.f32 %v7065_v55, %v7065_v55 }
0x1199   :  { %2426 = vadd.xlane.f32.xlu0 %v2425_v35 }
0x119a   :  { %v2434_v1 = vsel %vm180_vm1, %v2418_v4, 0.0  ;;  %v2417_v34 = vmul.f32 %v7071_v41, %v7071_v41 }
0x119b   :  { %2435 = vadd.xlane.f32.xlu1 %v2434_v1 }
0x119c   :  { %v2431_v33 = vsel %vm180_vm1, %v2417_v34, 0.0 }
0x119d   :  { %2432 = vadd.xlane.f32.xlu0 %v2431_v33 }
0x1218   :  { %v2424_v49 = vpop.xlane.xlu1 %2423 }
0x1219   :  { %v2438_v30 = vmul.f32 0.03125, %v2424_v49 }
0x121a   :  { %v2421_v40 = vpop.xlane.xlu0 %2420 }
0x121b   :  { %v2444_v42 = vadd.f32 1e-05, %v2438_v30  ;;  %v2437_v50 = vmul.f32 0.03125, %v2421_v40 }
0x121d   :  { %6006 = vrsqrt.f32 %v2444_v42  ;;  %v2443_v43 = vadd.f32 1e-05, %v2437_v50 }
0x121f   :  { %6008 = vrsqrt.f32 %v2443_v43 }
0x1220   :  { %v2430_v37 = vpop.xlane.xlu1 %2429 }
0x1221   :  { %v2440_v63 = vmul.f32 0.03125, %v2430_v37 }
0x1222   :  { %v2427_v27 = vpop.xlane.xlu0 %2426 }
0x1223   :  { %v2446_v39 = vadd.f32 1e-05, %v2440_v63  ;;  %v2439_v38 = vmul.f32 0.03125, %v2427_v27 }
0x1224   :  { %v2436_v57 = vpop.xlane.xlu1 %2435 }
0x1225   :  { %6010 = vrsqrt.f32 %v2446_v39  ;;  %v2445_v53 = vadd.f32 1e-05, %v2439_v38  ;;  %v2442_v7 = vmul.f32 0.03125, %v2436_v57 }
0x1226   :  { %v2433_v44 = vpop.xlane.xlu0 %2432 }
0x1227   :  { %6012 = vrsqrt.f32 %v2445_v53  ;;  %v2448_v51 = vadd.f32 1e-05, %v2442_v7  ;;  %v2441_v58 = vmul.f32 0.03125, %v2433_v44 }
0x1229   :  { %6014 = vrsqrt.f32 %v2448_v51  ;;  %v2447_v26 = vadd.f32 1e-05, %v2441_v58 }
0x122a   :  { %v6007_v9 = vpop.eup %6006 }
0x122b   :  { %v2456_v48 = vmul.f32 %v6007_v9, %v7045_v16  ;;  %6016 = vrsqrt.f32 %v2447_v26 }
0x122c   :  { %v6009_v11 = vpop.eup %6008 }
0x122d   :  { %v2466_v21 = vmul.f32 %v2464_v46, %v2456_v48  ;;  %v2455_v18 = vmul.f32 %v6009_v11, %v7048_v22 }
0x122f   :  { %v2465_v47 = vmul.f32 %v2464_v46, %v2455_v18  ;;  %v2476_v25 = vadd.f32 %v2474_v29, %v2466_v21 }
0x1231   :  { %v2475_v8 = vadd.f32 %v2474_v29, %v2465_v47 }
0x1232   :  { %v6011_v15 = vpop.eup %6010 }
0x1233   :  { %5591 = vmatprep.mubr.msk.f32.mxu0 %vm180_vm1, %v2475_v8  ;;  %v2458_v31 = vmul.f32 %v6011_v15, %v7057_v52 }
0x1234   :  { %v6013_v17 = vpop.eup %6012  ;;  %5592 = vmatmul.mubr.msk.f32.vlgmr.msra.gmra.mxu0 %vm180_vm1, %v2476_v25 }
0x1235   :  { %v2457_v36 = vmul.f32 %v6013_v17, %v7060_v5  ;;  %v2468_v14 = vmul.f32 %v2464_v46, %v2458_v31 }
0x1236   :  { %v6015_v16 = vpop.eup %6014 }
0x1237   :  { %v2467_v32 = vmul.f32 %v2464_v46, %v2457_v36  ;;  %v2478_v13 = vadd.f32 %v2474_v29, %v2468_v14  ;;  %v2460_v35 = vmul.f32 %v6015_v16, %v7065_v55  ;;  %v2484_v55 = vrot.slane %v2382_v28, %v282_v56  ;;  %v7237_v16 = vld [vmem:[%s7928_s1 + $0x78] sm:$0xff] }
0x1238   :  { %v6017_v22 = vpop.eup %6016 }
0x1239   :  { %v2477_v4 = vadd.f32 %v2474_v29, %v2467_v32  ;;  %v2459_v1 = vmul.f32 %v6017_v22, %v7071_v41  ;;  %v2470_v34 = vmul.f32 %v2464_v46, %v2460_v35  ;;  %v7243_v35 = vld [vmem:[%s7928_s1 + $0x70] sm:$0xff] }
0x123b   :  { %5594 = vmatprep.mubr.msk.f32.mxu0 %vm180_vm1, %v2477_v4  ;;  %v2469_v33 = vmul.f32 %v2464_v46, %v2459_v1  ;;  %v2480_v52 = vadd.f32 %v2474_v29, %v2470_v34  ;;  %v7250_v34 = vld [vmem:[%s7928_s1 + $0x88] sm:$0xff] }
0x123c   :  { %5595 = vmatmul.mubr.msk.f32.gmra.mxu0 %vm180_vm1, %v2478_v13 }
0x123d   :  { %v2479_v62 = vadd.f32 %v2474_v29, %v2469_v33 }
0x123f   :  { %5597 = vmatprep.mubr.msk.f32.mxu0 %vm180_vm1, %v2479_v62 }
0x1240   :  { %5598 = vmatmul.mubr.msk.f32.gmra.mxu0 %vm180_vm1, %v2480_v52 }
0x12f4   :  { %v5593_v5 = vpop.f32.mrf.mxu0 }
0x12f5   :  { %v7123_v50 = vadd.f32 %v5593_v5, %v2484_v55 }
0x12f6   :  { %v2569_v19 = vpop.f32.mrf.mxu0 }
0x12f7   :  { %v7113_v2 = vadd.f32 %v2569_v19, %v2484_v55 }
0x12f9   :  { %5612 = vmatprep.mubr.msk.f32.mxu0 %vm415_vm2, %v7113_v2 }
0x12fc   :  { %v5596_v41 = vpop.f32.mrf.mxu0 }
0x12fd   :  { %v7127_v56 = vadd.f32 %v5596_v41, %v2484_v55  ;;  %v7263_v41 = vld [vmem:[%s7928_s1 + $0x98] sm:$0xff] }
0x12fe   :  { %v2579_v10 = vpop.f32.mrf.mxu0 }
0x12ff   :  { %v7133_v43 = vadd.f32 %v2579_v10, %v2484_v55 }
0x1300   :  { %v5599_v49 = vpop.f32.mrf.mxu0 }
0x1301   :  { %v7117_v30 = vadd.f32 %v5599_v49, %v2484_v55 }
0x1302   :  { %v2589_v40 = vpop.f32.mrf.mxu0 }
0x1303   :  { %v7119_v42 = vadd.f32 %v2589_v40, %v2484_v55  ;;  %2614 = vrot.lane.b32.xlu0 %v7117_v30, %s6158_s30  ;;  %v7257_v55 = vld [vmem:[%s7928_s1 + $0x80] sm:$0xff] }
0x1305   :  { %2612 = vrot.lane.b32.xlu1 %v7119_v42, %s6158_s30 }
0x1307   :  { %2606 = vrot.lane.b32.xlu0 %v7123_v50, %s6158_s30 }
0x1309   :  { %2610 = vrot.lane.b32.xlu1 %v7127_v56, %s6158_s30 }
0x130b   :  { %2954 = vrot.lane.b32.xlu0 %v7117_v30, %s6160_s4 }
0x130d   :  { %2608 = vrot.lane.b32.xlu1 %v7133_v43, %s6158_s30 }
0x130f   :  { %2950 = vrot.lane.b32.xlu0 %v7127_v56, %s6160_s4 }
0x1311   :  { %2604 = vrot.lane.b32.xlu1 %v7113_v2, %s6158_s30 }
0x1313   :  { %2946 = vrot.lane.b32.xlu0 %v7123_v50, %s6160_s4 }
0x1315   :  { %2952 = vrot.lane.b32.xlu1 %v7119_v42, %s6160_s4 }
0x1317   :  { %2932 = vrot.lane.b32.xlu0 %v7113_v2, %s6161_s16 }
0x1319   :  { %2948 = vrot.lane.b32.xlu1 %v7133_v43, %s6160_s4 }
0x131b   :  { %2936 = vrot.lane.b32.xlu0 %v7133_v43, %s6161_s16 }
0x131d   :  { %2944 = vrot.lane.b32.xlu1 %v7113_v2, %s6160_s4 }
0x131f   :  { %2940 = vrot.lane.b32.xlu0 %v7119_v42, %s6161_s16 }
0x1321   :  { %2934 = vrot.lane.b32.xlu1 %v7123_v50, %s6161_s16 }
0x1323   :  { %2811 = vrot.lane.b32.xlu0 %v7117_v30, %s6159_s3 }
0x1325   :  { %2938 = vrot.lane.b32.xlu1 %v7127_v56, %s6161_s16 }
0x1327   :  { %2803 = vrot.lane.b32.xlu0 %v7123_v50, %s6159_s3 }
0x1329   :  { %2942 = vrot.lane.b32.xlu1 %v7117_v30, %s6161_s16 }
0x132b   :  { %3151 = vrot.lane.b32.xlu0 %v7117_v30, %s6162_s17 }
0x132d   :  { %2807 = vrot.lane.b32.xlu1 %v7127_v56, %s6159_s3 }
0x132f   :  { %3147 = vrot.lane.b32.xlu0 %v7127_v56, %s6162_s17 }
0x1331   :  { %2805 = vrot.lane.b32.xlu1 %v7133_v43, %s6159_s3 }
0x1333   :  { %3143 = vrot.lane.b32.xlu0 %v7123_v50, %s6162_s17 }
0x1335   :  { %2801 = vrot.lane.b32.xlu1 %v7113_v2, %s6159_s3 }
0x1339   :  { %3145 = vrot.lane.b32.xlu1 %v7133_v43, %s6162_s17 }
0x133d   :  { %3141 = vrot.lane.b32.xlu1 %v7113_v2, %s6162_s17 }
0x1341   :  { %2809 = vrot.lane.b32.xlu1 %v7119_v42, %s6159_s3 }
0x1345   :  { %3149 = vrot.lane.b32.xlu1 %v7119_v42, %s6162_s17 }
0x1375   :  { %v2615_v37 = vpop.permute.xlu0 %2614 }
0x1376   :  { %5600 = vmatprep.subr.msk.mxu0 %vm415_vm2, %v2615_v37 }
0x1377   :  { %5601 = vmatpush3.xpose.msk.msra.mxu0 %vm415_vm2, %v2615_v37  ;;  %v2613_v63 = vpop.permute.xlu1 %2612 }
0x1378   :  { %5602 = vmatprep.subr.msk.mxu0 %vm415_vm2, %v2613_v63 }
0x1379   :  { %v2607_v27 = vpop.permute.xlu0 %2606 }
0x137b   :  { %5603 = vmatpush3.xpose.msk.msra.mxu0 %vm415_vm2, %v2613_v63  ;;  %v2611_v39 = vpop.permute.xlu1 %2610  ;;  %v7271_v63 = vld [vmem:[%s7928_s1 + $0x90] sm:$0xff] }
0x137c   :  { %5604 = vmatprep.subr.msk.mxu0 %vm415_vm2, %v2611_v39 }
0x137d   :  { %v2955_v38 = vpop.permute.xlu0 %2954 }
0x137f   :  { %5605 = vmatpush3.xpose.msk.msra.mxu0 %vm415_vm2, %v2611_v39  ;;  %v2609_v57 = vpop.permute.xlu1 %2608 }
0x1380   :  { %5606 = vmatprep.subr.msk.mxu0 %vm415_vm2, %v2609_v57 }
0x1381   :  { %v2951_v53 = vpop.permute.xlu0 %2950 }
0x1383   :  { %5607 = vmatpush3.xpose.msk.msra.mxu0 %vm415_vm2, %v2609_v57  ;;  %v2605_v7 = vpop.permute.xlu1 %2604 }
0x1384   :  { %5608 = vmatprep.subr.msk.mxu0 %vm415_vm2, %v2607_v27 }
0x1385   :  { %v2947_v28 = vpop.permute.xlu0 %2946 }
0x1387   :  { %5609 = vmatpush3.xpose.msk.msra.mxu0 %vm415_vm2, %v2607_v27  ;;  %v2953_v44 = vpop.permute.xlu1 %2952 }
0x1388   :  { %5610 = vmatprep.subr.msk.mxu0 %vm415_vm2, %v2605_v7 }
0x1389   :  { %v2933_v51 = vpop.permute.xlu0 %2932 }
0x138b   :  { %5611 = vmatpush3.xpose.msk.msra.mxu0 %vm415_vm2, %v2605_v7  ;;  %v2949_v58 = vpop.permute.xlu1 %2948 }
0x138c   :  { %5642 = vmatprep.subr.msk.mxu0 %vm415_vm2, %v2955_v38 }
0x138d   :  { %v2937_v46 = vpop.permute.xlu0 %2936 }
0x138e   :  { %5613 = vmatmul.mubr.msk.f32.vlgmr.msra.gmra.mxu0 %vm415_vm2, %v7123_v50 }
0x138f   :  { %5615 = vmatprep.mubr.msk.f32.mxu0 %vm415_vm2, %v7133_v43  ;;  %5643 = vmatpush3.xpose.msk.msra.mxu0 %vm415_vm2, %v2955_v38  ;;  %v2945_v26 = vpop.permute.xlu1 %2944 }
0x1390   :  { %5644 = vmatprep.subr.msk.mxu0 %vm415_vm2, %v2953_v44 }
0x1391   :  { %v2941_v9 = vpop.permute.xlu0 %2940 }
0x1392   :  { %5616 = vmatmul.mubr.msk.f32.gmra.mxu0 %vm415_vm2, %v7127_v56 }
0x1393   :  { %5618 = vmatprep.mubr.msk.f32.mxu0 %vm415_vm2, %v7119_v42  ;;  %5645 = vmatpush3.xpose.msk.msra.mxu0 %vm415_vm2, %v2953_v44  ;;  %v2935_v29 = vpop.permute.xlu1 %2934 }
0x1394   :  { %5646 = vmatprep.subr.msk.mxu0 %vm415_vm2, %v2951_v53 }
0x1395   :  { %v2812_v48 = vpop.permute.xlu0 %2811 }
0x1396   :  { %5619 = vmatmul.mubr.msk.f32.gmra.mxu0 %vm415_vm2, %v7117_v30  ;;  %5621 = vmatprep.subr.mxu1 %v2812_v48 }
0x1397   :  { %5622 = vmatpush3.msra.mxu1 %v2812_v48  ;;  %5647 = vmatpush3.xpose.msk.msra.mxu0 %vm415_vm2, %v2951_v53  ;;  %v2939_v11 = vpop.permute.xlu1 %2938 }
0x1398   :  { %5654 = vmatprep.mubr.msk.f32.mxu0 %vm415_vm2, %v2933_v51  ;;  %5648 = vmatprep.subr.msk.mxu0 %vm415_vm2, %v2949_v58 }
0x1399   :  { %v2804_v17 = vpop.permute.xlu0 %2803 }
0x139b   :  { %5649 = vmatpush3.xpose.msk.msra.mxu0 %vm415_vm2, %v2949_v58  ;;  %v2943_v21 = vpop.permute.xlu1 %2942 }
0x139c   :  { %5650 = vmatprep.subr.msk.mxu0 %vm415_vm2, %v2947_v28 }
0x139d   :  { %v7231_v36 = vpop.permute.xlu0 %3151 }
0x139f   :  { %5651 = vmatpush3.xpose.msk.msra.mxu0 %vm415_vm2, %v2947_v28  ;;  %v2808_v18 = vpop.permute.xlu1 %2807 }
0x13a0   :  { %5652 = vmatprep.subr.msk.mxu0 %vm415_vm2, %v2945_v26 }
0x13a3   :  { %5653 = vmatpush3.xpose.msk.msra.mxu0 %vm415_vm2, %v2945_v26  ;;  %v2806_v47 = vpop.permute.xlu1 %2805 }
0x13a6   :  { %5655 = vmatmul.mubr.msk.f32.vlgmr.msra.gmra.mxu0 %vm415_vm2, %v2935_v29 }
0x13a7   :  { %5657 = vmatprep.mubr.msk.f32.mxu0 %vm415_vm2, %v2937_v46  ;;  %v2802_v25 = vpop.permute.xlu1 %2801 }
0x13aa   :  { %5658 = vmatmul.mubr.msk.f32.gmra.mxu0 %vm415_vm2, %v2939_v11 }
0x13ab   :  { %5660 = vmatprep.mubr.msk.f32.mxu0 %vm415_vm2, %v2941_v9  ;;  %v7226_v8 = vpop.permute.xlu1 %3145 }
0x13ae   :  { %5661 = vmatmul.mubr.msk.f32.gmra.mxu0 %vm415_vm2, %v2943_v21 }
0x13af   :  { %v7229_v15 = vpop.permute.xlu1 %3141 }
0x13b3   :  { %v2810_v31 = vpop.permute.xlu1 %2809 }
0x13b4   :  { %5623 = vmatprep.subr.mxu1 %v2810_v31 }
0x13b5   :  { %5624 = vmatpush3.msra.mxu1 %v2810_v31 }
0x13b6   :  { %5625 = vmatprep.subr.mxu1 %v2808_v18 }
0x13b7   :  { %5626 = vmatpush3.msra.mxu1 %v2808_v18 }
0x13b8   :  { %5627 = vmatprep.subr.mxu1 %v2806_v47 }
0x13b9   :  { %5628 = vmatpush3.msra.mxu1 %v2806_v47 }
0x13ba   :  { %5629 = vmatprep.subr.mxu1 %v2804_v17 }
0x13bb   :  { %5630 = vmatpush3.msra.mxu1 %v2804_v17  ;;  %v7310_v17 = vpop.permute.xlu0 %3147 }
0x13bc   :  { %5631 = vmatprep.subr.mxu1 %v2802_v25 }
0x13bd   :  { %5632 = vmatpush3.msra.mxu1 %v2802_v25 }
0x13be   :  { %5663 = vmatprep.subr.mxu1 %v7231_v36 }
0x144e   :  { %v5614_v14 = vpop.f32.mrf.mxu0 }
0x144f   :  { %v2712_v32 = vadd.f32 %v7237_v16, %v5614_v14  ;;  %v7312_v14 = vpop.permute.xlu1 %3149 }
0x1450   :  { %v2706_v13 = vpop.f32.mrf.mxu0 }
0x1451   :  { %v2707_v22 = vadd.f32 %v7243_v35, %v2706_v13  ;;  %v2738_v4 = vsel %vm535_vm3, %v2712_v32, -inf  ;;  %v7314_v13 = vpop.permute.xlu0 %3143 }
0x1452   :  { %2739 = vmax.xlane.f32.xlu1 %v2738_v4  ;;  %v5617_v1 = vpop.f32.mrf.mxu0 }
0x1453   :  { %v2722_v33 = vadd.f32 %v7250_v34, %v5617_v1  ;;  %v2735_v52 = vsel %vm535_vm3, %v2707_v22, -inf }
0x1454   :  { %v2716_v62 = vpop.f32.mrf.mxu0  ;;  %2736 = vmax.xlane.f32.xlu0 %v2735_v52 }
0x1455   :  { %v2717_v19 = vadd.f32 %v7257_v55, %v2716_v62  ;;  %v2744_v49 = vsel %vm535_vm3, %v2722_v33, -inf }
0x1456   :  { %v5620_v5 = vpop.f32.mrf.mxu0 }
0x1457   :  { %v2732_v10 = vadd.f32 %v7263_v41, %v5620_v5  ;;  %v2741_v39 = vsel %vm535_vm3, %v2717_v19, -inf }
0x1458   :  { %v2726_v40 = vpop.f32.mrf.mxu0  ;;  %2745 = vmax.xlane.f32.xlu0 %v2744_v49 }
0x1459   :  { %v2750_v37 = vsel %vm535_vm3, %v2732_v10, -inf  ;;  %v2727_v27 = vadd.f32 %v7271_v63, %v2726_v40 }
0x145a   :  { %2751 = vmax.xlane.f32.xlu1 %v2750_v37 }
0x145b   :  { %v2747_v38 = vsel %vm535_vm3, %v2727_v27, -inf }
0x145c   :  { %2742 = vmax.xlane.f32.xlu0 %v2741_v39 }
0x1460   :  { %2748 = vmax.xlane.f32.xlu0 %v2747_v38 }
0x1466   :  { %v5656_v57 = vpop.f32.mrf.mxu0 }
0x1467   :  { %v7277_v53 = vadd.f32 %v7237_v16, %v5656_v57 }
0x1468   :  { %v3046_v7 = vpop.f32.mrf.mxu0 }
0x1469   :  { %v7280_v28 = vadd.f32 %v7243_v35, %v3046_v7  ;;  %v3078_v44 = vsel %vm535_vm3, %v7277_v53, -inf }
0x146a   :  { %3079 = vmax.xlane.f32.xlu1 %v3078_v44  ;;  %v5659_v51 = vpop.f32.mrf.mxu0 }
0x146b   :  { %v7285_v58 = vadd.f32 %v7250_v34, %v5659_v51  ;;  %v3075_v46 = vsel %vm535_vm3, %v7280_v28, -inf }
0x146c   :  { %3076 = vmax.xlane.f32.xlu0 %v3075_v46  ;;  %v3056_v26 = vpop.f32.mrf.mxu0 }
0x146d   :  { %v7290_v9 = vadd.f32 %v7257_v55, %v3056_v26  ;;  %v3084_v29 = vsel %vm535_vm3, %v7285_v58, -inf }
0x146e   :  { %3085 = vmax.xlane.f32.xlu1 %v3084_v29  ;;  %v5662_v48 = vpop.f32.mrf.mxu0 }
0x146f   :  { %v7295_v11 = vadd.f32 %v7263_v41, %v5662_v48  ;;  %v3081_v21 = vsel %vm535_vm3, %v7290_v9, -inf }
0x1470   :  { %3082 = vmax.xlane.f32.xlu0 %v3081_v21  ;;  %v3066_v18 = vpop.f32.mrf.mxu0 }
0x1471   :  { %v7300_v47 = vadd.f32 %v7271_v63, %v3066_v18  ;;  %v3090_v25 = vsel %vm535_vm3, %v7295_v11, -inf }
0x1472   :  { %3091 = vmax.xlane.f32.xlu1 %v3090_v25 }
0x1473   :  { %v3087_v31 = vsel %vm535_vm3, %v7300_v47, -inf }
0x1474   :  { %3088 = vmax.xlane.f32.xlu0 %v3087_v31 }
0x1483   :  { %3292 = vrot.lane.b32.xlu1 %v7119_v42, %s6163_s18 }
0x148a   :  { %3294 = vrot.lane.b32.xlu0 %v7117_v30, %s6163_s18 }
0x14db   :  { %v2740_v4 = vpop.xlane.xlu1 %2739 }
0x14dc   :  { %v2754_v1 = vsub.f32 %v2712_v32, %v2740_v4 }
0x14dd   :  { %v2737_v52 = vpop.xlane.xlu0 %2736 }
0x14de   :  { %v2761_v62 = vmul.f32 1.442695, %v2754_v1  ;;  %v2753_v5 = vsub.f32 %v2707_v22, %v2737_v52 }
0x14e0   :  { %6018 = vpow2.f32 %v2761_v62  ;;  %v2759_v49 = vmul.f32 1.442695, %v2753_v5 }
0x14e1   :  { %v2746_v40 = vpop.xlane.xlu0 %2745 }
0x14e2   :  { %6020 = vpow2.f32 %v2759_v49  ;;  %v2756_v37 = vsub.f32 %v2722_v33, %v2746_v40 }
0x14e3   :  { %v2752_v39 = vpop.xlane.xlu1 %2751 }
0x14e4   :  { %v2765_v38 = vmul.f32 1.442695, %v2756_v37  ;;  %v2758_v57 = vsub.f32 %v2732_v10, %v2752_v39 }
0x14e5   :  { %v2743_v7 = vpop.xlane.xlu0 %2742 }
0x14e6   :  { %6022 = vpow2.f32 %v2765_v38  ;;  %v2769_v44 = vmul.f32 1.442695, %v2758_v57  ;;  %v2755_v51 = vsub.f32 %v2717_v19, %v2743_v7 }
0x14e8   :  { %6024 = vpow2.f32 %v2769_v44  ;;  %v2763_v46 = vmul.f32 1.442695, %v2755_v51 }
0x14e9   :  { %v2749_v26 = vpop.xlane.xlu0 %2748 }
0x14ea   :  { %6026 = vpow2.f32 %v2763_v46  ;;  %v2757_v32 = vsub.f32 %v2727_v27, %v2749_v26 }
0x14ec   :  { %v2767_v29 = vmul.f32 1.442695, %v2757_v32 }
0x14ed   :  { %v7316_v48 = vpop.eup %6018 }
0x14ee   :  { %6028 = vpow2.f32 %v2767_v29  ;;  %v2774_v22 = vsel %vm535_vm3, %v7316_v48, 0.0 }
0x14ef   :  { %v7320_v33 = vpop.eup %6020  ;;  %2775 = vadd.xlane.f32.xlu1 %v2774_v22 }
0x14f0   :  { %v2771_v10 = vsel %vm535_vm3, %v7320_v33, 0.0 }
0x14f1   :  { %2772 = vadd.xlane.f32.xlu0 %v2771_v10 }
0x14f3   :  { %v7324_v19 = vpop.eup %6022  ;;  %v3080_v21 = vpop.xlane.xlu1 %3079 }
0x14f4   :  { %v3094_v18 = vsub.f32 %v7277_v53, %v3080_v21  ;;  %v2780_v27 = vsel %vm535_vm3, %v7324_v19, 0.0 }
0x14f5   :  { %v7329_v25 = vpop.eup %6024  ;;  %v3077_v31 = vpop.xlane.xlu0 %3076  ;;  %2781 = vadd.xlane.f32.xlu1 %v2780_v27 }
0x14f6   :  { %v3101_v4 = vmul.f32 1.442695, %v3094_v18  ;;  %v3093_v1 = vsub.f32 %v7280_v28, %v3077_v31  ;;  %v2786_v53 = vsel %vm535_vm3, %v7329_v25, 0.0 }
0x14f7   :  { %v7332_v52 = vpop.eup %6026  ;;  %v3086_v57 = vpop.xlane.xlu1 %3085 }
0x14f8   :  { %6030 = vpow2.f32 %v3101_v4  ;;  %v3099_v62 = vmul.f32 1.442695, %v3093_v1  ;;  %v2777_v5 = vsel %vm535_vm3, %v7332_v52, 0.0  ;;  %v3096_v44 = vsub.f32 %v7285_v58, %v3086_v57 }
0x14f9   :  { %2778 = vadd.xlane.f32.xlu0 %v2777_v5  ;;  %2787 = vadd.xlane.f32.xlu1 %v2786_v53  ;;  %v3083_v7 = vpop.xlane.xlu0 %3082 }
0x14fa   :  { %6032 = vpow2.f32 %v3099_v62  ;;  %v3095_v46 = vsub.f32 %v7290_v9, %v3083_v7  ;;  %v3105_v32 = vmul.f32 1.442695, %v3096_v44 }
0x14fb   :  { %v7338_v49 = vpop.eup %6028  ;;  %v3092_v51 = vpop.xlane.xlu1 %3091 }
0x14fc   :  { %v2783_v40 = vsel %vm535_vm3, %v7338_v49, 0.0  ;;  %v3098_v29 = vsub.f32 %v7295_v11, %v3092_v51  ;;  %v3103_v22 = vmul.f32 1.442695, %v3095_v46  ;;  %6034 = vpow2.f32 %v3105_v32 }
0x14fd   :  { %2784 = vadd.xlane.f32.xlu0 %v2783_v40  ;;  %v3089_v26 = vpop.xlane.xlu0 %3088 }
0x14fe   :  { %v3097_v10 = vsub.f32 %v7300_v47, %v3089_v26  ;;  %v3109_v21 = vmul.f32 1.442695, %v3098_v29  ;;  %6036 = vpow2.f32 %v3103_v22 }
0x14ff   :  { %v3293_v62 = vpop.permute.xlu1 %3292 }
0x1500   :  { %v3107_v18 = vmul.f32 1.442695, %v3097_v10  ;;  %6038 = vpow2.f32 %v3109_v21 }
0x1501   :  { %v3295_v5 = vpop.permute.xlu0 %3294 }
0x1502   :  { %6040 = vpow2.f32 %v3107_v18 }
0x1505   :  { %v7342_v28 = vpop.eup %6030 }
0x1506   :  { %v3114_v37 = vsel %vm535_vm3, %v7342_v28, 0.0 }
0x1507   :  { %v7346_v39 = vpop.eup %6032  ;;  %3115 = vadd.xlane.f32.xlu1 %v3114_v37 }
0x1508   :  { %v3111_v38 = vsel %vm535_vm3, %v7346_v39, 0.0 }
0x1509   :  { %3112 = vadd.xlane.f32.xlu0 %v3111_v38  ;;  %v7358_v27 = vpop.eup %6034 }
0x150a   :  { %v3120_v58 = vsel %vm535_vm3, %v7358_v27, 0.0 }
0x150b   :  { %v7360_v31 = vpop.eup %6036 }
0x150c   :  { %v3117_v11 = vsel %vm535_vm3, %v7360_v31, 0.0 }
0x150d   :  { %v7364_v9 = vpop.eup %6038 }
0x150e   :  { %v3126_v4 = vsel %vm535_vm3, %v7364_v9, 0.0 }
0x150f   :  { %v7368_v47 = vpop.eup %6040 }
0x1510   :  { %v3123_v1 = vsel %vm535_vm3, %v7368_v47, 0.0 }
0x1518   :  { %3288 = vrot.lane.b32.xlu1 %v7133_v43, %s6163_s18 }
0x151f   :  { %3290 = vrot.lane.b32.xlu0 %v7127_v56, %s6163_s18 }
0x153c   :  { %3121 = vadd.xlane.f32.xlu1 %v3120_v58 }
0x153e   :  { %3118 = vadd.xlane.f32.xlu0 %v3117_v11 }
0x1540   :  { %3127 = vadd.xlane.f32.xlu1 %v3126_v4 }
0x1542   :  { %3124 = vadd.xlane.f32.xlu0 %v3123_v1 }
0x1551   :  { %3284 = vrot.lane.b32.xlu1 %v7113_v2, %s6163_s18 }
0x1555   :  { %3274 = vrot.lane.b32.xlu1 %v7123_v50, %s6164_s19 }
0x1558   :  { %3286 = vrot.lane.b32.xlu0 %v7123_v50, %s6163_s18 }
0x1559   :  { %3278 = vrot.lane.b32.xlu1 %v7127_v56, %s6164_s19 }
0x155c   :  { %3272 = vrot.lane.b32.xlu0 %v7113_v2, %s6164_s19 }
0x155d   :  { %3282 = vrot.lane.b32.xlu1 %v7117_v30, %s6164_s19 }
0x1560   :  { %3276 = vrot.lane.b32.xlu0 %v7133_v43, %s6164_s19 }
0x1561   :  { %3489 = vrot.lane.b32.xlu1 %v7119_v42, %s6165_s20 }
0x1564   :  { %3280 = vrot.lane.b32.xlu0 %v7119_v42, %s6164_s19 }
0x1565   :  { %3485 = vrot.lane.b32.xlu1 %v7133_v43, %s6165_s20 }
0x1568   :  { %3491 = vrot.lane.b32.xlu0 %v7117_v30, %s6165_s20 }
0x1569   :  { %3483 = vrot.lane.b32.xlu1 %v7123_v50, %s6165_s20 }
0x156c   :  { %3487 = vrot.lane.b32.xlu0 %v7127_v56, %s6165_s20 }
0x156d   :  { %3481 = vrot.lane.b32.xlu1 %v7113_v2, %s6165_s20 }
0x1570   :  { %3634 = vrot.lane.b32.xlu0 %v7117_v30, %s6166_s21 }
0x1571   :  { %3632 = vrot.lane.b32.xlu1 %v7119_v42, %s6166_s21 }
0x1578   :  { %v2776_v53 = vpop.xlane.xlu1 %2775 }
0x1579   :  { %6042 = vrcp.f32 %v2776_v53 }
0x157a   :  { %v2773_v40 = vpop.xlane.xlu0 %2772 }
0x157b   :  { %6044 = vrcp.f32 %v2773_v40 }
0x157e   :  { %v2782_v37 = vpop.xlane.xlu1 %2781 }
0x157f   :  { %6046 = vrcp.f32 %v2782_v37 }
0x1582   :  { %v2779_v38 = vpop.xlane.xlu0 %2778  ;;  %v2788_v57 = vpop.xlane.xlu1 %2787 }
0x1583   :  { %6048 = vrcp.f32 %v2779_v38 }
0x1584   :  { %6050 = vrcp.f32 %v2788_v57 }
0x1586   :  { %v2785_v7 = vpop.xlane.xlu0 %2784  ;;  %v6043_v44 = vpop.eup %6042 }
0x1587   :  { %6052 = vrcp.f32 %v2785_v7  ;;  %v2792_v26 = vmul.f32 %v6043_v44, %v7316_v48 }
0x1588   :  { %v6045_v51 = vpop.eup %6044 }
0x1589   :  { %v2790_v46 = vmul.f32 %v6045_v51, %v7320_v33 }
0x158b   :  { %5633 = vmatprep.mubr.msk.f32.mxu1 %vm535_vm3, %v2790_v46 }
0x158c   :  { %5634 = vmatmul.mubr.msk.f32.vlgmr.msra.gmra.mxu1 %vm535_vm3, %v2792_v26  ;;  %v6047_v32 = vpop.eup %6046 }
0x158d   :  { %5664 = vmatpush3.msra.mxu1 %v7231_v36  ;;  %v2796_v10 = vmul.f32 %v6047_v32, %v7324_v19 }
0x158e   :  { %5665 = vmatprep.subr.mxu1 %v7312_v14 }
0x158f   :  { %5666 = vmatpush3.msra.mxu1 %v7312_v14 }
0x1590   :  { %v6049_v29 = vpop.eup %6048  ;;  %5667 = vmatprep.subr.mxu1 %v7310_v17  ;;  %v3116_v22 = vpop.xlane.xlu1 %3115 }
0x1591   :  { %5668 = vmatpush3.msra.mxu1 %v7310_v17  ;;  %v2794_v33 = vmul.f32 %v6049_v29, %v7332_v52  ;;  %6054 = vrcp.f32 %v3116_v22  ;;  %v6051_v36 = vpop.eup %6050 }
0x1592   :  { %5669 = vmatprep.subr.mxu1 %v7226_v8  ;;  %v3113_v48 = vpop.xlane.xlu0 %3112  ;;  %v2800_v52 = vmul.f32 %v6051_v36, %v7329_v25 }
0x1593   :  { %6056 = vrcp.f32 %v3113_v48  ;;  %5670 = vmatpush3.msra.mxu1 %v7226_v8  ;;  %5636 = vmatprep.mubr.msk.f32.mxu1 %vm535_vm3, %v2794_v33 }
0x1594   :  { %v6053_v14 = vpop.eup %6052  ;;  %5671 = vmatprep.subr.mxu1 %v7314_v13  ;;  %5637 = vmatmul.mubr.msk.f32.gmra.mxu1 %vm535_vm3, %v2796_v10  ;;  %v3289_v25 = vpop.permute.xlu1 %3288 }
0x1595   :  { %5672 = vmatpush3.msra.mxu1 %v7314_v13  ;;  %v2798_v17 = vmul.f32 %v6053_v14, %v7338_v49 }
0x1596   :  { %5673 = vmatprep.subr.mxu1 %v7229_v15 }
0x1597   :  { %5674 = vmatpush3.msra.mxu1 %v7229_v15  ;;  %5639 = vmatprep.mubr.msk.f32.mxu1 %vm535_vm3, %v2798_v17  ;;  %v3291_v15 = vpop.permute.xlu0 %3290 }
0x1598   :  { %5684 = vmatprep.subr.msk.mxu1 %vm415_vm2, %v3295_v5  ;;  %5640 = vmatmul.mubr.msk.f32.gmra.mxu1 %vm535_vm3, %v2800_v52 }
0x159e   :  { %v6055_v8 = vpop.eup %6054 }
0x159f   :  { %v3132_v13 = vmul.f32 %v6055_v8, %v7342_v28 }
0x15a0   :  { %v6057_v19 = vpop.eup %6056 }
0x15a1   :  { %v3130_v21 = vmul.f32 %v6057_v19, %v7346_v39 }
0x15a3   :  { %5675 = vmatprep.mubr.msk.f32.mxu1 %vm535_vm3, %v3130_v21 }
0x15a4   :  { %5676 = vmatmul.mubr.msk.f32.vlgmr.msra.gmra.mxu1 %vm535_vm3, %v3132_v13 }
0x15a5   :  { %5685 = vmatpush3.xpose.msk.msra.mxu1 %vm415_vm2, %v3295_v5 }
0x15a6   :  { %5686 = vmatprep.subr.msk.mxu1 %vm415_vm2, %v3293_v62 }
0x15a9   :  { %5687 = vmatpush3.xpose.msk.msra.mxu1 %vm415_vm2, %v3293_v62 }
0x15aa   :  { %5688 = vmatprep.subr.msk.mxu1 %vm415_vm2, %v3291_v15 }
0x15ad   :  { %5689 = vmatpush3.xpose.msk.msra.mxu1 %vm415_vm2, %v3291_v15 }
0x15ae   :  { %5690 = vmatprep.subr.msk.mxu1 %vm415_vm2, %v3289_v25 }
0x15b1   :  { %5691 = vmatpush3.xpose.msk.msra.mxu1 %vm415_vm2, %v3289_v25 }
0x15c5   :  { %v3122_v49 = vpop.xlane.xlu1 %3121 }
0x15c6   :  { %6058 = vrcp.f32 %v3122_v49 }
0x15c7   :  { %v3119_v28 = vpop.xlane.xlu0 %3118 }
0x15c8   :  { %6060 = vrcp.f32 %v3119_v28 }
0x15c9   :  { %v3128_v39 = vpop.xlane.xlu1 %3127 }
0x15ca   :  { %6062 = vrcp.f32 %v3128_v39 }
0x15cb   :  { %v3125_v18 = vpop.xlane.xlu0 %3124 }
0x15cc   :  { %6064 = vrcp.f32 %v3125_v18 }
0x15cd   :  { %v3285_v58 = vpop.permute.xlu1 %3284 }
0x15cf   :  { %v3287_v11 = vpop.permute.xlu0 %3286 }
0x15d0   :  { %5692 = vmatprep.subr.msk.mxu1 %vm415_vm2, %v3287_v11 }
0x15d1   :  { %5693 = vmatpush3.xpose.msk.msra.mxu1 %vm415_vm2, %v3287_v11  ;;  %v3275_v4 = vpop.permute.xlu1 %3274 }
0x15d2   :  { %5694 = vmatprep.subr.msk.mxu1 %vm415_vm2, %v3285_v58 }
0x15d3   :  { %v3273_v1 = vpop.permute.xlu0 %3272  ;;  %v6059_v62 = vpop.eup %6058 }
0x15d4   :  { %v3136_v38 = vmul.f32 %v6059_v62, %v7358_v27 }
0x15d5   :  { %v6061_v5 = vpop.eup %6060  ;;  %5695 = vmatpush3.xpose.msk.msra.mxu1 %vm415_vm2, %v3285_v58  ;;  %v3279_v53 = vpop.permute.xlu1 %3278 }
0x15d6   :  { %v3134_v40 = vmul.f32 %v6061_v5, %v7360_v31 }
0x15d7   :  { %v3277_v37 = vpop.permute.xlu0 %3276  ;;  %v6063_v57 = vpop.eup %6062 }
0x15d8   :  { %5678 = vmatprep.mubr.msk.f32.mxu1 %vm535_vm3, %v3134_v40  ;;  %v3140_v26 = vmul.f32 %v6063_v57, %v7364_v9 }
0x15d9   :  { %v6065_v7 = vpop.eup %6064  ;;  %5679 = vmatmul.mubr.msk.f32.gmra.mxu1 %vm535_vm3, %v3136_v38  ;;  %v3283_v44 = vpop.permute.xlu1 %3282 }
0x15da   :  { %v3138_v51 = vmul.f32 %v6065_v7, %v7368_v47 }
0x15db   :  { %v3281_v46 = vpop.permute.xlu0 %3280 }
0x15dc   :  { %5681 = vmatprep.mubr.msk.f32.mxu1 %vm535_vm3, %v3138_v51 }
0x15dd   :  { %5682 = vmatmul.mubr.msk.f32.gmra.mxu1 %vm535_vm3, %v3140_v26  ;;  %v3490_v31 = vpop.permute.xlu1 %3489 }
0x15de   :  { %5696 = vmatprep.mubr.msk.f32.mxu1 %vm415_vm2, %v3273_v1 }
0x15df   :  { %v3492_v27 = vpop.permute.xlu0 %3491 }
0x15e0   :  { %5705 = vmatprep.subr.mxu0 %v3492_v27 }
0x15e1   :  { %5697 = vmatmul.mubr.msk.f32.vlgmr.msra.gmra.mxu1 %vm415_vm2, %v3275_v4  ;;  %5706 = vmatpush3.msra.mxu0 %v3492_v27  ;;  %v3486_v32 = vpop.permute.xlu1 %3485 }
0x15e2   :  { %5699 = vmatprep.mubr.msk.f32.mxu1 %vm415_vm2, %v3277_v37  ;;  %5707 = vmatprep.subr.mxu0 %v3490_v31 }
0x15e3   :  { %v3488_v47 = vpop.permute.xlu0 %3487  ;;  %5708 = vmatpush3.msra.mxu0 %v3490_v31 }
0x15e4   :  { %5709 = vmatprep.subr.mxu0 %v3488_v47 }
0x15e5   :  { %5700 = vmatmul.mubr.msk.f32.gmra.mxu1 %vm415_vm2, %v3279_v53  ;;  %5710 = vmatpush3.msra.mxu0 %v3488_v47  ;;  %v3484_v9 = vpop.permute.xlu1 %3483 }
0x15e6   :  { %5702 = vmatprep.mubr.msk.f32.mxu1 %vm415_vm2, %v3281_v46  ;;  %5711 = vmatprep.subr.mxu0 %v3486_v32 }
0x15e7   :  { %5712 = vmatpush3.msra.mxu0 %v3486_v32  ;;  %v7459_v22 = vpop.permute.xlu0 %3634 }
0x15e8   :  { %5713 = vmatprep.subr.mxu0 %v3484_v9 }
0x15e9   :  { %5703 = vmatmul.mubr.msk.f32.gmra.mxu1 %vm415_vm2, %v3283_v44  ;;  %5714 = vmatpush3.msra.mxu0 %v3484_v9  ;;  %v3482_v29 = vpop.permute.xlu1 %3481 }
0x15ea   :  { %5715 = vmatprep.subr.mxu0 %v3482_v29 }
0x15eb   :  { %5716 = vmatpush3.msra.mxu0 %v3482_v29 }
0x15ec   :  { %5726 = vmatprep.subr.msk.mxu0 %vm415_vm2, %v7459_v22 }
0x15ed   :  { %v7503_v51 = vpop.permute.xlu1 %3632 }
0x164c   :  { %v7463_v33 = vpop.f32.mrf.mxu1 }
0x164e   :  { %v7465_v48 = vpop.f32.mrf.mxu1 }
0x1654   :  { %v7467_v10 = vpop.f32.mrf.mxu1 }
0x1656   :  { %v7469_v36 = vpop.f32.mrf.mxu1 }
0x1658   :  { %v7471_v14 = vpop.f32.mrf.mxu1 }
0x165a   :  { %v7473_v17 = vpop.f32.mrf.mxu1 }
0x1664   :  { %v7475_v52 = vpop.f32.mrf.mxu1 }
0x1666   :  { %v7477_v8 = vpop.f32.mrf.mxu1 }
0x1699   :  { %v7479_v19 = vpop.f32.mrf.mxu1 }
0x169b   :  { %v7481_v21 = vpop.f32.mrf.mxu1 }
0x169d   :  { %v7483_v13 = vpop.f32.mrf.mxu1 }
0x169f   :  { %v7485_v15 = vpop.f32.mrf.mxu1 }
0x16a1   :  { %v5698_v25 = vpop.f32.mrf.mxu1 }
0x16a2   :  { %v3392_v49 = vadd.f32 %v7237_v16, %v5698_v25 }
0x16a3   :  { %v3386_v28 = vpop.f32.mrf.mxu1 }
0x16a4   :  { %v3387_v39 = vadd.f32 %v7243_v35, %v3386_v28  ;;  %v3418_v18 = vsel %vm535_vm3, %v3392_v49, -inf }
0x16a5   :  { %3419 = vmax.xlane.f32.xlu1 %v3418_v18  ;;  %v5701_v58 = vpop.f32.mrf.mxu1 }
0x16a6   :  { %v3402_v11 = vadd.f32 %v7250_v34, %v5701_v58  ;;  %v3415_v4 = vsel %vm535_vm3, %v3387_v39, -inf }
0x16a7   :  { %3416 = vmax.xlane.f32.xlu0 %v3415_v4  ;;  %v3396_v1 = vpop.f32.mrf.mxu1 }
0x16a8   :  { %v3397_v5 = vadd.f32 %v7257_v55, %v3396_v1  ;;  %v3424_v40 = vsel %vm535_vm3, %v3402_v11, -inf }
0x16a9   :  { %v5704_v62 = vpop.f32.mrf.mxu1 }
0x16aa   :  { %v3412_v53 = vadd.f32 %v7263_v41, %v5704_v62  ;;  %v3421_v7 = vsel %vm535_vm3, %v3397_v5, -inf }
0x16ab   :  { %3425 = vmax.xlane.f32.xlu0 %v3424_v40  ;;  %v3406_v37 = vpop.f32.mrf.mxu1 }
0x16ac   :  { %v3430_v38 = vsel %vm535_vm3, %v3412_v53, -inf  ;;  %v3407_v57 = vadd.f32 %v7271_v63, %v3406_v37 }
0x16ad   :  { %3431 = vmax.xlane.f32.xlu1 %v3430_v38 }
0x16ae   :  { %v3427_v44 = vsel %vm535_vm3, %v3407_v57, -inf }
0x16af   :  { %3422 = vmax.xlane.f32.xlu0 %v3421_v7 }
0x16b3   :  { %3428 = vmax.xlane.f32.xlu0 %v3427_v44 }
0x16be   :  { %3628 = vrot.lane.b32.xlu1 %v7133_v43, %s6166_s21 }
0x16c9   :  { %3630 = vrot.lane.b32.xlu0 %v7127_v56, %s6166_s21 }
0x172e   :  { %v3420_v46 = vpop.xlane.xlu1 %3419 }
0x172f   :  { %v3434_v26 = vsub.f32 %v3392_v49, %v3420_v46 }
0x1730   :  { %v3417_v31 = vpop.xlane.xlu0 %3416 }
0x1731   :  { %v3441_v27 = vmul.f32 1.442695, %v3434_v26  ;;  %v3433_v32 = vsub.f32 %v3387_v39, %v3417_v31 }
0x1733   :  { %6066 = vpow2.f32 %v3441_v27  ;;  %v3439_v47 = vmul.f32 1.442695, %v3433_v32 }
0x1734   :  { %v3426_v9 = vpop.xlane.xlu0 %3425 }
0x1735   :  { %6068 = vpow2.f32 %v3439_v47  ;;  %v3436_v29 = vsub.f32 %v3402_v11, %v3426_v9 }
0x1736   :  { %v3432_v7 = vpop.xlane.xlu1 %3431 }
0x1737   :  { %v3445_v25 = vmul.f32 1.442695, %v3436_v29  ;;  %v3438_v44 = vsub.f32 %v3412_v53, %v3432_v7 }
0x1738   :  { %v3423_v28 = vpop.xlane.xlu0 %3422 }
0x1739   :  { %6070 = vpow2.f32 %v3445_v25  ;;  %v3435_v18 = vsub.f32 %v3397_v5, %v3423_v28  ;;  %v3449_v26 = vmul.f32 1.442695, %v3438_v44 }
0x173a   :  { %v3629_v53 = vpop.permute.xlu1 %3628 }
0x173b   :  { %v3443_v58 = vmul.f32 1.442695, %v3435_v18 }
0x173c   :  { %v3429_v5 = vpop.xlane.xlu0 %3428 }
0x173d   :  { %6072 = vpow2.f32 %v3443_v58  ;;  %v3437_v38 = vsub.f32 %v3407_v57, %v3429_v5 }
0x173f   :  { %v3447_v46 = vmul.f32 1.442695, %v3437_v38 }
0x1740   :  { %v6067_v4 = vpop.eup %6066  ;;  %v3631_v57 = vpop.permute.xlu0 %3630 }
0x1741   :  { %v3454_v1 = vsel %vm535_vm3, %v6067_v4, 0.0  ;;  %6074 = vpow2.f32 %v3447_v46 }
0x1742   :  { %v6069_v62 = vpop.eup %6068  ;;  %3455 = vadd.xlane.f32.xlu1 %v3454_v1  ;;  %6076 = vpow2.f32 %v3449_v26 }
0x1743   :  { %v3451_v49 = vsel %vm535_vm3, %v6069_v62, 0.0 }
0x1744   :  { %3452 = vadd.xlane.f32.xlu0 %v3451_v49 }
0x1746   :  { %v6071_v39 = vpop.eup %6070 }
0x1747   :  { %v3460_v40 = vsel %vm535_vm3, %v6071_v39, 0.0 }
0x1748   :  { %3461 = vadd.xlane.f32.xlu1 %v3460_v40 }
0x174a   :  { %v6073_v37 = vpop.eup %6072 }
0x174b   :  { %v3457_v11 = vsel %vm535_vm3, %v6073_v37, 0.0 }
0x174c   :  { %3458 = vadd.xlane.f32.xlu0 %v3457_v11 }
0x174e   :  { %v6075_v31 = vpop.eup %6074 }
0x174f   :  { %v3463_v27 = vsel %vm535_vm3, %v6075_v31, 0.0  ;;  %v6077_v32 = vpop.eup %6076 }
0x1750   :  { %v3466_v47 = vsel %vm535_vm3, %v6077_v32, 0.0 }
0x1759   :  { %3624 = vrot.lane.b32.xlu1 %v7113_v2, %s6166_s21 }
0x1762   :  { %3626 = vrot.lane.b32.xlu0 %v7123_v50, %s6166_s21 }
0x177d   :  { %3464 = vadd.xlane.f32.xlu1 %v3463_v27 }
0x1781   :  { %3467 = vadd.xlane.f32.xlu0 %v3466_v47 }
0x178e   :  { %3614 = vrot.lane.b32.xlu1 %v7123_v50, %s6167_s22 }
0x1792   :  { %3618 = vrot.lane.b32.xlu1 %v7127_v56, %s6167_s22 }
0x1796   :  { %3622 = vrot.lane.b32.xlu1 %v7117_v30, %s6167_s22 }
0x1797   :  { %3612 = vrot.lane.b32.xlu0 %v7113_v2, %s6167_s22 }
0x179b   :  { %3616 = vrot.lane.b32.xlu0 %v7133_v43, %s6167_s22 }
0x179f   :  { %3620 = vrot.lane.b32.xlu0 %v7119_v42, %s6167_s22 }
0x17cb   :  { %v3456_v9 = vpop.xlane.xlu1 %3455 }
0x17cc   :  { %6078 = vrcp.f32 %v3456_v9 }
0x17cd   :  { %v3453_v29 = vpop.xlane.xlu0 %3452 }
0x17ce   :  { %6080 = vrcp.f32 %v3453_v29 }
0x17d1   :  { %v3462_v25 = vpop.xlane.xlu1 %3461 }
0x17d2   :  { %6082 = vrcp.f32 %v3462_v25 }
0x17d5   :  { %v3459_v28 = vpop.xlane.xlu0 %3458 }
0x17d6   :  { %6084 = vrcp.f32 %v3459_v28 }
0x17d9   :  { %v6079_v18 = vpop.eup %6078 }
0x17da   :  { %v3472_v49 = vmul.f32 %v6079_v18, %v6067_v4  ;;  %v3625_v4 = vpop.permute.xlu1 %3624 }
0x17db   :  { %v6081_v58 = vpop.eup %6080 }
0x17dc   :  { %v3470_v1 = vmul.f32 %v6081_v58, %v6069_v62 }
0x17de   :  { %5717 = vmatprep.mubr.msk.f32.mxu0 %vm535_vm3, %v3470_v1 }
0x17df   :  { %5718 = vmatmul.mubr.msk.f32.vlgmr.msra.gmra.mxu0 %vm535_vm3, %v3472_v49  ;;  %v6083_v40 = vpop.eup %6082 }
0x17e0   :  { %5727 = vmatpush3.xpose.msk.msra.mxu0 %vm415_vm2, %v7459_v22  ;;  %v3476_v62 = vmul.f32 %v6083_v40, %v6071_v39  ;;  %v3627_v22 = vpop.permute.xlu0 %3626 }
0x17e1   :  { %5728 = vmatprep.subr.msk.mxu0 %vm415_vm2, %v7503_v51 }
0x17e3   :  { %v6085_v11 = vpop.eup %6084 }
0x17e4   :  { %5729 = vmatpush3.xpose.msk.msra.mxu0 %vm415_vm2, %v7503_v51  ;;  %v3474_v5 = vmul.f32 %v6085_v11, %v6073_v37 }
0x17e5   :  { %5730 = vmatprep.subr.msk.mxu0 %vm415_vm2, %v3631_v57 }
0x17e6   :  { %5720 = vmatprep.mubr.msk.f32.mxu0 %vm535_vm3, %v3474_v5 }
0x17e7   :  { %5721 = vmatmul.mubr.msk.f32.gmra.mxu0 %vm535_vm3, %v3476_v62 }
0x17e8   :  { %5731 = vmatpush3.xpose.msk.msra.mxu0 %vm415_vm2, %v3631_v57 }
0x17e9   :  { %5732 = vmatprep.subr.msk.mxu0 %vm415_vm2, %v3629_v53 }
0x17ec   :  { %5733 = vmatpush3.xpose.msk.msra.mxu0 %vm415_vm2, %v3629_v53 }
0x17ed   :  { %5734 = vmatprep.subr.msk.mxu0 %vm415_vm2, %v3627_v22 }
0x17f0   :  { %5735 = vmatpush3.xpose.msk.msra.mxu0 %vm415_vm2, %v3627_v22 }
0x17f1   :  { %5736 = vmatprep.subr.msk.mxu0 %vm415_vm2, %v3625_v4 }
0x17f4   :  { %5737 = vmatpush3.xpose.msk.msra.mxu0 %vm415_vm2, %v3625_v4 }
0x1806   :  { %v3465_v51 = vpop.xlane.xlu1 %3464 }
0x1807   :  { %6086 = vrcp.f32 %v3465_v51 }
0x180a   :  { %v3468_v39 = vpop.xlane.xlu0 %3467  ;;  %v3615_v26 = vpop.permute.xlu1 %3614 }
0x180b   :  { %6088 = vrcp.f32 %v3468_v39 }
0x180e   :  { %v3613_v7 = vpop.permute.xlu0 %3612  ;;  %v3619_v47 = vpop.permute.xlu1 %3618 }
0x1812   :  { %v3617_v27 = vpop.permute.xlu0 %3616 }
0x1814   :  { %v6087_v37 = vpop.eup %6086 }
0x1815   :  { %v3478_v38 = vmul.f32 %v6087_v37, %v6075_v31  ;;  %v3623_v31 = vpop.permute.xlu1 %3622 }
0x1816   :  { %v3621_v53 = vpop.permute.xlu0 %3620 }
0x1817   :  { %5723 = vmatprep.mubr.msk.f32.mxu0 %vm535_vm3, %v3478_v38 }
0x1818   :  { %v6089_v44 = vpop.eup %6088 }
0x1819   :  { %v3480_v46 = vmul.f32 %v6089_v44, %v6077_v32 }
0x181b   :  { %5724 = vmatmul.mubr.msk.f32.gmra.mxu0 %vm535_vm3, %v3480_v46 }
0x181c   :  { %5738 = vmatprep.mubr.msk.f32.mxu0 %vm415_vm2, %v3613_v7 }
0x181f   :  { %5739 = vmatmul.mubr.msk.f32.vlgmr.msra.gmra.mxu0 %vm415_vm2, %v3615_v26 }
0x1820   :  { %5741 = vmatprep.mubr.msk.f32.mxu0 %vm415_vm2, %v3617_v27 }
0x1823   :  { %5742 = vmatmul.mubr.msk.f32.gmra.mxu0 %vm415_vm2, %v3619_v47 }
0x1824   :  { %5744 = vmatprep.mubr.msk.f32.mxu0 %vm415_vm2, %v3621_v53 }
0x1827   :  { %5745 = vmatmul.mubr.msk.f32.gmra.mxu0 %vm415_vm2, %v3623_v31 }
0x189f   :  { %v7553_v32 = vpop.f32.mrf.mxu0 }
0x18a1   :  { %v7555_v57 = vpop.f32.mrf.mxu0 }
0x18a7   :  { %v7557_v9 = vpop.f32.mrf.mxu0 }
0x18a9   :  { %v7559_v29 = vpop.f32.mrf.mxu0 }
0x18db   :  { %v7561_v25 = vpop.f32.mrf.mxu0 }
0x18dd   :  { %v7563_v28 = vpop.f32.mrf.mxu0 }
0x18df   :  { %v5740_v18 = vpop.f32.mrf.mxu0 }
0x18e0   :  { %v3732_v58 = vadd.f32 %v7237_v16, %v5740_v18 }
0x18e1   :  { %v3726_v1 = vpop.f32.mrf.mxu0 }
0x18e2   :  { %v3727_v49 = vadd.f32 %v7243_v35, %v3726_v1  ;;  %v3758_v40 = vsel %vm535_vm3, %v3732_v58, -inf }
0x18e3   :  { %3759 = vmax.xlane.f32.xlu1 %v3758_v40  ;;  %v5743_v11 = vpop.f32.mrf.mxu0 }
0x18e4   :  { %v3742_v5 = vadd.f32 %v7250_v34, %v5743_v11  ;;  %v3755_v62 = vsel %vm535_vm3, %v3727_v49, -inf }
0x18e5   :  { %3756 = vmax.xlane.f32.xlu0 %v3755_v62  ;;  %v3736_v22 = vpop.f32.mrf.mxu0 }
0x18e6   :  { %v3737_v51 = vadd.f32 %v7257_v55, %v3736_v22  ;;  %v3764_v16 = vsel %vm535_vm3, %v3742_v5, -inf }
0x18e7   :  { %v5746_v4 = vpop.f32.mrf.mxu0 }
0x18e8   :  { %v3752_v39 = vadd.f32 %v7263_v41, %v5746_v4  ;;  %v3761_v34 = vsel %vm535_vm3, %v3737_v51, -inf }
0x18e9   :  { %3765 = vmax.xlane.f32.xlu0 %v3764_v16  ;;  %v3746_v37 = vpop.f32.mrf.mxu0 }
0x18ea   :  { %v3770_v35 = vsel %vm535_vm3, %v3752_v39, -inf  ;;  %v3747_v38 = vadd.f32 %v7271_v63, %v3746_v37 }
0x18eb   :  { %3771 = vmax.xlane.f32.xlu1 %v3770_v35 }
0x18ec   :  { %v3767_v7 = vsel %vm535_vm3, %v3747_v38, -inf }
0x18ed   :  { %3762 = vmax.xlane.f32.xlu0 %v3761_v34 }
0x18f1   :  { %3768 = vmax.xlane.f32.xlu0 %v3767_v7 }
0x18fc   :  { %3829 = vrot.lane.b32.xlu1 %v7119_v42, %s6168_s23 }
0x1900   :  { %3827 = vrot.lane.b32.xlu1 %v7127_v56, %s6168_s23 }
0x1904   :  { %3825 = vrot.lane.b32.xlu1 %v7133_v43, %s6168_s23 }
0x1907   :  { %3831 = vrot.lane.b32.xlu0 %v7117_v30, %s6168_s23 }
0x196c   :  { %v3760_v55 = vpop.xlane.xlu1 %3759 }
0x196d   :  { %v3774_v41 = vsub.f32 %v3732_v58, %v3760_v55 }
0x196e   :  { %v3757_v63 = vpop.xlane.xlu0 %3756 }
0x196f   :  { %v3781_v44 = vmul.f32 1.442695, %v3774_v41  ;;  %v3773_v46 = vsub.f32 %v3727_v49, %v3757_v63 }
0x1971   :  { %6090 = vpow2.f32 %v3781_v44  ;;  %v3779_v26 = vmul.f32 1.442695, %v3773_v46 }
0x1972   :  { %v3766_v27 = vpop.xlane.xlu0 %3765 }
0x1973   :  { %6092 = vpow2.f32 %v3779_v26  ;;  %v3776_v47 = vsub.f32 %v3742_v5, %v3766_v27 }
0x1974   :  { %v3772_v42 = vpop.xlane.xlu1 %3771 }
0x1975   :  { %v3785_v53 = vmul.f32 1.442695, %v3776_v47  ;;  %v3778_v31 = vsub.f32 %v3752_v39, %v3772_v42  ;;  %v2361_v42 = vld [vmem:[%s7928_s1 + $0x1c0] sm:$0xff] }
0x1976   :  { %v3763_v56 = vpop.xlane.xlu0 %3762 }
0x1977   :  { %6094 = vpow2.f32 %v3785_v53  ;;  %v3789_v18 = vmul.f32 1.442695, %v3778_v31  ;;  %v3775_v43 = vsub.f32 %v3737_v51, %v3763_v56  ;;  %v2360_v53 = vld [vmem:[%s7928_s1 + $0x1b8] sm:$0xff]  ;;  %v2359_v31 = vld [vmem:[%s7928_s1 + $0x1b0] sm:$0xff]  ;;  %v2358_v56 = vld [vmem:[%s7928_s1 + $0x1a8] sm:$0xff] }
0x1978   :  { %v3830_v1 = vpop.permute.xlu1 %3829 }
0x1979   :  { %6096 = vpow2.f32 %v3789_v18  ;;  %v3783_v30 = vmul.f32 1.442695, %v3775_v43 }
0x197a   :  { %v3769_v40 = vpop.xlane.xlu0 %3768 }
0x197b   :  { %6098 = vpow2.f32 %v3783_v30  ;;  %v3777_v58 = vsub.f32 %v3747_v38, %v3769_v40 }
0x197c   :  { %v3828_v62 = vpop.permute.xlu1 %3827 }
0x197d   :  { %v3787_v11 = vmul.f32 1.442695, %v3777_v58 }
0x197e   :  { %v7585_v49 = vpop.eup %6090  ;;  %v3832_v22 = vpop.permute.xlu0 %3831 }
0x197f   :  { %6100 = vpow2.f32 %v3787_v11  ;;  %5747 = vmatprep.subr.mxu1 %v3832_v22  ;;  %v3794_v5 = vsel %vm535_vm3, %v7585_v49, 0.0 }
0x1980   :  { %v6093_v4 = vpop.eup %6092  ;;  %5748 = vmatpush3.msra.mxu1 %v3832_v22  ;;  %3795 = vadd.xlane.f32.xlu1 %v3794_v5  ;;  %v3826_v16 = vpop.permute.xlu1 %3825 }
0x1981   :  { %5749 = vmatprep.subr.mxu1 %v3830_v1  ;;  %v3791_v51 = vsel %vm535_vm3, %v6093_v4, 0.0 }
0x1982   :  { %3792 = vadd.xlane.f32.xlu0 %v3791_v51  ;;  %5750 = vmatpush3.msra.mxu1 %v3830_v1 }
0x1983   :  { %5751 = vmatprep.subr.mxu1 %v3828_v62 }
0x1984   :  { %v6095_v39 = vpop.eup %6094  ;;  %5752 = vmatpush3.msra.mxu1 %v3828_v62 }
0x1985   :  { %5753 = vmatprep.subr.mxu1 %v3826_v16  ;;  %v3800_v37 = vsel %vm535_vm3, %v6095_v39, 0.0 }
0x1986   :  { %v6097_v35 = vpop.eup %6096  ;;  %3801 = vadd.xlane.f32.xlu1 %v3800_v37  ;;  %5754 = vmatpush3.msra.mxu1 %v3826_v16 }
0x1987   :  { %v3806_v7 = vsel %vm535_vm3, %v6097_v35, 0.0 }
0x1988   :  { %v6099_v38 = vpop.eup %6098 }
0x1989   :  { %v3797_v34 = vsel %vm535_vm3, %v6099_v38, 0.0 }
0x198a   :  { %3798 = vadd.xlane.f32.xlu0 %v3797_v34  ;;  %3807 = vadd.xlane.f32.xlu1 %v3806_v7 }
0x198c   :  { %v6101_v55 = vpop.eup %6100 }
0x198d   :  { %v3803_v41 = vsel %vm535_vm3, %v6101_v55, 0.0 }
0x198e   :  { %3804 = vadd.xlane.f32.xlu0 %v3803_v41 }
0x199b   :  { %3821 = vrot.lane.b32.xlu1 %v7113_v2, %s6168_s23 }
0x199f   :  { %3960 = vrot.lane.b32.xlu1 %v7475_v52, %s6169_s24 }
0x19a3   :  { %3984 = vrot.lane.b32.xlu1 %v7553_v32, %s6170_s25 }
0x19a4   :  { %3823 = vrot.lane.b32.xlu0 %v7123_v50, %s6168_s23 }
0x19a7   :  { %3964 = vrot.lane.b32.xlu1 %v7479_v19, %s6169_s24 }
0x19a8   :  { %3958 = vrot.lane.b32.xlu0 %v7477_v8, %s6169_s24 }
0x19ab   :  { %3988 = vrot.lane.b32.xlu1 %v7557_v9, %s6170_s25 }
0x19ac   :  { %3982 = vrot.lane.b32.xlu0 %v7555_v57, %s6170_s25 }
0x19af   :  { %3968 = vrot.lane.b32.xlu1 %v7483_v13, %s6169_s24 }
0x19b0   :  { %3962 = vrot.lane.b32.xlu0 %v7481_v21, %s6169_s24 }
0x19b3   :  { %3992 = vrot.lane.b32.xlu1 %v7561_v25, %s6170_s25 }
0x19b4   :  { %3986 = vrot.lane.b32.xlu0 %v7559_v29, %s6170_s25 }
0x19b8   :  { %3966 = vrot.lane.b32.xlu0 %v7485_v15, %s6169_s24 }
0x19bc   :  { %3990 = vrot.lane.b32.xlu0 %v7563_v28, %s6170_s25 }
0x1a09   :  { %v3796_v2 = vpop.xlane.xlu1 %3795 }
0x1a0b   :  { %v3793_v50 = vpop.xlane.xlu0 %3792 }
0x1a0c   :  { %6102 = vrcp.f32 %v3793_v50 }
0x1a0d   :  { %6104 = vrcp.f32 %v3796_v2 }
0x1a0f   :  { %v3802_v52 = vpop.xlane.xlu1 %3801 }
0x1a10   :  { %6106 = vrcp.f32 %v3802_v52 }
0x1a13   :  { %v3799_v8 = vpop.xlane.xlu0 %3798  ;;  %v3808_v19 = vpop.xlane.xlu1 %3807 }
0x1a14   :  { %6108 = vrcp.f32 %v3799_v8 }
0x1a15   :  { %6110 = vrcp.f32 %v3808_v19 }
0x1a17   :  { %v3805_v21 = vpop.xlane.xlu0 %3804  ;;  %v3822_v15 = vpop.permute.xlu1 %3821 }
0x1a18   :  { %6112 = vrcp.f32 %v3805_v21 }
0x1a19   :  { %v6103_v13 = vpop.eup %6102 }
0x1a1a   :  { %v3810_v32 = vmul.f32 %v6103_v13, %v6093_v4  ;;  %v6105_v57 = vpop.eup %6104 }
0x1a1b   :  { %v3824_v9 = vpop.permute.xlu0 %3823  ;;  %v3812_v29 = vmul.f32 %v6105_v57, %v7585_v49  ;;  %v3961_v11 = vpop.permute.xlu1 %3960 }
0x1a1c   :  { %5755 = vmatprep.subr.mxu1 %v3824_v9  ;;  %5759 = vmatprep.mubr.msk.f32.mxu1 %vm535_vm3, %v3810_v32 }
0x1a1d   :  { %5756 = vmatpush3.msra.mxu1 %v3824_v9  ;;  %v6107_v25 = vpop.eup %6106 }
0x1a1e   :  { %5757 = vmatprep.subr.mxu1 %v3822_v15  ;;  %v3816_v44 = vmul.f32 %v6107_v25, %v6095_v39 }
0x1a1f   :  { %5758 = vmatpush3.msra.mxu1 %v3822_v15  ;;  %v3959_v49 = vpop.permute.xlu0 %3958  ;;  %v3985_v62 = vpop.permute.xlu1 %3984 }
0x1a20   :  { %5760 = vmatmul.mubr.msk.f32.vlgmr.msra.gmra.mxu1 %vm535_vm3, %v3812_v29  ;;  %5768 = vmatprep.subr.mxu1 %v2361_v42  ;;  %v4024_v7 = vsel %vm415_vm2, %v7465_v48, %v3959_v49 }
0x1a21   :  { %v6109_v28 = vpop.eup %6108  ;;  %5769 = vmatpush3.msra.mxu1 %v2361_v42 }
0x1a22   :  { %v3814_v63 = vmul.f32 %v6109_v28, %v6099_v38  ;;  %v6111_v46 = vpop.eup %6110  ;;  %5770 = vmatprep.subr.mxu1 %v2360_v53 }
0x1a23   :  { %v3820_v47 = vmul.f32 %v6111_v46, %v6097_v35  ;;  %5771 = vmatpush3.msra.mxu1 %v2360_v53  ;;  %v3983_v22 = vpop.permute.xlu0 %3982  ;;  %v3965_v5 = vpop.permute.xlu1 %3964 }
0x1a24   :  { %5762 = vmatprep.mubr.msk.f32.mxu1 %vm535_vm3, %v3814_v63  ;;  %5772 = vmatprep.subr.mxu1 %v2359_v31  ;;  %v4030_v41 = vsel %vm1831_vm4, %v4024_v7, %v3983_v22 }
0x1a25   :  { %v6113_v26 = vpop.eup %6112  ;;  %5763 = vmatmul.mubr.msk.f32.gmra.mxu1 %vm535_vm3, %v3816_v44 }
0x1a26   :  { %v3818_v27 = vmul.f32 %v6113_v26, %v6101_v55  ;;  %5773 = vmatpush3.msra.mxu1 %v2359_v31  ;;  %v4025_v55 = vsel %vm415_vm2, %v7463_v33, %v3961_v11  ;;  %v4027_v33 = vsel %vm415_vm2, %v7467_v10, %v3965_v5 }
0x1a27   :  { %5774 = vmatprep.subr.mxu1 %v2358_v56  ;;  %v3963_v4 = vpop.permute.xlu0 %3962  ;;  %v3989_v51 = vpop.permute.xlu1 %3988  ;;  %v4031_v50 = vsel %vm1831_vm4, %v4025_v55, %v3985_v62 }
0x1a28   :  { %5765 = vmatprep.mubr.msk.f32.mxu1 %vm535_vm3, %v3818_v27  ;;  %5775 = vmatpush3.msra.mxu1 %v2358_v56  ;;  %v4026_v48 = vsel %vm415_vm2, %v7469_v36, %v3963_v4  ;;  %v4033_v32 = vsel %vm1831_vm4, %v4027_v33, %v3989_v51 }
0x1a29   :  { %5766 = vmatmul.mubr.msk.f32.gmra.mxu1 %vm535_vm3, %v3820_v47 }
0x1a2b   :  { %v3987_v39 = vpop.permute.xlu0 %3986  ;;  %v3969_v16 = vpop.permute.xlu1 %3968 }
0x1a2c   :  { %v4032_v21 = vsel %vm1831_vm4, %v4026_v48, %v3987_v39  ;;  %v4029_v10 = vsel %vm415_vm2, %v7471_v14, %v3969_v16 }
0x1a2f   :  { %v3967_v37 = vpop.permute.xlu0 %3966  ;;  %v3993_v35 = vpop.permute.xlu1 %3992 }
0x1a30   :  { %v4028_v15 = vsel %vm415_vm2, %v7473_v17, %v3967_v37  ;;  %v4035_v28 = vsel %vm1831_vm4, %v4029_v10, %v3993_v35  ;;  %v7680_v17 = vld [vmem:[%s7928_s1 + $0x268] sm:$0xff] }
0x1a31   :  { %v4164_v14 = vrot.slane %v7680_v17, %v1966_v45 }
0x1a33   :  { %v3991_v38 = vpop.permute.xlu0 %3990 }
0x1a34   :  { %v4034_v36 = vsel %vm1831_vm4, %v4028_v15, %v3991_v38 }
0x1ae0   :  { %v5761_v18 = vpop.f32.mrf.mxu1 }
0x1ae1   :  { %4008 = vrot.lane.b32.xlu1 %v5761_v18, %s6171_s9 }
0x1ae2   :  { %v3923_v43 = vpop.f32.mrf.mxu1 }
0x1ae3   :  { %4006 = vrot.lane.b32.xlu0 %v3923_v43, %s6171_s9 }
0x1ae5   :  { %v5764_v1 = vpop.f32.mrf.mxu1 }
0x1ae6   :  { %4012 = vrot.lane.b32.xlu1 %v5764_v1, %s6171_s9 }
0x1ae7   :  { %v3933_v30 = vpop.f32.mrf.mxu1 }
0x1ae8   :  { %4010 = vrot.lane.b32.xlu0 %v3933_v30, %s6171_s9 }
0x1ae9   :  { %v5767_v40 = vpop.f32.mrf.mxu1 }
0x1aea   :  { %4016 = vrot.lane.b32.xlu1 %v5767_v40, %s6171_s9 }
0x1aeb   :  { %v3943_v58 = vpop.f32.mrf.mxu1 }
0x1aec   :  { %4014 = vrot.lane.b32.xlu0 %v3943_v58, %s6171_s9 }
0x1b53   :  { %v4009_v34 = vpop.permute.xlu1 %4008 }
0x1b54   :  { %v4037_v8 = vsel %vm1838_vm5, %v4031_v50, %v4009_v34 }
0x1b55   :  { %v4007_v2 = vpop.permute.xlu0 %4006 }
0x1b56   :  { %v4036_v52 = vsel %vm1838_vm5, %v4030_v41, %v4007_v2 }
0x1b57   :  { %5776 = vmatprep.mubr.msk.f32.mxu1 %vm180_vm1, %v4036_v52 }
0x1b58   :  { %5777 = vmatmul.mubr.msk.f32.vlgmr.msra.gmra.mxu1 %vm180_vm1, %v4037_v8  ;;  %v4013_v19 = vpop.permute.xlu1 %4012 }
0x1b59   :  { %v4039_v9 = vsel %vm1838_vm5, %v4033_v32, %v4013_v19 }
0x1b5a   :  { %v4011_v13 = vpop.permute.xlu0 %4010 }
0x1b5b   :  { %v4038_v57 = vsel %vm1838_vm5, %v4032_v21, %v4011_v13 }
0x1b5c   :  { %5779 = vmatprep.mubr.msk.f32.mxu1 %vm180_vm1, %v4038_v57  ;;  %v4017_v29 = vpop.permute.xlu1 %4016 }
0x1b5d   :  { %5780 = vmatmul.mubr.msk.f32.gmra.mxu1 %vm180_vm1, %v4039_v9  ;;  %v4041_v44 = vsel %vm1838_vm5, %v4035_v28, %v4017_v29  ;;  %v2365_v28 = vld [vmem:[%s7928_s1 + $0x1e0] sm:$0xff] }
0x1b5e   :  { %v4015_v25 = vpop.permute.xlu0 %4014  ;;  %5785 = vmatprep.subr.mxu0 %v2365_v28 }
0x1b5f   :  { %v4040_v63 = vsel %vm1838_vm5, %v4034_v36, %v4015_v25  ;;  %5786 = vmatpush3.msra.mxu0 %v2365_v28  ;;  %v2375_v28 = vld [vmem:[%s7928_s1 + $0x230] sm:$0xff] }
0x1b60   :  { %5782 = vmatprep.mubr.msk.f32.mxu1 %vm180_vm1, %v4040_v63  ;;  %v2364_v63 = vld [vmem:[%s7928_s1 + $0x1d8] sm:$0xff] }
0x1b61   :  { %5783 = vmatmul.mubr.msk.f32.gmra.mxu1 %vm180_vm1, %v4041_v44  ;;  %v2363_v44 = vld [vmem:[%s7928_s1 + $0x1d0] sm:$0xff]  ;;  %5787 = vmatprep.subr.mxu0 %v2364_v63 }
0x1b62   :  { %5788 = vmatpush3.msra.mxu0 %v2364_v63  ;;  %v2374_v63 = vld [vmem:[%s7928_s1 + $0x228] sm:$0xff] }
0x1b63   :  { %5789 = vmatprep.subr.mxu0 %v2363_v44 }
0x1b64   :  { %5790 = vmatpush3.msra.mxu0 %v2363_v44  ;;  %v2373_v44 = vld [vmem:[%s7928_s1 + $0x220] sm:$0xff] }
0x1c18   :  { %v5778_v46 = vpop.f32.mrf.mxu1 }
0x1c19   :  { %v4156_v26 = vadd.f32 %v5778_v46, %v7015_v61 }
0x1c1a   :  { %v4126_v27 = vpop.f32.mrf.mxu1 }
0x1c1b   :  { %v7686_v47 = vadd.f32 %v4164_v14, %v4156_v26  ;;  %v4155_v42 = vadd.f32 %v4126_v27, %v7018_v54 }
0x1c1d   :  { %v7689_v53 = vadd.f32 %v4164_v14, %v4155_v42  ;;  %v5781_v31 = vpop.f32.mrf.mxu1  ;;  %v4174_v56 = vsel %vm180_vm1, %v7686_v47, 0.0 }
0x1c1e   :  { %v4158_v18 = vadd.f32 %v5781_v31, %v7025_v20  ;;  %4175 = vadd.xlane.f32.xlu1 %v4174_v56 }
0x1c1f   :  { %v4136_v43 = vpop.f32.mrf.mxu1  ;;  %v4171_v45 = vsel %vm180_vm1, %v7689_v53, 0.0 }
0x1c20   :  { %v7696_v1 = vadd.f32 %v4164_v14, %v4158_v18  ;;  %v4157_v61 = vadd.f32 %v4136_v43, %v7028_v23  ;;  %4172 = vadd.xlane.f32.xlu0 %v4171_v45 }
0x1c21   :  { %v5784_v30 = vpop.f32.mrf.mxu1 }
0x1c22   :  { %v4160_v54 = vadd.f32 %v5784_v30, %v7033_v3  ;;  %v4180_v40 = vsel %vm180_vm1, %v7696_v1, 0.0  ;;  %v7702_v58 = vadd.f32 %v4164_v14, %v4157_v61 }
0x1c23   :  { %v4146_v11 = vpop.f32.mrf.mxu1 }
0x1c24   :  { %v7704_v20 = vadd.f32 %v4164_v14, %v4160_v54  ;;  %v4159_v49 = vadd.f32 %v4146_v11, %v7038_v59  ;;  %4181 = vadd.xlane.f32.xlu0 %v4180_v40  ;;  %v4177_v23 = vsel %vm180_vm1, %v7702_v58, 0.0 }
0x1c26   :  { %v4186_v62 = vsel %vm180_vm1, %v7704_v20, 0.0  ;;  %v7709_v22 = vadd.f32 %v4164_v14, %v4159_v49  ;;  %v2362_v14 = vld [vmem:[%s7928_s1 + $0x1c8] sm:$0xff] }
0x1c27   :  { %4187 = vadd.xlane.f32.xlu1 %v4186_v62  ;;  %5791 = vmatprep.subr.mxu0 %v2362_v14 }
0x1c28   :  { %4178 = vadd.xlane.f32.xlu0 %v4177_v23  ;;  %v4183_v3 = vsel %vm180_vm1, %v7709_v22, 0.0  ;;  %5792 = vmatpush3.msra.mxu0 %v2362_v14  ;;  %v2372_v14 = vld [vmem:[%s7928_s1 + $0x218] sm:$0xff] }
0x1c2c   :  { %4184 = vadd.xlane.f32.xlu0 %v4183_v3 }
0x1ca7   :  { %v4176_v5 = vpop.xlane.xlu1 %4175 }
0x1ca8   :  { %v4190_v4 = vmul.f32 0.03125, %v4176_v5 }
0x1ca9   :  { %v4173_v51 = vpop.xlane.xlu0 %4172 }
0x1caa   :  { %v7716_v59 = vsub.f32 %v7686_v47, %v4190_v4  ;;  %v4189_v39 = vmul.f32 0.03125, %v4173_v51  ;;  %v4252_v4 = vrot.slane %v7680_v17, %v2054_v0 }
0x1cac   :  { %v7719_v16 = vsub.f32 %v7689_v53, %v4189_v39  ;;  %v4202_v37 = vmul.f32 %v7716_v59, %v7716_v59 }
0x1cad   :  { %v4182_v35 = vpop.xlane.xlu0 %4181 }
0x1cae   :  { %v4192_v38 = vmul.f32 0.03125, %v4182_v35  ;;  %v4210_v34 = vsel %vm180_vm1, %v4202_v37, 0.0  ;;  %v4201_v7 = vmul.f32 %v7719_v16, %v7719_v16 }
0x1caf   :  { %4211 = vadd.xlane.f32.xlu1 %v4210_v34 }
0x1cb0   :  { %v7727_v55 = vsub.f32 %v7696_v1, %v4192_v38  ;;  %v4188_v41 = vpop.xlane.xlu1 %4187  ;;  %v4207_v2 = vsel %vm180_vm1, %v4201_v7, 0.0  ;;  %v4262_v38 = vrot.slane %v7680_v17, %v2064_v6 }
0x1cb1   :  { %v4194_v50 = vmul.f32 0.03125, %v4188_v41  ;;  %v4179_v52 = vpop.xlane.xlu0 %4178  ;;  %4208 = vadd.xlane.f32.xlu0 %v4207_v2 }
0x1cb2   :  { %v4191_v8 = vmul.f32 0.03125, %v4179_v52  ;;  %v4204_v19 = vmul.f32 %v7727_v55, %v7727_v55 }
0x1cb3   :  { %v7733_v48 = vsub.f32 %v7704_v20, %v4194_v50 }
0x1cb4   :  { %v7736_v33 = vsub.f32 %v7702_v58, %v4191_v8  ;;  %v4216_v21 = vsel %vm180_vm1, %v4204_v19, 0.0 }
0x1cb5   :  { %v4185_v13 = vpop.xlane.xlu0 %4184  ;;  %4217 = vadd.xlane.f32.xlu1 %v4216_v21  ;;  %v4206_v32 = vmul.f32 %v7733_v48, %v7733_v48 }
0x1cb6   :  { %v4193_v57 = vmul.f32 0.03125, %v4185_v13  ;;  %v4203_v9 = vmul.f32 %v7736_v33, %v7736_v33 }
0x1cb7   :  { %v4222_v15 = vsel %vm180_vm1, %v4206_v32, 0.0 }
0x1cb8   :  { %v7745_v29 = vsub.f32 %v7709_v22, %v4193_v57  ;;  %v4213_v10 = vsel %vm180_vm1, %v4203_v9, 0.0 }
0x1cb9   :  { %4214 = vadd.xlane.f32.xlu0 %v4213_v10  ;;  %4223 = vadd.xlane.f32.xlu1 %v4222_v15  ;;  %v2378_v10 = vld [vmem:[%s7928_s1 + $0x248] sm:$0xff] }
0x1cba   :  { %v4205_v36 = vmul.f32 %v7745_v29, %v7745_v29 }
0x1cbc   :  { %v4219_v25 = vsel %vm180_vm1, %v4205_v36, 0.0  ;;  %v2377_v36 = vld [vmem:[%s7928_s1 + $0x240] sm:$0xff] }
0x1cbd   :  { %4220 = vadd.xlane.f32.xlu0 %v4219_v25  ;;  %v2376_v25 = vld [vmem:[%s7928_s1 + $0x238] sm:$0xff] }
0x1d38   :  { %v4212_v46 = vpop.xlane.xlu1 %4211 }
0x1d39   :  { %v4226_v26 = vmul.f32 0.03125, %v4212_v46  ;;  %v2371_v46 = vld [vmem:[%s7928_s1 + $0x210] sm:$0xff] }
0x1d3a   :  { %v4209_v27 = vpop.xlane.xlu0 %4208 }
0x1d3b   :  { %v4232_v42 = vadd.f32 1e-05, %v4226_v26  ;;  %v4225_v31 = vmul.f32 0.03125, %v4209_v27  ;;  %v2370_v26 = vld [vmem:[%s7928_s1 + $0x208] sm:$0xff]  ;;  %v2369_v27 = vld [vmem:[%s7928_s1 + $0x200] sm:$0xff] }
0x1d3d   :  { %6114 = vrsqrt.f32 %v4232_v42  ;;  %v4231_v56 = vadd.f32 1e-05, %v4225_v31  ;;  %v2368_v42 = vld [vmem:[%s7928_s1 + $0x1f8] sm:$0xff]  ;;  %v2367_v31 = vld [vmem:[%s7928_s1 + $0x1f0] sm:$0xff] }
0x1d3e   :  { %v4218_v18 = vpop.xlane.xlu1 %4217 }
0x1d3f   :  { %6116 = vrsqrt.f32 %v4231_v56  ;;  %v4228_v43 = vmul.f32 0.03125, %v4218_v18  ;;  %v2366_v56 = vld [vmem:[%s7928_s1 + $0x1e8] sm:$0xff]  ;;  %v4272_v18 = vrot.slane %v7680_v17, %v2074_v12 }
0x1d41   :  { %v4234_v45 = vadd.f32 1e-05, %v4228_v43 }
0x1d42   :  { %v4215_v61 = vpop.xlane.xlu0 %4214  ;;  %v4224_v30 = vpop.xlane.xlu1 %4223 }
0x1d43   :  { %6118 = vrsqrt.f32 %v4234_v45  ;;  %v4227_v54 = vmul.f32 0.03125, %v4215_v61  ;;  %v4230_v40 = vmul.f32 0.03125, %v4224_v30 }
0x1d45   :  { %v4233_v11 = vadd.f32 1e-05, %v4227_v54  ;;  %v4236_v49 = vadd.f32 1e-05, %v4230_v40 }
0x1d46   :  { %v4221_v62 = vpop.xlane.xlu0 %4220 }
0x1d47   :  { %6120 = vrsqrt.f32 %v4233_v11  ;;  %v4229_v23 = vmul.f32 0.03125, %v4221_v62 }
0x1d48   :  { %6122 = vrsqrt.f32 %v4236_v49 }
0x1d49   :  { %v4235_v3 = vadd.f32 1e-05, %v4229_v23 }
0x1d4a   :  { %v6115_v5 = vpop.eup %6114 }
0x1d4b   :  { %v4244_v51 = vmul.f32 %v6115_v5, %v7716_v59  ;;  %6124 = vrsqrt.f32 %v4235_v3 }
0x1d4c   :  { %v6117_v39 = vpop.eup %6116 }
0x1d4d   :  { %v4243_v37 = vmul.f32 %v6117_v39, %v7719_v16  ;;  %v4254_v35 = vmul.f32 %v4252_v4, %v4244_v51 }
0x1d4f   :  { %v4253_v34 = vmul.f32 %v4252_v4, %v4243_v37  ;;  %v4264_v2 = vadd.f32 %v4262_v38, %v4254_v35 }
0x1d50   :  { %v6119_v7 = vpop.eup %6118 }
0x1d51   :  { %v4263_v41 = vadd.f32 %v4262_v38, %v4253_v34  ;;  %v4246_v50 = vmul.f32 %v6119_v7, %v7727_v55 }
0x1d53   :  { %5793 = vmatprep.mubr.msk.f32.mxu0 %vm180_vm1, %v4263_v41  ;;  %v4256_v16 = vmul.f32 %v4252_v4, %v4246_v50 }
0x1d54   :  { %v6121_v0 = vpop.eup %6120  ;;  %5794 = vmatmul.mubr.msk.f32.vlgmr.msra.gmra.mxu0 %vm180_vm1, %v4264_v2 }
0x1d55   :  { %v6123_v59 = vpop.eup %6122  ;;  %v4245_v52 = vmul.f32 %v6121_v0, %v7736_v33  ;;  %v4266_v32 = vadd.f32 %v4262_v38, %v4256_v16  ;;  %v2380_v33 = vld [vmem:[%s7928_s1 + $0x258] sm:$0xff] }
0x1d56   :  { %v4248_v8 = vmul.f32 %v6123_v59, %v7733_v48  ;;  %v2381_v48 = vld [vmem:[%s7928_s1 + $0x260] sm:$0xff] }
0x1d57   :  { %v4255_v19 = vmul.f32 %v4252_v4, %v4245_v52  ;;  %5802 = vmatprep.subr.mxu1 %v2381_v48 }
0x1d58   :  { %v6125_v21 = vpop.eup %6124  ;;  %v4258_v57 = vmul.f32 %v4252_v4, %v4248_v8  ;;  %5803 = vmatpush3.msra.mxu1 %v2381_v48 }
0x1d59   :  { %v4265_v6 = vadd.f32 %v4262_v38, %v4255_v19  ;;  %v4247_v13 = vmul.f32 %v6125_v21, %v7745_v29  ;;  %5804 = vmatprep.subr.mxu1 %v2380_v33  ;;  %v2379_v29 = vld [vmem:[%s7928_s1 + $0x250] sm:$0xff] }
0x1d5a   :  { %v4268_v15 = vadd.f32 %v4262_v38, %v4258_v57  ;;  %5805 = vmatpush3.msra.mxu1 %v2380_v33 }
0x1d5b   :  { %5796 = vmatprep.mubr.msk.f32.mxu0 %vm180_vm1, %v4265_v6  ;;  %v4257_v55 = vmul.f32 %v4252_v4, %v4247_v13  ;;  %5806 = vmatprep.subr.mxu1 %v2379_v29 }
0x1d5c   :  { %5797 = vmatmul.mubr.msk.f32.gmra.mxu0 %vm180_vm1, %v4266_v32  ;;  %5807 = vmatpush3.msra.mxu1 %v2379_v29 }
0x1d5d   :  { %v4267_v9 = vadd.f32 %v4262_v38, %v4257_v55  ;;  %5808 = vmatprep.subr.mxu1 %v2378_v10 }
0x1d5e   :  { %5809 = vmatpush3.msra.mxu1 %v2378_v10 }
0x1d5f   :  { %5799 = vmatprep.mubr.msk.f32.mxu0 %vm180_vm1, %v4267_v9  ;;  %5810 = vmatprep.subr.mxu1 %v2377_v36 }
0x1d60   :  { %5800 = vmatmul.mubr.msk.f32.gmra.mxu0 %vm180_vm1, %v4268_v15  ;;  %5811 = vmatpush3.msra.mxu1 %v2377_v36 }
0x1d61   :  { %5812 = vmatprep.subr.mxu1 %v2376_v25 }
0x1d62   :  { %5813 = vmatpush3.msra.mxu1 %v2376_v25 }
0x1d63   :  { %5814 = vmatprep.subr.mxu1 %v2375_v28 }
0x1d64   :  { %5815 = vmatpush3.msra.mxu1 %v2375_v28 }
0x1d65   :  { %5816 = vmatprep.subr.mxu1 %v2374_v63 }
0x1d66   :  { %5817 = vmatpush3.msra.mxu1 %v2374_v63 }
0x1d67   :  { %5818 = vmatprep.subr.mxu1 %v2373_v44 }
0x1d68   :  { %5819 = vmatpush3.msra.mxu1 %v2373_v44 }
0x1d69   :  { %5820 = vmatprep.subr.mxu1 %v2372_v14 }
0x1d6a   :  { %5821 = vmatpush3.msra.mxu1 %v2372_v14 }
0x1d6b   :  { %5822 = vmatprep.subr.mxu1 %v2371_v46 }
0x1d6c   :  { %5823 = vmatpush3.msra.mxu1 %v2371_v46 }
0x1d6d   :  { %5824 = vmatprep.subr.mxu1 %v2370_v26 }
0x1d6e   :  { %5825 = vmatpush3.msra.mxu1 %v2370_v26 }
0x1d6f   :  { %5826 = vmatprep.subr.mxu1 %v2369_v27 }
0x1d70   :  { %5827 = vmatpush3.msra.mxu1 %v2369_v27 }
0x1d71   :  { %5828 = vmatprep.subr.mxu1 %v2368_v42 }
0x1d72   :  { %5829 = vmatpush3.msra.mxu1 %v2368_v42 }
0x1d73   :  { %5830 = vmatprep.subr.mxu1 %v2367_v31 }
0x1d74   :  { %5831 = vmatpush3.msra.mxu1 %v2367_v31 }
0x1d75   :  { %5832 = vmatprep.subr.mxu1 %v2366_v56 }
0x1d76   :  { %5833 = vmatpush3.msra.mxu1 %v2366_v56 }
0x1e14   :  { %v5795_v43 = vpop.f32.mrf.mxu0 }
0x1e15   :  { %v4363_v45 = vadd.f32 %v5795_v43, %v4272_v18 }
0x1e16   :  { %v4357_v61 = vpop.f32.mrf.mxu0 }
0x1e17   :  { %v4387_v30 = vmul.f32 %v4363_v45, %v4363_v45  ;;  %v4358_v54 = vadd.f32 %v4357_v61, %v4272_v18 }
0x1e19   :  { %v4393_v40 = vmul.f32 %v4387_v30, %v4363_v45  ;;  %v4386_v11 = vmul.f32 %v4358_v54, %v4358_v54 }
0x1e1b   :  { %v4399_v49 = vmul.f32 0.044715, %v4393_v40  ;;  %v4392_v62 = vmul.f32 %v4386_v11, %v4358_v54 }
0x1e1c   :  { %v5798_v23 = vpop.f32.mrf.mxu0 }
0x1e1d   :  { %v4405_v3 = vadd.f32 %v4399_v49, %v4363_v45  ;;  %v4398_v5 = vmul.f32 0.044715, %v4392_v62  ;;  %v4373_v4 = vadd.f32 %v5798_v23, %v4272_v18 }
0x1e1e   :  { %v4367_v51 = vpop.f32.mrf.mxu0 }
0x1e1f   :  { %v4411_v39 = vmul.f32 0.7978846, %v4405_v3  ;;  %v4404_v37 = vadd.f32 %v4398_v5, %v4358_v54  ;;  %v4389_v35 = vmul.f32 %v4373_v4, %v4373_v4  ;;  %v4368_v38 = vadd.f32 %v4367_v51, %v4272_v18 }
0x1e20   :  { %v5801_v34 = vpop.f32.mrf.mxu0 }
0x1e21   :  { %6126 = vtanh.f32 %v4411_v39  ;;  %v4410_v12 = vmul.f32 0.7978846, %v4404_v37  ;;  %v4395_v7 = vmul.f32 %v4389_v35, %v4373_v4  ;;  %v4388_v41 = vmul.f32 %v4368_v38, %v4368_v38 }
0x1e22   :  { %v4383_v2 = vadd.f32 %v5801_v34, %v4272_v18  ;;  %v4377_v50 = vpop.f32.mrf.mxu0 }
0x1e23   :  { %6128 = vtanh.f32 %v4410_v12  ;;  %v4401_v0 = vmul.f32 0.044715, %v4395_v7  ;;  %v4394_v59 = vmul.f32 %v4388_v41, %v4368_v38  ;;  %v4378_v52 = vadd.f32 %v4377_v50, %v4272_v18 }
0x1e24   :  { %v4391_v16 = vmul.f32 %v4383_v2, %v4383_v2 }
0x1e25   :  { %v4407_v8 = vadd.f32 %v4401_v0, %v4373_v4  ;;  %v4400_v19 = vmul.f32 0.044715, %v4394_v59  ;;  %v4390_v21 = vmul.f32 %v4378_v52, %v4378_v52 }
0x1e26   :  { %v4397_v6 = vmul.f32 %v4391_v16, %v4383_v2 }
0x1e27   :  { %v4413_v13 = vmul.f32 0.7978846, %v4407_v8  ;;  %v4406_v32 = vadd.f32 %v4400_v19, %v4368_v38  ;;  %v4396_v57 = vmul.f32 %v4390_v21, %v4378_v52 }
0x1e28   :  { %v4403_v55 = vmul.f32 0.044715, %v4397_v6 }
0x1e29   :  { %6130 = vtanh.f32 %v4413_v13  ;;  %v4412_v9 = vmul.f32 0.7978846, %v4406_v32  ;;  %v4402_v15 = vmul.f32 0.044715, %v4396_v57 }
0x1e2a   :  { %v4409_v48 = vadd.f32 %v4403_v55, %v4383_v2 }
0x1e2b   :  { %6132 = vtanh.f32 %v4412_v9  ;;  %v4408_v33 = vadd.f32 %v4402_v15, %v4378_v52 }
0x1e2c   :  { %v4415_v29 = vmul.f32 0.7978846, %v4409_v48 }
0x1e2d   :  { %v4414_v10 = vmul.f32 0.7978846, %v4408_v33 }
0x1e2e   :  { %v6127_v36 = vpop.eup %6126  ;;  %6134 = vtanh.f32 %v4415_v29 }
0x1e2f   :  { %v4423_v25 = vadd.f32 1.0, %v6127_v36  ;;  %6136 = vtanh.f32 %v4414_v10 }
0x1e30   :  { %v6129_v28 = vpop.eup %6128 }
0x1e31   :  { %v4422_v63 = vadd.f32 1.0, %v6129_v28  ;;  %v4429_v44 = vmul.f32 0.5, %v4423_v25 }
0x1e33   :  { %v4428_v14 = vmul.f32 0.5, %v4422_v63  ;;  %v4435_v27 = vmul.f32 %v4429_v44, %v4363_v45  ;;  %v4544_v45 = vrot.slane %v7680_v17, %v2346_v60 }
0x1e35   :  { %v4434_v46 = vmul.f32 %v4428_v14, %v4358_v54 }
0x1e36   :  { %v6131_v26 = vpop.eup %6130 }
0x1e37   :  { %5834 = vmatprep.mubr.f32.mxu1 %v4434_v46  ;;  %v4425_v42 = vadd.f32 1.0, %v6131_v26 }
0x1e38   :  { %v6133_v31 = vpop.eup %6132  ;;  %5835 = vmatmul.mubr.f32.vlgmr.msra.gmra.mxu1 %v4435_v27 }
0x1e39   :  { %v4424_v56 = vadd.f32 1.0, %v6133_v31  ;;  %v4431_v18 = vmul.f32 0.5, %v4425_v42 }
0x1e3b   :  { %v6135_v43 = vpop.eup %6134  ;;  %v4430_v61 = vmul.f32 0.5, %v4424_v56  ;;  %v4437_v62 = vmul.f32 %v4431_v18, %v4373_v4 }
0x1e3c   :  { %v6137_v30 = vpop.eup %6136  ;;  %v4427_v40 = vadd.f32 1.0, %v6135_v43 }
0x1e3d   :  { %v4436_v11 = vmul.f32 %v4430_v61, %v4368_v38  ;;  %v4426_v49 = vadd.f32 1.0, %v6137_v30  ;;  %v4557_v30 = vld [vmem:[%s7928_s1 + $0x290] sm:$0xff] }
0x1e3e   :  { %v4433_v23 = vmul.f32 0.5, %v4427_v40  ;;  %5843 = vmatprep.subr.mxu0 %v4557_v30  ;;  %v4556_v40 = vld [vmem:[%s7928_s1 + $0x288] sm:$0xff] }
0x1e3f   :  { %5837 = vmatprep.mubr.f32.mxu1 %v4436_v11  ;;  %v4432_v3 = vmul.f32 0.5, %v4426_v49  ;;  %5844 = vmatpush3.msra.mxu0 %v4557_v30  ;;  %v4555_v11 = vld [vmem:[%s7928_s1 + $0x280] sm:$0xff]  ;;  %v4554_v49 = vld [vmem:[%s7928_s1 + $0x278] sm:$0xff] }
0x1e40   :  { %5838 = vmatmul.mubr.f32.gmra.mxu1 %v4437_v62  ;;  %v4439_v5 = vmul.f32 %v4433_v23, %v4383_v2  ;;  %5845 = vmatprep.subr.mxu0 %v4556_v40 }
0x1e41   :  { %v4438_v54 = vmul.f32 %v4432_v3, %v4378_v52  ;;  %5846 = vmatpush3.msra.mxu0 %v4556_v40 }
0x1e42   :  { %5847 = vmatprep.subr.mxu0 %v4555_v11 }
0x1e43   :  { %5840 = vmatprep.mubr.f32.mxu1 %v4438_v54  ;;  %5848 = vmatpush3.msra.mxu0 %v4555_v11 }
0x1e44   :  { %5841 = vmatmul.mubr.f32.gmra.mxu1 %v4439_v5  ;;  %5849 = vmatprep.subr.mxu0 %v4554_v49 }
0x1e45   :  { %5850 = vmatpush3.msra.mxu0 %v4554_v49 }
0x1ef8   :  { %v5836_v51 = vpop.f32.mrf.mxu1 }
0x1ef9   :  { %v4536_v39 = vadd.f32 %v5836_v51, %v7686_v47 }
0x1efa   :  { %v4506_v37 = vpop.f32.mrf.mxu1 }
0x1efb   :  { %v4546_v35 = vadd.f32 %v4544_v45, %v4536_v39  ;;  %v4535_v38 = vadd.f32 %v4506_v37, %v7689_v53 }
0x1efd   :  { %v4545_v4 = vadd.f32 %v4544_v45, %v4535_v38  ;;  %v4561_v34 = vsel %vm180_vm1, %v4546_v35, 0.0 }
0x1efe   :  { %4562 = vadd.xlane.f32.xlu1 %v4561_v34 }
0x1eff   :  { %v4558_v12 = vsel %vm180_vm1, %v4545_v4, 0.0 }
0x1f00   :  { %4559 = vadd.xlane.f32.xlu0 %v4558_v12  ;;  %v5839_v7 = vpop.f32.mrf.mxu1 }
0x1f01   :  { %v4538_v41 = vadd.f32 %v5839_v7, %v7696_v1 }
0x1f02   :  { %v4516_v24 = vpop.f32.mrf.mxu1 }
0x1f03   :  { %v4548_v2 = vadd.f32 %v4544_v45, %v4538_v41  ;;  %v4537_v60 = vadd.f32 %v4516_v24, %v7702_v58 }
0x1f04   :  { %v5842_v17 = vpop.f32.mrf.mxu1 }
0x1f05   :  { %v4547_v47 = vadd.f32 %v4544_v45, %v4537_v60  ;;  %v4540_v50 = vadd.f32 %v5842_v17, %v7704_v20  ;;  %v4567_v53 = vsel %vm180_vm1, %v4548_v2, 0.0  ;;  %v4969_v17 = vld [vmem:[%s7928_s1 + $0x270] ss:$0 sm:$0xff] }
0x1f06   :  { %4568 = vadd.xlane.f32.xlu1 %v4567_v53  ;;  %v4526_v0 = vpop.f32.mrf.mxu1 }
0x1f07   :  { %v4550_v59 = vadd.f32 %v4544_v45, %v4540_v50  ;;  %v4539_v52 = vadd.f32 %v4526_v0, %v7709_v22  ;;  %v4564_v16 = vsel %vm180_vm1, %v4547_v47, 0.0 }
0x1f08   :  { %4565 = vadd.xlane.f32.xlu0 %v4564_v16 }
0x1f09   :  { %v4549_v8 = vadd.f32 %v4544_v45, %v4539_v52  ;;  %v4573_v1 = vsel %vm180_vm1, %v4550_v59, 0.0 }
0x1f0a   :  { %4574 = vadd.xlane.f32.xlu1 %v4573_v1 }
0x1f0b   :  { %v4570_v58 = vsel %vm180_vm1, %v4549_v8, 0.0 }
0x1f0c   :  { %4571 = vadd.xlane.f32.xlu0 %v4570_v58 }
0x1f87   :  { %v4563_v19 = vpop.xlane.xlu1 %4562 }
0x1f88   :  { %v4577_v21 = vmul.f32 0.03125, %v4563_v19 }
0x1f89   :  { %v4560_v20 = vpop.xlane.xlu0 %4559 }
0x1f8a   :  { %v7847_v6 = vsub.f32 %v4546_v35, %v4577_v21  ;;  %v4576_v13 = vmul.f32 0.03125, %v4560_v20 }
0x1f8c   :  { %v7849_v32 = vsub.f32 %v4545_v4, %v4576_v13  ;;  %v4589_v22 = vmul.f32 %v7847_v6, %v7847_v6 }
0x1f8e   :  { %v4597_v57 = vsel %vm180_vm1, %v4589_v22, 0.0  ;;  %v4588_v55 = vmul.f32 %v7849_v32, %v7849_v32 }
0x1f8f   :  { %4598 = vadd.xlane.f32.xlu1 %v4597_v57  ;;  %v4569_v9 = vpop.xlane.xlu1 %4568 }
0x1f90   :  { %v4579_v15 = vmul.f32 0.03125, %v4569_v9  ;;  %v4594_v48 = vsel %vm180_vm1, %v4588_v55, 0.0 }
0x1f91   :  { %v4566_v33 = vpop.xlane.xlu0 %4565  ;;  %4595 = vadd.xlane.f32.xlu0 %v4594_v48 }
0x1f92   :  { %v7857_v29 = vsub.f32 %v4548_v2, %v4579_v15  ;;  %v4578_v10 = vmul.f32 0.03125, %v4566_v33 }
0x1f93   :  { %v4575_v36 = vpop.xlane.xlu1 %4574 }
0x1f94   :  { %v7859_v25 = vsub.f32 %v4547_v47, %v4578_v10  ;;  %v4581_v28 = vmul.f32 0.03125, %v4575_v36  ;;  %v4591_v63 = vmul.f32 %v7857_v29, %v7857_v29  ;;  %v4971_v10 = vld [vmem:[%s7928_s1 + $0x272] ss:$0 sm:$0xff] }
0x1f95   :  { %v4572_v44 = vpop.xlane.xlu0 %4571 }
0x1f96   :  { %v7863_v14 = vsub.f32 %v4550_v59, %v4581_v28  ;;  %v4580_v46 = vmul.f32 0.03125, %v4572_v44  ;;  %v4603_v26 = vsel %vm180_vm1, %v4591_v63, 0.0  ;;  %v4590_v27 = vmul.f32 %v7859_v25, %v7859_v25  ;;  %v4970_v59 = vld [vmem:[%s7928_s1 + $0x271] ss:$0 sm:$0xff] }
0x1f97   :  { %4604 = vadd.xlane.f32.xlu1 %v4603_v26 }
0x1f98   :  { %v7868_v42 = vsub.f32 %v4549_v8, %v4580_v46  ;;  %v4600_v31 = vsel %vm180_vm1, %v4590_v27, 0.0  ;;  %v4593_v56 = vmul.f32 %v7863_v14, %v7863_v14 }
0x1f99   :  { %4601 = vadd.xlane.f32.xlu0 %v4600_v31 }
0x1f9a   :  { %v4609_v18 = vsel %vm180_vm1, %v4593_v56, 0.0  ;;  %v4592_v43 = vmul.f32 %v7868_v42, %v7868_v42 }
0x1f9b   :  { %4610 = vadd.xlane.f32.xlu1 %v4609_v18 }
0x1f9c   :  { %v4606_v61 = vsel %vm180_vm1, %v4592_v43, 0.0 }
0x1f9d   :  { %4607 = vadd.xlane.f32.xlu0 %v4606_v61 }
0x2018   :  { %v4599_v62 = vpop.xlane.xlu1 %4598 }
0x2019   :  { %v4613_v23 = vmul.f32 0.03125, %v4599_v62 }
0x201a   :  { %v4596_v3 = vpop.xlane.xlu0 %4595 }
0x201b   :  { %v4619_v54 = vadd.f32 1e-05, %v4613_v23  ;;  %v4612_v5 = vmul.f32 0.03125, %v4596_v3 }
0x201d   :  { %6138 = vrsqrt.f32 %v4619_v54  ;;  %v4618_v45 = vadd.f32 1e-05, %v4612_v5 }
0x201f   :  { %6140 = vrsqrt.f32 %v4618_v45 }
0x2020   :  { %v4605_v51 = vpop.xlane.xlu1 %4604 }
0x2021   :  { %v4615_v39 = vmul.f32 0.03125, %v4605_v51 }
0x2022   :  { %v4602_v37 = vpop.xlane.xlu0 %4601 }
0x2023   :  { %v4621_v35 = vadd.f32 1e-05, %v4615_v39  ;;  %v4614_v38 = vmul.f32 0.03125, %v4602_v37 }
0x2024   :  { %v4611_v4 = vpop.xlane.xlu1 %4610 }
0x2025   :  { %6142 = vrsqrt.f32 %v4621_v35  ;;  %v4620_v34 = vadd.f32 1e-05, %v4614_v38  ;;  %v4617_v12 = vmul.f32 0.03125, %v4611_v4 }
0x2026   :  { %v4608_v7 = vpop.xlane.xlu0 %4607 }
0x2027   :  { %6144 = vrsqrt.f32 %v4620_v34  ;;  %v4623_v41 = vadd.f32 1e-05, %v4617_v12  ;;  %v4616_v24 = vmul.f32 0.03125, %v4608_v7 }
0x2029   :  { %6146 = vrsqrt.f32 %v4623_v41  ;;  %v4622_v2 = vadd.f32 1e-05, %v4616_v24 }
0x202a   :  { %v6139_v60 = vpop.eup %6138 }
0x202b   :  { %v4631_v47 = vmul.f32 %v6139_v60, %v7847_v6  ;;  %6148 = vrsqrt.f32 %v4622_v2 }
0x202c   :  { %v6141_v50 = vpop.eup %6140 }
0x202d   :  { %v4630_v53 = vmul.f32 %v6141_v50, %v7849_v32  ;;  %v4641_v0 = vmul.f32 %v4969_v17, %v4631_v47 }
0x202f   :  { %v4640_v52 = vmul.f32 %v4969_v17, %v4630_v53  ;;  %v4651_v1 = vadd.f32 %v4970_v59, %v4641_v0 }
0x2031   :  { %v4650_v16 = vadd.f32 %v4970_v59, %v4640_v52 }
0x2032   :  { %v6143_v8 = vpop.eup %6142 }
0x2033   :  { %5851 = vmatprep.mubr.msk.f32.mxu0 %vm180_vm1, %v4650_v16  ;;  %v4633_v58 = vmul.f32 %v6143_v8, %v7857_v29 }
0x2034   :  { %v6145_v19 = vpop.eup %6144  ;;  %5852 = vmatmul.mubr.msk.f32.vlgmr.msra.gmra.mxu0 %vm180_vm1, %v4651_v1 }
0x2035   :  { %v4632_v21 = vmul.f32 %v6145_v19, %v7859_v25  ;;  %v4643_v6 = vmul.f32 %v4969_v17, %v4633_v58 }
0x2036   :  { %v6147_v20 = vpop.eup %6146 }
0x2037   :  { %v4642_v13 = vmul.f32 %v4969_v17, %v4632_v21  ;;  %v4635_v32 = vmul.f32 %v6147_v20, %v7863_v14  ;;  %v4653_v9 = vadd.f32 %v4970_v59, %v4643_v6 }
0x2038   :  { %v6149_v22 = vpop.eup %6148 }
0x2039   :  { %v4652_v57 = vadd.f32 %v4970_v59, %v4642_v13  ;;  %v4634_v55 = vmul.f32 %v6149_v22, %v7868_v42  ;;  %v4645_v15 = vmul.f32 %v4969_v17, %v4635_v32 }
0x203b   :  { %5854 = vmatprep.mubr.msk.f32.mxu0 %vm180_vm1, %v4652_v57  ;;  %v4644_v48 = vmul.f32 %v4969_v17, %v4634_v55  ;;  %v4655_v29 = vadd.f32 %v4970_v59, %v4645_v15 }
0x203c   :  { %5855 = vmatmul.mubr.msk.f32.gmra.mxu0 %vm180_vm1, %v4653_v9 }
0x203d   :  { %v4654_v33 = vadd.f32 %v4970_v59, %v4644_v48 }
0x203f   :  { %5857 = vmatprep.mubr.msk.f32.mxu0 %vm180_vm1, %v4654_v33 }
0x2040   :  { %5858 = vmatmul.mubr.msk.f32.gmra.mxu0 %vm180_vm1, %v4655_v29 }
0x20f4   :  { %v5853_v36 = vpop.f32.mrf.mxu0 }
0x20f5   :  { %v4750_v25 = vadd.f32 %v5853_v36, %v4971_v10 }
0x20f6   :  { %v4744_v28 = vpop.f32.mrf.mxu0 }
0x20f7   :  { %4774 = vst [vmem:[%s7930_s2 + $0x8] sm:$0xff] %v4750_v25  ;;  %v4745_v63 = vadd.f32 %v4971_v10, %v4744_v28 }
0x20f9   :  { %4773 = vst [vmem:[%s7930_s2] sm:$0xff] %v4745_v63 }
0x20fc   :  { %v5856_v44 = vpop.f32.mrf.mxu0 }
0x20fd   :  { %v4760_v14 = vadd.f32 %v5856_v44, %v4971_v10 }
0x20fe   :  { %v4754_v46 = vpop.f32.mrf.mxu0 }
0x20ff   :  { %4776 = vst [vmem:[%s7930_s2 + $0x18] sm:$0xff] %v4760_v14  ;;  %v4755_v26 = vadd.f32 %v4971_v10, %v4754_v46 }
0x2100   :  { %v5859_v27 = vpop.f32.mrf.mxu0 }
0x2101   :  { %4775 = vst [vmem:[%s7930_s2 + $0x10] sm:$0xff] %v4755_v26  ;;  %v4770_v42 = vadd.f32 %v5859_v27, %v4971_v10 }
0x2102   :  { %v4764_v31 = vpop.f32.mrf.mxu0 }
0x2103   :  { %4778 = vst [vmem:[%s7930_s2 + $0x28] sm:$0xff] %v4770_v42  ;;  %v4765_v56 = vadd.f32 %v4971_v10, %v4764_v31 }
0x2105   :  { %4777 = vst [vmem:[%s7930_s2 + $0x20] sm:$0xff] %v4765_v56 }

</bundles_post_ra>
